<compile_context>
chip_gen: v6e
topology: v6e:2x2x1
jax: 0.10.0
libtpu: 0.0.40
codegen_flags: <defaults>
</compile_context>

<pallas_src>
import functools

import numpy as np

import jax
import jax.numpy as jnp
from jax import lax
from jax.experimental import pallas as pl
from jax.experimental.pallas import tpu as pltpu


# ----------------------------------------------------------------------------
# Exact align_corners=True bilinear resize, expressed with interpolation matrices.
# ----------------------------------------------------------------------------
def _bilinear_matrix(out_size: int, in_size: int) -> np.ndarray:
    """(out_size, in_size) matrix M s.t. y = M @ x is PyTorch bilinear(align_corners=True)."""
    A = np.zeros((out_size, in_size), dtype=np.float32)
    if in_size == 1:
        A[:, 0] = 1.0
        return A
    if out_size == 1:
        src = np.zeros((1,), dtype=np.float64)
    else:
        src = np.arange(out_size, dtype=np.float64) * (in_size - 1) / (out_size - 1)
    i0 = np.clip(np.floor(src).astype(np.int64), 0, in_size - 1)
    i1 = np.minimum(i0 + 1, in_size - 1)
    frac = (src - i0).astype(np.float32)
    rows = np.arange(out_size)
    A[rows, i0] += (1.0 - frac)
    A[rows, i1] += frac
    return A


def _kron_resize_matrix_T(in_hw, out_hw) -> np.ndarray:
    """(H_in*W_in, H_out*W_out) matrix R^T such that out_flat = in_flat @ R^T (flattened NCHW)."""
    Ah = _bilinear_matrix(out_hw[0], in_hw[0])
    Aw = _bilinear_matrix(out_hw[1], in_hw[1])
    return np.ascontiguousarray(np.kron(Ah, Aw).T)


def _bilinear_resize(x_nchw, out_h: int, out_w: int):
    """Reference-only: exact F.interpolate(..., mode='bilinear', align_corners=True)."""
    Ah = jnp.asarray(_bilinear_matrix(out_h, x_nchw.shape[2]))
    Aw = jnp.asarray(_bilinear_matrix(out_w, x_nchw.shape[3]))
    t = jnp.einsum("ncpq,jq->ncpj", x_nchw, Aw, precision=lax.Precision.HIGHEST)
    return jnp.einsum("ncpj,ip->ncij", t, Ah, precision=lax.Precision.HIGHEST)


def _tap_masks(H: int, W: int, dil: int, padding: int) -> np.ndarray:
    """(9, H*W) float masks: 1 where the tap's source pixel is inside the image."""
    hh = np.arange(H)[:, None]
    ww = np.arange(W)[None, :]
    masks = np.zeros((9, H * W), dtype=np.float32)
    for t in range(9):
        dh = (t // 3) * dil - padding
        dw = (t % 3) * dil - padding
        valid = (hh + dh >= 0) & (hh + dh < H) & (ww + dw >= 0) & (ww + dw < W)
        masks[t] = valid.astype(np.float32).reshape(-1)
    return masks


# ----------------------------------------------------------------------------
# Pallas kernel: fused resize#1 + conv1 + FTB + resize#2 in lane-dense (C, H*W) layout.
# Grid: (N, T).  program_id(0) = batch element n, program_id(1) = resize-#2 output column tile t.
# ----------------------------------------------------------------------------
def _fcn_last_block_kernel(x_ref, w1_ref, k1_ref, w2_ref, b2_ref, w3_ref, masks_ref, k2_ref,
                           out_ref, pad_scr, col_scr, ftb_scr,
                           *, H, W, C, dil, padding, halo):
    # x_ref     : (1, C_in, M0)       flattened-NCHW input at the ORIGINAL resolution
    # w1_ref    : (C, C_in)           1x1 conv weight
    # k1_ref    : (M0, M)             resize#1 Kronecker matrix (transposed), f32
    # w2_ref    : (C, 9*C)            BN-folded dilated conv2 weight, im2col order
    # b2_ref    : (C, 1)              BN-folded conv2 bias
    # w3_ref    : (C, 9*C)            dilated conv3 weight, im2col order
    # masks_ref : (9, M)              per-tap validity masks
    # k2_ref    : (M, TILE)           resize#2 Kronecker matrix column tile (possibly bf16)
    # out_ref   : (1, C, TILE)        flattened-NCHW output tile (lane-dense)
    # pad_scr   : (C, M + 2*halo)     zero-halo'd image buffer (in-kernel padding)
    # col_scr   : (9*C, M)            im2col buffer -> single K = 9*C matmul
    # ftb_scr   : (C, M)              cached FTB output, reused by every resize-#2 tile
    t = pl.program_id(1)
    M = H * W

    @pl.when(t == 0)
    def _compute_ftb():
        # Zero only the two halo strips (the interior is always fully overwritten below); this runs
        # once per batch element, so per-core scratch is initialized even under megacore sharding.
        pad_scr[:, :halo] = jnp.zeros((C, halo), jnp.float32)
        pad_scr[:, halo + M:] = jnp.zeros((C, halo), jnp.float32)

        def dilated_conv3x3(src, w_stack, bias=None):
            # Dilated 3x3 conv (dilation=dil, padding=padding) as ONE im2col matmul (K = 9*C).
            pad_scr[:, halo:halo + M] = src              # 128-aligned interior store
            for tap in range(9):
                dh = (tap // 3) * dil - padding
                dw = (tap % 3) * dil - padding
                off = halo + dh * W + dw                 # static flattened shift
                v = pad_scr[:, off:off + M]              # contiguous lane slice of halo'd buffer
                if dw != 0:
                    # Row-wrap positions (w + dw out of range) read the neighbouring row -> mask.
                    # Pure-h overflow always lands in the zero halo, so no mask is needed there.
                    v = v * masks_ref[tap:tap + 1, :]
                col_scr[tap * C:(tap + 1) * C, :] = v
            y = jnp.dot(w_stack, col_scr[...], preferred_element_type=jnp.float32)
            if bias is not None:
                y = y + bias                             # (C, 1) broadcast, fused epilogue
            return y

        # conv1 at input resolution, then bilinear resize #1 as an MXU matmul (they commute).
        z = jnp.dot(w1_ref[...], x_ref[0], preferred_element_type=jnp.float32)     # (C, M0)
        y1 = jnp.dot(z, k1_ref[...], preferred_element_type=jnp.float32)           # (C, M)
        a2 = jnp.maximum(dilated_conv3x3(y1, w2_ref[...], b2_ref[...]), 0.0)       # conv2+BN+ReLU
        y3 = dilated_conv3x3(a2, w3_ref[...])                                      # conv3
        ftb_scr[...] = jnp.maximum(y3 + y1, 0.0)                                   # residual+ReLU

    # ---- bilinear resize #2, one output-spatial tile per step: (C, M) @ (M, TILE) on the MXU ----
    y = ftb_scr[...].astype(k2_ref.dtype)
    out_ref[0] = jnp.dot(y, k2_ref[...], preferred_element_type=jnp.float32).astype(out_ref.dtype)


# ----------------------------------------------------------------------------
# Public forward: matches fcn_last_block.forward(input, backbone_stage_size).
# ----------------------------------------------------------------------------
def fcn_last_block_forward(x, backbone_stage_size, params, *, bn_eps=1e-5,
                           resize2_dtype=jnp.bfloat16, spatial_tile=1024):
    """x: (N, C_in, H, W) f32; backbone_stage_size: sequence of (h, w); params: dict of weights."""
    N, C_in, H0, W0 = x.shape
    H4, W4 = int(backbone_stage_size[4][0]), int(backbone_stage_size[4][1])
    H5, W5 = int(backbone_stage_size[5][0]), int(backbone_stage_size[5][1])
    w1, w2, b2, w3 = params["conv1_w"], params["conv2_w"], params["conv2_b"], params["conv3_w"]
    C_out = w1.shape[0]
    dil = padding = 2
    M0, M4, M5 = H0 * W0, H4 * W4, H5 * W5

    # ---- size assumptions (hold for the VNL configuration exercised here) ----
    assert M4 % 128 == 0, f"H4*W4 = {M4} must be a multiple of 128 (lane-dense FTB layout)"
    assert C_out % 8 == 0, f"dim_out = {C_out} must be a multiple of 8 (f32 sublane tile)"
    tile = spatial_tile if (M5 % spatial_tile == 0) else M5
    assert tile == M5 or tile % 128 == 0, f"resize-#2 tile {tile} must be a multiple of 128"
    n_tiles = M5 // tile

    # ---- fold BatchNorm (inference semantics) + conv2 bias into the conv2 matmul ----
    scale = params["bn_gamma"] / jnp.sqrt(params["bn_var"] + bn_eps)
    b2_eff = ((b2 - params["bn_mean"]) * scale + params["bn_beta"]).reshape(C_out, 1)
    w2_eff = w2 * scale[:, None, None, None]

    # (O, I, kh, kw) -> column (kh*3 + kw)*C + i : matches the im2col row order in the kernel.
    w2_stack = jnp.transpose(w2_eff, (0, 2, 3, 1)).reshape(C_out, 9 * C_out)
    w3_stack = jnp.transpose(w3, (0, 2, 3, 1)).reshape(C_out, 9 * C_out)
    w1_mat = w1.reshape(C_out, C_in)

    # ---- grid-invariant constants: Kronecker resize matrices + conv tap-validity masks ----
    k1T = jnp.asarray(_kron_resize_matrix_T((H0, W0), (H4, W4)))                    # (M0, M4) f32
    k2T = jnp.asarray(_kron_resize_matrix_T((H4, W4), (H5, W5))).astype(resize2_dtype)  # (M4, M5)
    masks = jnp.asarray(_tap_masks(H4, W4, dil, padding))                           # (9, M4)

    max_shift = padding * W4 + padding
    halo = ((max_shift + 127) // 128) * 128               # 128-aligned interior store

    x_flat = x.reshape(N, C_in, M0)                       # flattened NCHW, zero-cost reshape

    # ---- derive vmem_limit_bytes from the actual per-step footprint (review item) ----
    def _tile_bytes(shape, itemsize):
        lead = int(np.prod(shape[:-2])) if len(shape) > 2 else 1
        rows = -(-shape[-2] // 8) * 8
        cols = -(-shape[-1] // 128) * 128
        return lead * rows * cols * itemsize

    k2_isz = np.dtype(resize2_dtype).itemsize
    operand_bytes = sum(_tile_bytes(s, b) for s, b in [
        ((1, C_in, M0), 4), ((C_out, C_in), 4), ((M0, M4), 4),
        ((C_out, 9 * C_out), 4), ((C_out, 1), 4), ((C_out, 9 * C_out), 4),
        ((9, M4), 4), ((M4, tile), k2_isz), ((1, C_out, tile), 4)])
    scratch_bytes = (_tile_bytes((C_out, M4 + 2 * halo), 4)
                     + _tile_bytes((9 * C_out, M4), 4)
                     + _tile_bytes((C_out, M4), 4))
    # double-buffered operands + scratch, with 2x headroom for compiler temporaries
    vmem_limit = int(max(2 * (2 * operand_bytes + scratch_bytes), 16 * 1024 * 1024))

    kernel = functools.partial(_fcn_last_block_kernel, H=H4, W=W4, C=C_out,
                               dil=dil, padding=padding, halo=halo)

    out_flat = pl.pallas_call(
        kernel,
        out_shape=jax.ShapeDtypeStruct((N, C_out, M5), jnp.float32),
        grid_spec=pltpu.PrefetchScalarGridSpec(
            num_scalar_prefetch=0,
            grid=(N, n_tiles),                                          # batch x resize-#2 tiles
            in_specs=[
                pl.BlockSpec((1, C_in, M0), lambda n, t: (n, 0, 0)),    # x (flattened NCHW)
                pl.BlockSpec((C_out, C_in), lambda n, t: (0, 0)),       # conv1 weight
                pl.BlockSpec((M0, M4), lambda n, t: (0, 0)),            # resize#1 matrix (f32)
                pl.BlockSpec((C_out, 9 * C_out), lambda n, t: (0, 0)),  # conv2 (BN-folded) weight
                pl.BlockSpec((C_out, 1), lambda n, t: (0, 0)),          # conv2+BN bias
                pl.BlockSpec((C_out, 9 * C_out), lambda n, t: (0, 0)),  # conv3 weight
                pl.BlockSpec((9, M4), lambda n, t: (0, 0)),             # tap masks
                pl.BlockSpec((M4, tile), lambda n, t: (0, t)),          # resize#2 column tile
            ],
            out_specs=pl.BlockSpec((1, C_out, tile), lambda n, t: (n, 0, t)),
            scratch_shapes=[
                pltpu.VMEM((C_out, M4 + 2 * halo), jnp.float32),        # zero-halo'd image buffer
                pltpu.VMEM((9 * C_out, M4), jnp.float32),               # im2col (K = 9*C) buffer
                pltpu.VMEM((C_out, M4), jnp.float32),                   # cached FTB output
            ],
        ),
        compiler_params=pltpu.CompilerParams(
            dimension_semantics=("parallel", "arbitrary"),   # batch shards across v7x's 2 TCs
            vmem_limit_bytes=vmem_limit,
        ),
    )(x_flat, w1_mat, k1T, w2_stack, b2_eff, w3_stack, masks, k2T)

    return out_flat.reshape(N, C_out, H5, W5)


# ----------------------------------------------------------------------------
# Pure-JAX reference (lax convs + explicit BN + exact bilinear) for correctness checking.
# ----------------------------------------------------------------------------
def _reference_forward(x, backbone_stage_size, params, *, bn_eps=1e-5):
    H4, W4 = backbone_stage_size[4]
    H5, W5 = backbone_stage_size[5]
    dn = ("NCHW", "OIHW", "NCHW")
    hi = lax.Precision.HIGHEST

    x4 = _bilinear_resize(x, H4, W4)
    y1 = lax.conv_general_dilated(x4, params["conv1_w"], window_strides=(1, 1),
                                  padding=((0, 0), (0, 0)), dimension_numbers=dn, precision=hi)
    y2 = lax.conv_general_dilated(y1, params["conv2_w"], window_strides=(1, 1),
                                  padding=((2, 2), (2, 2)), rhs_dilation=(2, 2),
                                  dimension_numbers=dn, precision=hi)
    y2 = y2 + params["conv2_b"].reshape(1, -1, 1, 1)
    inv = 1.0 / jnp.sqrt(params["bn_var"] + bn_eps)
    y2 = ((y2 - params["bn_mean"].reshape(1, -1, 1, 1))
          * (params["bn_gamma"] * inv).reshape(1, -1, 1, 1)
          + params["bn_beta"].reshape(1, -1, 1, 1))
    a2 = jnp.maximum(y2, 0.0)
    y3 = lax.conv_general_dilated(a2, params["conv3_w"], window_strides=(1, 1),
                                  padding=((2, 2), (2, 2)), rhs_dilation=(2, 2),
                                  dimension_numbers=dn, precision=hi)
    out = jnp.maximum(y3 + y1, 0.0)
    return _bilinear_resize(out, H5, W5)


if __name__ == "__main__":
    # fcn_last_block(dim_in=4, dim_out=8); input 16x16, FTB runs at 32x32, final output 64x64.
    N, C_in, C_out = 2, 4, 8
    H0 = W0 = 16
    backbone_stage_size = [(2, 2), (4, 4), (8, 8), (16, 16), (32, 32), (64, 64)]

    key = jax.random.PRNGKey(0)
    ks = jax.random.split(key, 9)

    def _u(k, shape, fan_in):
        b = 1.0 / (fan_in ** 0.5)
        return jax.random.uniform(k, shape, jnp.float32, -b, b)

    x = jax.random.normal(ks[0], (N, C_in, H0, W0), dtype=jnp.float32)
    params = dict(
        conv1_w=_u(ks[1], (C_out, C_in, 1, 1), C_in),
        conv2_w=_u(ks[2], (C_out, C_out, 3, 3), C_out * 9),
        conv2_b=_u(ks[3], (C_out,), C_out * 9),
        conv3_w=_u(ks[4], (C_out, C_out, 3, 3), C_out * 9),
        bn_gamma=jax.random.uniform(ks[5], (C_out,), jnp.float32, 0.5, 1.5),
        bn_beta=0.1 * jax.random.normal(ks[6], (C_out,), jnp.float32),
        bn_mean=0.1 * jax.random.normal(ks[7], (C_out,), jnp.float32),
        bn_var=jax.random.uniform(ks[8], (C_out,), jnp.float32, 0.5, 1.5),
    )

    # jit the whole forward (weight folding + single fused pallas_call) to kill dispatch overhead.
    fwd = jax.jit(lambda xx, pp: fcn_last_block_forward(xx, backbone_stage_size, pp))
    y = fwd(x, params)
    jax.block_until_ready(y)

    y_ref = _reference_forward(x, backbone_stage_size, params)
    assert y.shape == (N, C_out, 64, 64), y.shape
    max_err = float(jnp.max(jnp.abs(y - y_ref)))
    # Tolerance accounts for the bf16 resize-#2 matrix (<= ~0.4% relative, since all interpolation
    # weights and post-ReLU activations are non-negative); the FTB path itself stays f32.
    assert jnp.allclose(y, y_ref, atol=2e-3, rtol=2e-2), f"max abs err = {max_err}"
    print("KERNEL_OK")
</pallas_src>

<mosaic_0001>
module attributes {stable_mosaic.version = 11 : i64} {
  func.func @_fcn_last_block_kernel(%arg0: i32, %arg1: i32, %arg2: memref<1x4x256xf32, #tpu.memory_space<vmem>>, %arg3: memref<8x4xf32, #tpu.memory_space<vmem>>, %arg4: memref<256x1024xf32, #tpu.memory_space<vmem>>, %arg5: memref<8x72xf32, #tpu.memory_space<vmem>>, %arg6: memref<8x1xf32, #tpu.memory_space<vmem>>, %arg7: memref<8x72xf32, #tpu.memory_space<vmem>>, %arg8: memref<9x1024xf32, #tpu.memory_space<vmem>>, %arg9: memref<1024x1024xbf16, #tpu.memory_space<vmem>>, %arg10: memref<1x8x1024xf32, #tpu.memory_space<vmem>>, %arg11: memref<8x1280xf32, #tpu.memory_space<vmem>>, %arg12: memref<72x1024xf32, #tpu.memory_space<vmem>>, %arg13: memref<8x1024xf32, #tpu.memory_space<vmem>>) attributes {dimension_semantics = [#tpu.dimension_semantics<parallel>, #tpu.dimension_semantics<arbitrary>], iteration_bounds = array<i64: 2, 4>, scalar_prefetch = 0 : i64, scratch_operands = 3 : i64, tpu.core_type = #tpu.core_type<tc>, window_params = [{transform_indices = @transform_0, window_bounds = array<i64: 1, 4, 256>}, {pipeline_mode = #tpu.pipeline_mode<synchronous>, transform_indices = @transform_1, window_bounds = array<i64: 8, 4>}, {pipeline_mode = #tpu.pipeline_mode<synchronous>, transform_indices = @transform_2, window_bounds = array<i64: 256, 1024>}, {pipeline_mode = #tpu.pipeline_mode<synchronous>, transform_indices = @transform_3, window_bounds = array<i64: 8, 72>}, {pipeline_mode = #tpu.pipeline_mode<synchronous>, transform_indices = @transform_4, window_bounds = array<i64: 8, 1>}, {pipeline_mode = #tpu.pipeline_mode<synchronous>, transform_indices = @transform_5, window_bounds = array<i64: 8, 72>}, {pipeline_mode = #tpu.pipeline_mode<synchronous>, transform_indices = @transform_6, window_bounds = array<i64: 9, 1024>}, {transform_indices = @transform_7, window_bounds = array<i64: 1024, 1024>}, {transform_indices = @transform_8, window_bounds = array<i64: 1, 8, 1024>}]} {
    %c0_i32 = arith.constant 0 : i32
    %0 = arith.cmpi eq, %arg1, %c0_i32 : i32
    %1 = arith.extui %0 : i1 to i32
    %c0_i32_0 = arith.constant 0 : i32
    %2 = arith.cmpi ne, %1, %c0_i32_0 : i32
    scf.if %2 {
      %cst_7 = arith.constant 0.000000e+00 : f32
      %10 = vector.broadcast %cst_7 : f32 to vector<8x128xf32>
      %c0_8 = arith.constant 0 : index
      %c0_9 = arith.constant 0 : index
      %11 = vector.load %arg11[%c0_8, %c0_9] : memref<8x1280xf32, #tpu.memory_space<vmem>>, vector<8x128xf32>
      tpu.vector_store %arg11[%c0_8, %c0_9], %10 {strides = array<i32>} : memref<8x1280xf32, #tpu.memory_space<vmem>>, vector<8x128xf32>,
      %cst_10 = arith.constant 0.000000e+00 : f32
      %12 = vector.broadcast %cst_10 : f32 to vector<8x128xf32>
      %c0_11 = arith.constant 0 : index
      %c1152 = arith.constant 1152 : index
      %13 = vector.load %arg11[%c0_11, %c1152] : memref<8x1280xf32, #tpu.memory_space<vmem>>, vector<8x128xf32>
      tpu.vector_store %arg11[%c0_11, %c1152], %12 {strides = array<i32>} : memref<8x1280xf32, #tpu.memory_space<vmem>>, vector<8x128xf32>,
      %c0_12 = arith.constant 0 : index
      %c0_13 = arith.constant 0 : index
      %14 = vector.load %arg3[%c0_12, %c0_13] : memref<8x4xf32, #tpu.memory_space<vmem>>, vector<8x4xf32>
      %c0_14 = arith.constant 0 : index
      %c0_15 = arith.constant 0 : index
      %c0_16 = arith.constant 0 : index
      %15 = vector.load %arg2[%c0_14, %c0_15, %c0_16] : memref<1x4x256xf32, #tpu.memory_space<vmem>>, vector<1x4x256xf32>
      %16 = vector.shape_cast %15 : vector<1x4x256xf32> to vector<4x256xf32>
      %cst_17 = arith.constant dense<0.000000e+00> : vector<8x256xf32>
      %17 = tpu.matmul %14, %16, %cst_17 {dimension_numbers = #tpu.dot_dimension_numbers<[1], [0], [0], [1], [0, 0, 1, 1], [], []>} : vector<8x4xf32>, vector<4x256xf32>, vector<8x256xf32> -> vector<8x256xf32>
      %c0_18 = arith.constant 0 : index
      %c0_19 = arith.constant 0 : index
      %18 = vector.load %arg4[%c0_18, %c0_19] : memref<256x1024xf32, #tpu.memory_space<vmem>>, vector<256x1024xf32>
      %cst_20 = arith.constant dense<0.000000e+00> : vector<8x1024xf32>
      %19 = tpu.matmul %17, %18, %cst_20 {dimension_numbers = #tpu.dot_dimension_numbers<[1], [0], [0], [1], [0, 0, 1, 1], [], []>} : vector<8x256xf32>, vector<256x1024xf32>, vector<8x1024xf32> -> vector<8x1024xf32>
      %c0_21 = arith.constant 0 : index
      %c0_22 = arith.constant 0 : index
      %20 = vector.load %arg5[%c0_21, %c0_22] : memref<8x72xf32, #tpu.memory_space<vmem>>, vector<8x72xf32>
      %c0_23 = arith.constant 0 : index
      %c0_24 = arith.constant 0 : index
      %21 = vector.load %arg6[%c0_23, %c0_24] : memref<8x1xf32, #tpu.memory_space<vmem>>, vector<8x1xf32>
      %c0_25 = arith.constant 0 : index
      %c128 = arith.constant 128 : index
      %22 = vector.load %arg11[%c0_25, %c128] : memref<8x1280xf32, #tpu.memory_space<vmem>>, vector<8x1024xf32>
      tpu.vector_store %arg11[%c0_25, %c128], %19 {strides = array<i32>} : memref<8x1280xf32, #tpu.memory_space<vmem>>, vector<8x1024xf32>,
      %c0_26 = arith.constant 0 : index
      %c62 = arith.constant 62 : index
      %23 = vector.load %arg11[%c0_26, %c62] : memref<8x1280xf32, #tpu.memory_space<vmem>>, vector<8x1024xf32>
      %c0_27 = arith.constant 0 : index
      %c0_28 = arith.constant 0 : index
      %24 = vector.load %arg8[%c0_27, %c0_28] : memref<9x1024xf32, #tpu.memory_space<vmem>>, vector<1x1024xf32>
      %25 = vector.broadcast %24 : vector<1x1024xf32> to vector<8x1024xf32>
      %26 = arith.mulf %23, %25 : vector<8x1024xf32>
      %c0_29 = arith.constant 0 : index
      %c0_30 = arith.constant 0 : index
      %27 = vector.load %arg12[%c0_29, %c0_30] : memref<72x1024xf32, #tpu.memory_space<vmem>>, vector<8x1024xf32>
      tpu.vector_store %arg12[%c0_29, %c0_30], %26 {strides = array<i32>} : memref<72x1024xf32, #tpu.memory_space<vmem>>, vector<8x1024xf32>,
      %c0_31 = arith.constant 0 : index
      %c64 = arith.constant 64 : index
      %28 = vector.load %arg11[%c0_31, %c64] : memref<8x1280xf32, #tpu.memory_space<vmem>>, vector<8x1024xf32>
      %c8 = arith.constant 8 : index
      %c0_32 = arith.constant 0 : index
      %29 = vector.load %arg12[%c8, %c0_32] : memref<72x1024xf32, #tpu.memory_space<vmem>>, vector<8x1024xf32>
      tpu.vector_store %arg12[%c8, %c0_32], %28 {strides = array<i32>} : memref<72x1024xf32, #tpu.memory_space<vmem>>, vector<8x1024xf32>,
      %c0_33 = arith.constant 0 : index
      %c66 = arith.constant 66 : index
      %30 = vector.load %arg11[%c0_33, %c66] : memref<8x1280xf32, #tpu.memory_space<vmem>>, vector<8x1024xf32>
      %c2 = arith.constant 2 : index
      %c0_34 = arith.constant 0 : index
      %31 = vector.load %arg8[%c2, %c0_34] : memref<9x1024xf32, #tpu.memory_space<vmem>>, vector<1x1024xf32>
      %32 = vector.broadcast %31 : vector<1x1024xf32> to vector<8x1024xf32>
      %33 = arith.mulf %30, %32 : vector<8x1024xf32>
      %c16 = arith.constant 16 : index
      %c0_35 = arith.constant 0 : index
      %34 = vector.load %arg12[%c16, %c0_35] : memref<72x1024xf32, #tpu.memory_space<vmem>>, vector<8x1024xf32>
      tpu.vector_store %arg12[%c16, %c0_35], %33 {strides = array<i32>} : memref<72x1024xf32, #tpu.memory_space<vmem>>, vector<8x1024xf32>,
      %c0_36 = arith.constant 0 : index
      %c126 = arith.constant 126 : index
      %35 = vector.load %arg11[%c0_36, %c126] : memref<8x1280xf32, #tpu.memory_space<vmem>>, vector<8x1024xf32>
      %c3 = arith.constant 3 : index
      %c0_37 = arith.constant 0 : index
      %36 = vector.load %arg8[%c3, %c0_37] : memref<9x1024xf32, #tpu.memory_space<vmem>>, vector<1x1024xf32>
      %37 = vector.broadcast %36 : vector<1x1024xf32> to vector<8x1024xf32>
      %38 = arith.mulf %35, %37 : vector<8x1024xf32>
      %c24 = arith.constant 24 : index
      %c0_38 = arith.constant 0 : index
      %39 = vector.load %arg12[%c24, %c0_38] : memref<72x1024xf32, #tpu.memory_space<vmem>>, vector<8x1024xf32>
      tpu.vector_store %arg12[%c24, %c0_38], %38 {strides = array<i32>} : memref<72x1024xf32, #tpu.memory_space<vmem>>, vector<8x1024xf32>,
      %c0_39 = arith.constant 0 : index
      %c128_40 = arith.constant 128 : index
      %40 = vector.load %arg11[%c0_39, %c128_40] : memref<8x1280xf32, #tpu.memory_space<vmem>>, vector<8x1024xf32>
      %c32 = arith.constant 32 : index
      %c0_41 = arith.constant 0 : index
      %41 = vector.load %arg12[%c32, %c0_41] : memref<72x1024xf32, #tpu.memory_space<vmem>>, vector<8x1024xf32>
      tpu.vector_store %arg12[%c32, %c0_41], %40 {strides = array<i32>} : memref<72x1024xf32, #tpu.memory_space<vmem>>, vector<8x1024xf32>,
      %c0_42 = arith.constant 0 : index
      %c130 = arith.constant 130 : index
      %42 = vector.load %arg11[%c0_42, %c130] : memref<8x1280xf32, #tpu.memory_space<vmem>>, vector<8x1024xf32>
      %c5 = arith.constant 5 : index
      %c0_43 = arith.constant 0 : index
      %43 = vector.load %arg8[%c5, %c0_43] : memref<9x1024xf32, #tpu.memory_space<vmem>>, vector<1x1024xf32>
      %44 = vector.broadcast %43 : vector<1x1024xf32> to vector<8x1024xf32>
      %45 = arith.mulf %42, %44 : vector<8x1024xf32>
      %c40 = arith.constant 40 : index
      %c0_44 = arith.constant 0 : index
      %46 = vector.load %arg12[%c40, %c0_44] : memref<72x1024xf32, #tpu.memory_space<vmem>>, vector<8x1024xf32>
      tpu.vector_store %arg12[%c40, %c0_44], %45 {strides = array<i32>} : memref<72x1024xf32, #tpu.memory_space<vmem>>, vector<8x1024xf32>,
      %c0_45 = arith.constant 0 : index
      %c190 = arith.constant 190 : index
      %47 = vector.load %arg11[%c0_45, %c190] : memref<8x1280xf32, #tpu.memory_space<vmem>>, vector<8x1024xf32>
      %c6 = arith.constant 6 : index
      %c0_46 = arith.constant 0 : index
      %48 = vector.load %arg8[%c6, %c0_46] : memref<9x1024xf32, #tpu.memory_space<vmem>>, vector<1x1024xf32>
      %49 = vector.broadcast %48 : vector<1x1024xf32> to vector<8x1024xf32>
      %50 = arith.mulf %47, %49 : vector<8x1024xf32>
      %c48 = arith.constant 48 : index
      %c0_47 = arith.constant 0 : index
      %51 = vector.load %arg12[%c48, %c0_47] : memref<72x1024xf32, #tpu.memory_space<vmem>>, vector<8x1024xf32>
      tpu.vector_store %arg12[%c48, %c0_47], %50 {strides = array<i32>} : memref<72x1024xf32, #tpu.memory_space<vmem>>, vector<8x1024xf32>,
      %c0_48 = arith.constant 0 : index
      %c192 = arith.constant 192 : index
      %52 = vector.load %arg11[%c0_48, %c192] : memref<8x1280xf32, #tpu.memory_space<vmem>>, vector<8x1024xf32>
      %c56 = arith.constant 56 : index
      %c0_49 = arith.constant 0 : index
      %53 = vector.load %arg12[%c56, %c0_49] : memref<72x1024xf32, #tpu.memory_space<vmem>>, vector<8x1024xf32>
      tpu.vector_store %arg12[%c56, %c0_49], %52 {strides = array<i32>} : memref<72x1024xf32, #tpu.memory_space<vmem>>, vector<8x1024xf32>,
      %c0_50 = arith.constant 0 : index
      %c194 = arith.constant 194 : index
      %54 = vector.load %arg11[%c0_50, %c194] : memref<8x1280xf32, #tpu.memory_space<vmem>>, vector<8x1024xf32>
      %c8_51 = arith.constant 8 : index
      %c0_52 = arith.constant 0 : index
      %55 = vector.load %arg8[%c8_51, %c0_52] : memref<9x1024xf32, #tpu.memory_space<vmem>>, vector<1x1024xf32>
      %56 = vector.broadcast %55 : vector<1x1024xf32> to vector<8x1024xf32>
      %57 = arith.mulf %54, %56 : vector<8x1024xf32>
      %c64_53 = arith.constant 64 : index
      %c0_54 = arith.constant 0 : index
      %58 = vector.load %arg12[%c64_53, %c0_54] : memref<72x1024xf32, #tpu.memory_space<vmem>>, vector<8x1024xf32>
      tpu.vector_store %arg12[%c64_53, %c0_54], %57 {strides = array<i32>} : memref<72x1024xf32, #tpu.memory_space<vmem>>, vector<8x1024xf32>,
      %c0_55 = arith.constant 0 : index
      %c0_56 = arith.constant 0 : index
      %59 = vector.load %arg12[%c0_55, %c0_56] : memref<72x1024xf32, #tpu.memory_space<vmem>>, vector<72x1024xf32>
      %cst_57 = arith.constant dense<0.000000e+00> : vector<8x1024xf32>
      %60 = tpu.matmul %20, %59, %cst_57 {dimension_numbers = #tpu.dot_dimension_numbers<[1], [0], [0], [1], [0, 0, 1, 1], [], []>} : vector<8x72xf32>, vector<72x1024xf32>, vector<8x1024xf32> -> vector<8x1024xf32>
      %61 = vector.broadcast %21 : vector<8x1xf32> to vector<8x1024xf32>
      %62 = arith.addf %60, %61 : vector<8x1024xf32>
      %cst_58 = arith.constant 0.000000e+00 : f32
      %63 = vector.broadcast %cst_58 : f32 to vector<8x1024xf32>
      %64 = arith.maximumf %62, %63 : vector<8x1024xf32>
      %c0_59 = arith.constant 0 : index
      %c0_60 = arith.constant 0 : index
      %65 = vector.load %arg7[%c0_59, %c0_60] : memref<8x72xf32, #tpu.memory_space<vmem>>, vector<8x72xf32>
      %c0_61 = arith.constant 0 : index
      %c128_62 = arith.constant 128 : index
      %66 = vector.load %arg11[%c0_61, %c128_62] : memref<8x1280xf32, #tpu.memory_space<vmem>>, vector<8x1024xf32>
      tpu.vector_store %arg11[%c0_61, %c128_62], %64 {strides = array<i32>} : memref<8x1280xf32, #tpu.memory_space<vmem>>, vector<8x1024xf32>,
      %c0_63 = arith.constant 0 : index
      %c62_64 = arith.constant 62 : index
      %67 = vector.load %arg11[%c0_63, %c62_64] : memref<8x1280xf32, #tpu.memory_space<vmem>>, vector<8x1024xf32>
      %c0_65 = arith.constant 0 : index
      %c0_66 = arith.constant 0 : index
      %68 = vector.load %arg8[%c0_65, %c0_66] : memref<9x1024xf32, #tpu.memory_space<vmem>>, vector<1x1024xf32>
      %69 = vector.broadcast %68 : vector<1x1024xf32> to vector<8x1024xf32>
      %70 = arith.mulf %67, %69 : vector<8x1024xf32>
      %c0_67 = arith.constant 0 : index
      %c0_68 = arith.constant 0 : index
      %71 = vector.load %arg12[%c0_67, %c0_68] : memref<72x1024xf32, #tpu.memory_space<vmem>>, vector<8x1024xf32>
      tpu.vector_store %arg12[%c0_67, %c0_68], %70 {strides = array<i32>} : memref<72x1024xf32, #tpu.memory_space<vmem>>, vector<8x1024xf32>,
      %c0_69 = arith.constant 0 : index
      %c64_70 = arith.constant 64 : index
      %72 = vector.load %arg11[%c0_69, %c64_70] : memref<8x1280xf32, #tpu.memory_space<vmem>>, vector<8x1024xf32>
      %c8_71 = arith.constant 8 : index
      %c0_72 = arith.constant 0 : index
      %73 = vector.load %arg12[%c8_71, %c0_72] : memref<72x1024xf32, #tpu.memory_space<vmem>>, vector<8x1024xf32>
      tpu.vector_store %arg12[%c8_71, %c0_72], %72 {strides = array<i32>} : memref<72x1024xf32, #tpu.memory_space<vmem>>, vector<8x1024xf32>,
      %c0_73 = arith.constant 0 : index
      %c66_74 = arith.constant 66 : index
      %74 = vector.load %arg11[%c0_73, %c66_74] : memref<8x1280xf32, #tpu.memory_space<vmem>>, vector<8x1024xf32>
      %c2_75 = arith.constant 2 : index
      %c0_76 = arith.constant 0 : index
      %75 = vector.load %arg8[%c2_75, %c0_76] : memref<9x1024xf32, #tpu.memory_space<vmem>>, vector<1x1024xf32>
      %76 = vector.broadcast %75 : vector<1x1024xf32> to vector<8x1024xf32>
      %77 = arith.mulf %74, %76 : vector<8x1024xf32>
      %c16_77 = arith.constant 16 : index
      %c0_78 = arith.constant 0 : index
      %78 = vector.load %arg12[%c16_77, %c0_78] : memref<72x1024xf32, #tpu.memory_space<vmem>>, vector<8x1024xf32>
      tpu.vector_store %arg12[%c16_77, %c0_78], %77 {strides = array<i32>} : memref<72x1024xf32, #tpu.memory_space<vmem>>, vector<8x1024xf32>,
      %c0_79 = arith.constant 0 : index
      %c126_80 = arith.constant 126 : index
      %79 = vector.load %arg11[%c0_79, %c126_80] : memref<8x1280xf32, #tpu.memory_space<vmem>>, vector<8x1024xf32>
      %c3_81 = arith.constant 3 : index
      %c0_82 = arith.constant 0 : index
      %80 = vector.load %arg8[%c3_81, %c0_82] : memref<9x1024xf32, #tpu.memory_space<vmem>>, vector<1x1024xf32>
      %81 = vector.broadcast %80 : vector<1x1024xf32> to vector<8x1024xf32>
      %82 = arith.mulf %79, %81 : vector<8x1024xf32>
      %c24_83 = arith.constant 24 : index
      %c0_84 = arith.constant 0 : index
      %83 = vector.load %arg12[%c24_83, %c0_84] : memref<72x1024xf32, #tpu.memory_space<vmem>>, vector<8x1024xf32>
      tpu.vector_store %arg12[%c24_83, %c0_84], %82 {strides = array<i32>} : memref<72x1024xf32, #tpu.memory_space<vmem>>, vector<8x1024xf32>,
      %c0_85 = arith.constant 0 : index
      %c128_86 = arith.constant 128 : index
      %84 = vector.load %arg11[%c0_85, %c128_86] : memref<8x1280xf32, #tpu.memory_space<vmem>>, vector<8x1024xf32>
      %c32_87 = arith.constant 32 : index
      %c0_88 = arith.constant 0 : index
      %85 = vector.load %arg12[%c32_87, %c0_88] : memref<72x1024xf32, #tpu.memory_space<vmem>>, vector<8x1024xf32>
      tpu.vector_store %arg12[%c32_87, %c0_88], %84 {strides = array<i32>} : memref<72x1024xf32, #tpu.memory_space<vmem>>, vector<8x1024xf32>,
      %c0_89 = arith.constant 0 : index
      %c130_90 = arith.constant 130 : index
      %86 = vector.load %arg11[%c0_89, %c130_90] : memref<8x1280xf32, #tpu.memory_space<vmem>>, vector<8x1024xf32>
      %c5_91 = arith.constant 5 : index
      %c0_92 = arith.constant 0 : index
      %87 = vector.load %arg8[%c5_91, %c0_92] : memref<9x1024xf32, #tpu.memory_space<vmem>>, vector<1x1024xf32>
      %88 = vector.broadcast %87 : vector<1x1024xf32> to vector<8x1024xf32>
      %89 = arith.mulf %86, %88 : vector<8x1024xf32>
      %c40_93 = arith.constant 40 : index
      %c0_94 = arith.constant 0 : index
      %90 = vector.load %arg12[%c40_93, %c0_94] : memref<72x1024xf32, #tpu.memory_space<vmem>>, vector<8x1024xf32>
      tpu.vector_store %arg12[%c40_93, %c0_94], %89 {strides = array<i32>} : memref<72x1024xf32, #tpu.memory_space<vmem>>, vector<8x1024xf32>,
      %c0_95 = arith.constant 0 : index
      %c190_96 = arith.constant 190 : index
      %91 = vector.load %arg11[%c0_95, %c190_96] : memref<8x1280xf32, #tpu.memory_space<vmem>>, vector<8x1024xf32>
      %c6_97 = arith.constant 6 : index
      %c0_98 = arith.constant 0 : index
      %92 = vector.load %arg8[%c6_97, %c0_98] : memref<9x1024xf32, #tpu.memory_space<vmem>>, vector<1x1024xf32>
      %93 = vector.broadcast %92 : vector<1x1024xf32> to vector<8x1024xf32>
      %94 = arith.mulf %91, %93 : vector<8x1024xf32>
      %c48_99 = arith.constant 48 : index
      %c0_100 = arith.constant 0 : index
      %95 = vector.load %arg12[%c48_99, %c0_100] : memref<72x1024xf32, #tpu.memory_space<vmem>>, vector<8x1024xf32>
      tpu.vector_store %arg12[%c48_99, %c0_100], %94 {strides = array<i32>} : memref<72x1024xf32, #tpu.memory_space<vmem>>, vector<8x1024xf32>,
      %c0_101 = arith.constant 0 : index
      %c192_102 = arith.constant 192 : index
      %96 = vector.load %arg11[%c0_101, %c192_102] : memref<8x1280xf32, #tpu.memory_space<vmem>>, vector<8x1024xf32>
      %c56_103 = arith.constant 56 : index
      %c0_104 = arith.constant 0 : index
      %97 = vector.load %arg12[%c56_103, %c0_104] : memref<72x1024xf32, #tpu.memory_space<vmem>>, vector<8x1024xf32>
      tpu.vector_store %arg12[%c56_103, %c0_104], %96 {strides = array<i32>} : memref<72x1024xf32, #tpu.memory_space<vmem>>, vector<8x1024xf32>,
      %c0_105 = arith.constant 0 : index
      %c194_106 = arith.constant 194 : index
      %98 = vector.load %arg11[%c0_105, %c194_106] : memref<8x1280xf32, #tpu.memory_space<vmem>>, vector<8x1024xf32>
      %c8_107 = arith.constant 8 : index
      %c0_108 = arith.constant 0 : index
      %99 = vector.load %arg8[%c8_107, %c0_108] : memref<9x1024xf32, #tpu.memory_space<vmem>>, vector<1x1024xf32>
      %100 = vector.broadcast %99 : vector<1x1024xf32> to vector<8x1024xf32>
      %101 = arith.mulf %98, %100 : vector<8x1024xf32>
      %c64_109 = arith.constant 64 : index
      %c0_110 = arith.constant 0 : index
      %102 = vector.load %arg12[%c64_109, %c0_110] : memref<72x1024xf32, #tpu.memory_space<vmem>>, vector<8x1024xf32>
      tpu.vector_store %arg12[%c64_109, %c0_110], %101 {strides = array<i32>} : memref<72x1024xf32, #tpu.memory_space<vmem>>, vector<8x1024xf32>,
      %c0_111 = arith.constant 0 : index
      %c0_112 = arith.constant 0 : index
      %103 = vector.load %arg12[%c0_111, %c0_112] : memref<72x1024xf32, #tpu.memory_space<vmem>>, vector<72x1024xf32>
      %cst_113 = arith.constant dense<0.000000e+00> : vector<8x1024xf32>
      %104 = tpu.matmul %65, %103, %cst_113 {dimension_numbers = #tpu.dot_dimension_numbers<[1], [0], [0], [1], [0, 0, 1, 1], [], []>} : vector<8x72xf32>, vector<72x1024xf32>, vector<8x1024xf32> -> vector<8x1024xf32>
      %105 = arith.addf %104, %19 : vector<8x1024xf32>
      %cst_114 = arith.constant 0.000000e+00 : f32
      %106 = vector.broadcast %cst_114 : f32 to vector<8x1024xf32>
      %107 = arith.maximumf %105, %106 : vector<8x1024xf32>
      %c0_115 = arith.constant 0 : index
      %c0_116 = arith.constant 0 : index
      %108 = vector.load %arg13[%c0_115, %c0_116] : memref<8x1024xf32, #tpu.memory_space<vmem>>, vector<8x1024xf32>
      tpu.vector_store %arg13[%c0_115, %c0_116], %107 {strides = array<i32>} : memref<8x1024xf32, #tpu.memory_space<vmem>>, vector<8x1024xf32>,
    } else {
    }
    %c0 = arith.constant 0 : index
    %c0_1 = arith.constant 0 : index
    %3 = vector.load %arg13[%c0, %c0_1] : memref<8x1024xf32, #tpu.memory_space<vmem>>, vector<8x1024xf32>
    %4 = arith.truncf %3 : vector<8x1024xf32> to vector<8x1024xbf16>
    %c0_2 = arith.constant 0 : index
    %c0_3 = arith.constant 0 : index
    %5 = vector.load %arg9[%c0_2, %c0_3] : memref<1024x1024xbf16, #tpu.memory_space<vmem>>, vector<1024x1024xbf16>
    %cst = arith.constant dense<0.000000e+00> : vector<8x1024xf32>
    %6 = tpu.matmul %4, %5, %cst {dimension_numbers = #tpu.dot_dimension_numbers<[1], [0], [0], [1], [0, 0, 1, 1], [], []>} : vector<8x1024xbf16>, vector<1024x1024xbf16>, vector<8x1024xf32> -> vector<8x1024xf32>
    %c0_4 = arith.constant 0 : index
    %c0_5 = arith.constant 0 : index
    %c0_6 = arith.constant 0 : index
    %7 = vector.load %arg10[%c0_4, %c0_5, %c0_6] : memref<1x8x1024xf32, #tpu.memory_space<vmem>>, vector<1x8x1024xf32>
    %8 = vector.shape_cast %7 : vector<1x8x1024xf32> to vector<8x1024xf32>
    %9 = vector.shape_cast %6 : vector<8x1024xf32> to vector<1x8x1024xf32>
    tpu.vector_store %arg10[%c0_4, %c0_5, %c0_6], %9 {strides = array<i32>} : memref<1x8x1024xf32, #tpu.memory_space<vmem>>, vector<1x8x1024xf32>,
    return
  }
  func.func @transform_0(%arg0: i32, %arg1: i32) -> (i32, i32, i32) {
    %c0_i32 = arith.constant 0 : i32
    %c0_i32_0 = arith.constant 0 : i32
    %c0_i32_1 = arith.constant 0 : i32
    return %arg0, %c0_i32, %c0_i32_0 : i32, i32, i32
  }
  func.func @transform_1(%arg0: i32, %arg1: i32) -> (i32, i32) {
    %c0_i32 = arith.constant 0 : i32
    %c0_i32_0 = arith.constant 0 : i32
    %c0_i32_1 = arith.constant 0 : i32
    return %c0_i32, %c0_i32_0 : i32, i32
  }
  func.func @transform_2(%arg0: i32, %arg1: i32) -> (i32, i32) {
    %c0_i32 = arith.constant 0 : i32
    %c0_i32_0 = arith.constant 0 : i32
    %c0_i32_1 = arith.constant 0 : i32
    return %c0_i32, %c0_i32_0 : i32, i32
  }
  func.func @transform_3(%arg0: i32, %arg1: i32) -> (i32, i32) {
    %c0_i32 = arith.constant 0 : i32
    %c0_i32_0 = arith.constant 0 : i32
    %c0_i32_1 = arith.constant 0 : i32
    return %c0_i32, %c0_i32_0 : i32, i32
  }
  func.func @transform_4(%arg0: i32, %arg1: i32) -> (i32, i32) {
    %c0_i32 = arith.constant 0 : i32
    %c0_i32_0 = arith.constant 0 : i32
    %c0_i32_1 = arith.constant 0 : i32
    return %c0_i32, %c0_i32_0 : i32, i32
  }
  func.func @transform_5(%arg0: i32, %arg1: i32) -> (i32, i32) {
    %c0_i32 = arith.constant 0 : i32
    %c0_i32_0 = arith.constant 0 : i32
    %c0_i32_1 = arith.constant 0 : i32
    return %c0_i32, %c0_i32_0 : i32, i32
  }
  func.func @transform_6(%arg0: i32, %arg1: i32) -> (i32, i32) {
    %c0_i32 = arith.constant 0 : i32
    %c0_i32_0 = arith.constant 0 : i32
    %c0_i32_1 = arith.constant 0 : i32
    return %c0_i32, %c0_i32_0 : i32, i32
  }
  func.func @transform_7(%arg0: i32, %arg1: i32) -> (i32, i32) {
    %c0_i32 = arith.constant 0 : i32
    %c0_i32_0 = arith.constant 0 : i32
    return %c0_i32, %arg1 : i32, i32
  }
  func.func @transform_8(%arg0: i32, %arg1: i32) -> (i32, i32, i32) {
    %c0_i32 = arith.constant 0 : i32
    %c0_i32_0 = arith.constant 0 : i32
    return %arg0, %c0_i32, %arg1 : i32, i32, i32
  }
}

</mosaic_0001>

<bundles_post_ra>
// kernel: _lambda_.1
= control target key start
LH: loop header
LB: loop body
LE: loop exit
PB: predicated region body
PF: predicated region fallthrough
CT: control target
= control target key end

     0   :  { %s10815_s0 = inlined_call_operand.vmem [shape: f32[2,4,256], index: 0, kind: input, shape index: {}]   ;;  %s10816_s1 = inlined_call_operand.vmem [shape: f32[8,4], index: 1, kind: input, shape index: {}]   ;;  %s10817_s2 = inlined_call_operand.hbm [shape: f32[256,1024], index: 2, kind: input, shape index: {}]   ;;  %s10818_s3 = inlined_call_operand.vmem [shape: f32[8,72], index: 3, kind: input, shape index: {}]   ;;  %s10819_s4 = inlined_call_operand.vmem [shape: f32[8,1], index: 4, kind: input, shape index: {}]   ;;  %s10820_s5 = inlined_call_operand.vmem [shape: f32[8,72], index: 5, kind: input, shape index: {}]   ;;  %s10821_s6 = inlined_call_operand.hbm [shape: f32[9,1024], index: 6, kind: input, shape index: {}]   ;;  %s10822_s7 = inlined_call_operand.hbm [shape: bf16[1024,4096], index: 7, kind: input, shape index: {}]   ;;  %s10823_s8 = inlined_call_operand.vmem [shape: f32[2,8,4096], index: 8, kind: output, shape index: {}]  }
   0x1   :  { %10835 = sst [smem:[#allocation17_spill]] %s10817_s2 }
   0x2   :  { %10836 = sst [smem:[#allocation18_spill]] %s10818_s3 }
   0x3   :  { %10837 = sst [smem:[#allocation19_spill]] %s10820_s5 }
   0x4   :  { %10838 = sst [smem:[#allocation20_spill]] %s10821_s6 }
   0x5   :  { %13 = vsyncpa [#allocation6], 0 }
   0x6   :  { %14 = vsyncpa [#allocation8], 0  ;;  %s8471_s27 = smov 0   ;;  %s8473_s28 = smov 0  }
   0x7   :  { %s8475_s29 = smov 0   ;;  %s8477_s30 = smov 0  }
   0x8   :  { %s8479_s9 = smov 0   ;;  %s8481_s10 = smov 0  }
   0x9   :  { %s8483_s11 = smov 0   ;;  %s8485_s12 = smov 0  }
   0xa LB: > { %s10827_s13 = sadd.s32 4294967295, %s8409_s12   ;;  %s191_s14 = sadd.s32 1, %s8389_s29  ;;  %s8409_s12 = sphi %s8485_s12, %s20_s12   ;;  %s8405_s11 = sphi %s8483_s11, %s10866_s11   ;;  %s8401_s10 = sphi %s8481_s10, %s10865_s10   ;;  %s8397_s9 = sphi %s8479_s9, %s10864_s9   ;;  %s8393_s30 = sphi %s8477_s30, %s10863_s30   ;;  %s8389_s29 = sphi %s8475_s29, %s10862_s29   ;;  %s8385_s28 = sphi %s8473_s28, %s10861_s28   ;;  %s8381_s27 = sphi %s8471_s27, %s10860_s27  }
   0xb   : > { %p198_p0 = scmp.ne.s32.totalorder %s8389_s29, %s8385_s28  ;;  %p199_p1 = scmp.eq.s32.totalorder %s8409_s12, 0 }
   0xc   : > { %p204_p2 = scmp.ne.s32.totalorder %s8385_s28, %s8381_s27  ;;  %p8517_p3 = scmp.eq.s32.totalorder %s10827_s13, 0 }
   0xd   : > { %p200_p4 = por %p199_p1, %p198_p0  ;;  %p7600_p5 = scmp.ge.s32.totalorder %s8409_s12, 1 }
   0xe   : > { %s10839_s15 = scalar_select %p8517_p3, 1, 0 }
   0xf   : > { %p8524_p6 = por %p8517_p3, %p204_p2  ;;  %p243_p7 = scmp.lt.s32.totalorder %s8409_s12, 9 }
  0x10   : > { %s8411_s18 = smov [#allocation5]   ;;  %p8167_p10 = scmp.lt.s32.totalorder %s8409_s12, 8 }
  0x11   : > { %s10840_s16 = scalar_select %p8524_p6, 1, 0 }
  0x12   : > { %p8529_p8 = pnand %p7600_p5, %p243_p7  ;;  %s258_s19 = sshll.u32 %s8411_s18, 4  ;;  %s259_s19 = int_to_ptr.vmem [resolvable:$true] %s258_s19 }
  0x13   : > { %p8542_p12 = pnand %p8167_p10, %p200_p4  ;;  %s8412_s22 = smov [#allocation7]  }
  0x14   : > { %p8154_p9 = pneg %p8529_p8  ;;  %s280_s23 = sshll.u32 %s8412_s22, 4  ;;  %s281_s23 = int_to_ptr.vmem [resolvable:$true] %s280_s23 }
  0x15   : > { %s8266_s24 = scalar_lea.vmem %s259_s19, 32768  ;;  %p8274_p5 = scmp.lt.s32.totalorder %s259_s19, %s259_s19 }
  0x16   : > { %p8538_p11 = pnand %p8154_p9, %p8517_p3  ;;  %p8267_p0 = scmp.ne.s32.totalorder %s259_s19, %s8266_s24 }
  0x17   : > { %p8275_p7 = scmp.lt.s32.totalorder %s8266_s24, %s8266_s24 }
  0x18   : > { %p8257_p13 = pneg %p8538_p11 }
  0x19   : > { %p8276_p9 = por %p8275_p7, %p8274_p5 }
  0x1a   : > { %p8269_p1 = pnand %p8267_p0, %p8257_p13 }
  0x1c   : > { %p8270_p2 = pneg %p8269_p1 }
  0x1e   : > { %p8277_p6 = pnand %p8276_p9, %p8270_p2 }
  0x20   : > { %8280 = shalt.err (!%p8277_p6)
}
  0x21   : > { %s8413_s25 = smov 1024   ;;  %s8414_s26 = smov 64  }
  0x22   : > { %s10844_s2 = sld [smem:[#allocation17_spill]]  ;;  %s8292_s22 = scalar_lea.vmem %s281_s23, 2048 }
  0x23   : > { %p8293_p4 = scmp.ne.s32.totalorder %s281_s23, %s8292_s22  ;;  %p8300_p1 = scmp.lt.s32.totalorder %s281_s23, %s281_s23 }
  0x24   : > { %p8301_p3 = scmp.lt.s32.totalorder %s8292_s22, %s8292_s22 }
  0x25   : > { %p8295_p10 = pnand %p8293_p4, %p8257_p13 }
  0x26   : > { %p8302_p5 = por %p8301_p3, %p8300_p1 }
  0x27   : > { %p8296_p0 = pneg %p8295_p10 }
  0x28   : > { %8157 = dma.hbm_to_vmem [thread:$0]  (!%p8538_p11), %s10844_s2, 32768, %s259_s19, [#allocation6], %s8413_s25, %s8413_s25, %s8414_s26  }
  0x29   : > { %p8303_p2 = pnand %p8302_p5, %p8296_p0 }
  0x2b   : > { %8306 = shalt.err (!%p8303_p2)
}
  0x2c   : > { %s10845_s6 = sld [smem:[#allocation20_spill]]  ;;  %s29_s19 = sadd.s32 1, %s8401_s10 }
  0x2d   : > { %p30_p6 = scmp.ge.s32.totalorder %s29_s19, 4  ;;  %s32_s27 = sadd.s32 1, %s8405_s11 }
  0x2e   : > { %s302_s18 = sand.u32 1, %s8409_s12   ;;  %s304_s22 = sand.u32 1, %s8389_s29  }
  0x2f   : > { %s10868_s19 = smov (%p30_p6, %s29_s19), 0  ;;  %s10870_s27 = smov (!%p30_p6, %s32_s27), %s8405_s11 }
  0x30   : > { %10846 = sst [smem:[#allocation13_spill]] %s10868_s19  ;;  %s188_s13 = ssub.s32 %s8401_s10, %s10868_s19 }
  0x31   : > { %p34_p3 = scmp.ge.s32.totalorder %s10870_s27, 2  ;;  %p189_p13 = scmp.eq.s32.totalorder %s188_s13, 0 }
  0x32   : > { %8160 = dma.hbm_to_vmem [thread:$0]  (!%p8538_p11), %s10845_s6, 2048, %s281_s23, [#allocation8], %s8413_s25, %s8413_s25, %s8414_s26  }
  0x33   : > { %s7604_s20 = sshll.u32 %s304_s22, 12  ;;  %s8142_s24 = sshll.u32 %s8401_s10, 9 }
  0x34   : > { %s10872_s27 = smov (%p34_p3, %s10870_s27), 0  ;;  %s312_s26 = scalar_lea.hbm %s10822_s7, %s8142_s24 }
  0x35   : > { %10847 = sst [smem:[#allocation14_spill]] %s10872_s27  ;;  %s306_s6 = scalar_lea.vmem [#allocation9], %s7604_s20 }
  0x36   : > { %s8579_s2 = scalar_select %p189_p13, %s8389_s29, %s191_s14  }
  0x37   : > { %s313_s5 = sshll.u32 %s306_s6, 4  ;;  %s303_s3 = scalar_lea.sflag [#allocation6], %s302_s18  ;;  %s314_s5 = int_to_ptr.vmem [resolvable:$true] %s313_s5 }
  0x38   : > { %p8309_p11 = pneg %p8542_p12  ;;  %s8320_s19 = scalar_lea.vmem %s314_s5, 65536 }
  0x39   : > { %p8321_p7 = scmp.ne.s32.totalorder %s314_s5, %s8320_s19  ;;  %s8415_s22 = smov [#allocation9]  }
  0x3a   : > { %s8325_s13 = sshll.u32 %s8415_s22, 4  ;;  %s8326_s13 = int_to_ptr.vmem [resolvable:$false] %s8325_s13 }
  0x3b   : > { %p8323_p9 = pnand %p8321_p7, %p8309_p11  ;;  %s8327_s27 = scalar_lea.vmem %s8326_s13, 131072 }
  0x3c   : > { %p8328_p10 = scmp.lt.s32.totalorder %s314_s5, %s8326_s13  ;;  %p8329_p0 = scmp.lt.s32.totalorder %s8327_s27, %s8320_s19 }
  0x3d   : > { %p8324_p4 = pneg %p8323_p9 }
  0x3e   : > { %p8330_p1 = por %p8329_p0, %p8328_p10 }
  0x40   : > { %p8331_p5 = pnand %p8330_p1, %p8324_p4 }
  0x42   : > { %8334 = shalt.err (!%p8331_p5)
}
  0x43   : > { %s8416_s14 = smov 2048   ;;  %s8417_s6 = smov 512  }
  0x44   : > { %s8418_s20 = smov 32   ;;  %325 = sbr.rel (%p8529_p8) target bundleno = 2036 (0x7f4), region = 52 }
  0x45   : > { %8164 = dma.hbm_to_vmem [thread:$0]  (!%p8542_p12), %s312_s26, 65536, %s314_s5, %s303_s3, %s8416_s14, %s8417_s6, %s8418_s20  }
  0x46   : > { %p10848_p2 = scmp.ne.s32.totalorder (!%p8529_p8), %s10839_s15, 0 }
  0x49   : > { %8368 = dma.done.wait (%p10848_p2), [#allocation6], 32768  }
  0x4a   : > { %8370 = vsyncadd (%p10848_p2), [#allocation6], 4294934528 }
  0x4b   : > { %8372 = dma.done.wait (%p10848_p2), [#allocation8], 2048  }
  0x4c   : > { %8374 = vsyncadd (%p10848_p2), [#allocation8], 4294965248  ;;  %s10849_s19 = sadd.s32 4294967295, %s8409_s12   ;;  %s337_s5 = sand.u32 1, %s8385_s28  }
  0x4d   : > { %s335_s3 = sand.u32 1, %s10849_s19   ;;  %s7610_s17 = sshll.u32 %s337_s5, 12 }
  0x4e   : > { %s336_s21 = scalar_lea.sflag [#allocation6], %s335_s3  ;;  %s8601_s27 = scalar_lea.vmem [#allocation9], %s7610_s17 }
  0x4f   : > { %p10850_p8 = scmp.ne.s32.totalorder %s10840_s16, 0 }
  0x51   : > { %8376 = dma.done.wait (%p10850_p8), %s336_s21, 65536  }
  0x52   : > { %8378 = vsyncadd (%p10850_p8), %s336_s21, 4294901760  ;;  %p381_p12 = scmp.lt.s32.totalorder %s8397_s9, 1  ;;  %s7613_s15 = sshll.u32 %s8393_s30, 3 }
  0x53   : > { %p390_p6 = scmp.lt.s32.totalorder %s7613_s15, 31  ;;  %p7616_p3 = scmp.ne.s32.totalorder %s8393_s30, 0 }
  0x54   : > { %s10874_s9 = smov (!%p381_p12, %s8397_s9), 1 }
  0x55   : > { %s10876_s15 = smov (!%p390_p6, %s7613_s15), 31  ;;  %s8143_s18 = sshll.u32 %s10874_s9, 3 }
  0x56   : > { %s7614_s24 = sshll.u32 %s10874_s9, 5  ;;  %s385_s26 = scalar_lea.vmem %s10815_s0, %s8143_s18 }
  0x57   : > { %s393_s22 = sadd.s32 %s7614_s24, %s10876_s15  ;;  %400 = sbr.rel (%p7616_p3) target bundleno = 1317 (0x525), region = 68 }
  0x58   : > { %s7615_s13 = sshll.u32 %s393_s22, 3 }
  0x59   : > { %s8616_s16 = scalar_lea.vmem %s10823_s8, %s7615_s13 }
  0x5c   : > { %v404_v0 = vld [vmem:[%s385_s26] sm:$0xff]  ;;  %vm411_vm0 = vcmask 1043456   ;;  %v608_v1 = vld [vmem:[#allocation5 + $0x3c8] sm:$0xff]  ;;  %v10829_v3 = vmov 0.0   ;;  %vm407_vm1 = vcmask 31744   ;;  %v610_v6 = vld [vmem:[#allocation5 + $0x3d8] sm:$0xff]  ;;  %v1050_v15 = vlaneseq }
  0x5d   : > { %v406_v2 = vcombine.high %v404_v0, %v404_v0  ;;  %480 = vmatprep.mubr.f32.mxu0 %v10829_v3  ;;  %v403_v4 = vld [vmem:[%s10816_s1] sm:$0xff]  ;;  %743 = vmatprep.subr.mxu1 %v608_v1  ;;  %v600_v7 = vld [vmem:[#allocation5 + $0x388] sm:$0xff]  ;;  %v609_v9 = vld [vmem:[#allocation5 + $0x3d0] sm:$0xff]  ;;  %s8420_s30 = smov 66   ;;  %s8421_s19 = smov 62   ;;  %vm1151_vm2 = vcmask 539648  }
  0x5e   : > { %v607_v5 = vld [vmem:[#allocation5 + $0x3c0] sm:$0xff]  ;;  %v592_v10 = vld [vmem:[#allocation5 + $0x348] sm:$0xff]  ;;  %v602_v11 = vld [vmem:[#allocation5 + $0x398] sm:$0xff]  ;;  %v8625_v24 = vshrl.u32 %v1050_v15, 7  ;;  %s8422_s3 = smov 2   ;;  %s8423_s5 = smov 126  }
  0x5f   : > { %744 = vmatpush1.msra.mxu1 %v607_v5  ;;  %v599_v8 = vld [vmem:[#allocation5 + $0x380] sm:$0xff]  ;;  %7617 = vmatprep.subr.msk.mxu0 %vm411_vm0, %v406_v2  ;;  %v601_v13 = vld [vmem:[#allocation5 + $0x390] sm:$0xff]  ;;  %v584_v14 = vld [vmem:[#allocation5 + $0x308] sm:$0xff]  ;;  %s8424_s17 = smov 64   ;;  %vm1098_vm3 = vcmask 506880   ;;  %vm1490_vm4 = vcmask 15360  }
  0x60   : > { %745 = vmatprep.subr.mxu1 %v600_v7  ;;  %7618 = vmatpush1.msk.msra.mxu0 %vm411_vm0, %v404_v0  ;;  %v591_v12 = vld [vmem:[#allocation5 + $0x340] sm:$0xff]  ;;  %v594_v16 = vld [vmem:[#allocation5 + $0x358] sm:$0xff]  ;;  %v593_v18 = vld [vmem:[#allocation5 + $0x350] sm:$0xff]  ;;  %v8628_v33 = vsub.s32 0, %v8625_v24  ;;  %v8635_v48 = vsub.s32 1, %v8625_v24  ;;  %vm1437_vm5 = vcmask 1031168  }
  0x61   : > { %746 = vmatpush1.msra.mxu1 %v599_v8  ;;  %7619 = vmatmul.mubr.msk.f32.vlgmr.msra.gmra.mxu0 %vm407_vm1, %v403_v4  ;;  %v583_v17 = vld [vmem:[#allocation5 + $0x300] sm:$0xff]  ;;  %v576_v19 = vld [vmem:[#allocation5 + $0x2c8] sm:$0xff]  ;;  %v586_v20 = vld [vmem:[#allocation5 + $0x318] sm:$0xff]  ;;  %vm1212_vm6 = vcmask 523264   ;;  %s10854_s23 = sld [smem:[#allocation18_spill]]  ;;  %vm2082_vm7 = vcmask 588800  }
  0x62   : > { %814 = vmatprep.subr.mxu0 %v610_v6  ;;  %747 = vmatprep.subr.mxu1 %v592_v10  ;;  %v575_v21 = vld [vmem:[#allocation5 + $0x2c0] sm:$0xff]  ;;  %v585_v22 = vld [vmem:[#allocation5 + $0x310] sm:$0xff]  ;;  %v568_v23 = vld [vmem:[#allocation5 + $0x288] sm:$0xff]  ;;  %v8646_v10 = vsub.s32 2, %v8625_v24  ;;  %s10857_s22 = sld [smem:[#allocation19_spill]] }
  0x63   : > { %815 = vmatpush1.msra.mxu0 %v609_v9  ;;  %748 = vmatpush1.msra.mxu1 %v591_v12  ;;  %v578_v25 = vld [vmem:[#allocation5 + $0x2d8] sm:$0xff]  ;;  %v567_v26 = vld [vmem:[#allocation5 + $0x280] sm:$0xff]  ;;  %v577_v27 = vld [vmem:[#allocation5 + $0x2d0] sm:$0xff] }
  0x64   : > { %816 = vmatprep.subr.mxu0 %v602_v11  ;;  %749 = vmatprep.subr.mxu1 %v584_v14  ;;  %v560_v28 = vld [vmem:[#allocation5 + $0x248] sm:$0xff]  ;;  %v570_v29 = vld [vmem:[#allocation5 + $0x298] sm:$0xff]  ;;  %v559_v30 = vld [vmem:[#allocation5 + $0x240] sm:$0xff] }
  0x65   : > { %817 = vmatpush1.msra.mxu0 %v601_v13  ;;  %750 = vmatpush1.msra.mxu1 %v583_v17  ;;  %v569_v31 = vld [vmem:[#allocation5 + $0x290] sm:$0xff]  ;;  %v552_v32 = vld [vmem:[#allocation5 + $0x208] sm:$0xff]  ;;  %v562_v35 = vld [vmem:[#allocation5 + $0x258] sm:$0xff] }
  0x66   : > { %818 = vmatprep.subr.mxu0 %v594_v16  ;;  %751 = vmatprep.subr.mxu1 %v576_v19  ;;  %v1877_v34 = vld [vmem:[#allocation7 + $0x40] ss:$8 sm:$0xf]  ;;  %v1679_v52 = vld [vmem:[#allocation7 + $0x6] ss:$8 sm:$0xf] }
  0x67   : > { %819 = vmatpush1.msra.mxu0 %v593_v18  ;;  %752 = vmatpush1.msra.mxu1 %v575_v21  ;;  %v551_v36 = vld [vmem:[#allocation5 + $0x200] sm:$0xff]  ;;  %v561_v38 = vld [vmem:[#allocation5 + $0x250] sm:$0xff]  ;;  %v544_v39 = vld [vmem:[#allocation5 + $0x1c8] sm:$0xff] }
  0x68   : > { %820 = vmatprep.subr.mxu0 %v586_v20  ;;  %753 = vmatprep.subr.mxu1 %v568_v23  ;;  %v1878_v37 = vld [vmem:[#allocation7 + $0x40] ss:$8 sm:$0xf0]  ;;  %v1680_v53 = vld [vmem:[#allocation7 + $0x6] ss:$8 sm:$0xf0] }
  0x69   : > { %821 = vmatpush1.msra.mxu0 %v585_v22  ;;  %754 = vmatpush1.msra.mxu1 %v567_v26  ;;  %v8630_v40 = vor.u32 %v1878_v37, %v1877_v34  ;;  %v554_v41 = vld [vmem:[#allocation5 + $0x218] sm:$0xff]  ;;  %v543_v42 = vld [vmem:[#allocation5 + $0x1c0] sm:$0xff]  ;;  %v553_v43 = vld [vmem:[#allocation5 + $0x210] sm:$0xff]  ;;  %v8640_v61 = vor.u32 %v1680_v53, %v1679_v52 }
  0x6a   : > { %822 = vmatprep.subr.mxu0 %v578_v25  ;;  %755 = vmatprep.subr.mxu1 %v560_v28  ;;  %v536_v44 = vld [vmem:[#allocation5 + $0x188] sm:$0xff]  ;;  %v546_v46 = vld [vmem:[#allocation5 + $0x1d8] sm:$0xff]  ;;  %v545_v47 = vld [vmem:[#allocation5 + $0x1d0] sm:$0xff] }
  0x6b   : > { %823 = vmatpush1.msra.mxu0 %v577_v27  ;;  %756 = vmatpush1.msra.mxu1 %v559_v30  ;;  %v1884_v45 = vrot.slane %v8630_v40, %v8628_v33  ;;  %v538_v49 = vld [vmem:[#allocation5 + $0x198] sm:$0xff]  ;;  %v535_v50 = vld [vmem:[#allocation5 + $0x180] sm:$0xff]  ;;  %v528_v51 = vld [vmem:[#allocation5 + $0x148] sm:$0xff]  ;;  %v1888_v58 = vrot.slane %v8630_v40, %v8635_v48  ;;  %v1690_v8 = vrot.slane %v8640_v61, %v8635_v48 }
  0x6c   : > { %824 = vmatprep.subr.mxu0 %v570_v29  ;;  %757 = vmatprep.subr.mxu1 %v552_v32  ;;  %v537_v54 = vld [vmem:[#allocation5 + $0x190] sm:$0xff]  ;;  %v527_v55 = vld [vmem:[#allocation5 + $0x140] sm:$0xff]  ;;  %v530_v56 = vld [vmem:[#allocation5 + $0x158] sm:$0xff]  ;;  %v1892_v20 = vrot.slane %v8630_v40, %v8646_v10  ;;  %v1686_v34 = vrot.slane %v8640_v61, %v8628_v33 }
  0x6d   : > { %825 = vmatpush1.msra.mxu0 %v569_v31  ;;  %758 = vmatpush1.msra.mxu1 %v551_v36  ;;  %v520_v57 = vld [vmem:[#allocation5 + $0x108] sm:$0xff]  ;;  %v529_v59 = vld [vmem:[#allocation5 + $0x150] sm:$0xff]  ;;  %v522_v60 = vld [vmem:[#allocation5 + $0x118] sm:$0xff] }
  0x6e   : > { %826 = vmatprep.subr.mxu0 %v562_v35  ;;  %759 = vmatprep.subr.mxu1 %v544_v39  ;;  %v519_v62 = vld [vmem:[#allocation5 + $0x100] sm:$0xff]  ;;  %v521_v63 = vld [vmem:[#allocation5 + $0x110] sm:$0xff]  ;;  %v512_v0 = vld [vmem:[#allocation5 + $0xc8] sm:$0xff] }
  0x6f   : > { %827 = vmatpush1.msra.mxu0 %v561_v38  ;;  %760 = vmatpush1.msra.mxu1 %v543_v42  ;;  %v1541_v1 = vld [vmem:[#allocation7 + $0x5] ss:$8 sm:$0xf]  ;;  %v1385_v27 = vld [vmem:[#allocation7 + $0x3] ss:$8 sm:$0xf] }
  0x70   : > { %828 = vmatprep.subr.mxu0 %v554_v41  ;;  %761 = vmatprep.subr.mxu1 %v536_v44  ;;  %v1542_v2 = vld [vmem:[#allocation7 + $0x5] ss:$8 sm:$0xf0]  ;;  %v1386_v28 = vld [vmem:[#allocation7 + $0x3] ss:$8 sm:$0xf0] }
  0x71   : > { %829 = vmatpush1.msra.mxu0 %v553_v43  ;;  %1913 = vrot.lane.b32.xlu0 %v1884_v45, %s8420_s30  ;;  %v514_v4 = vld [vmem:[#allocation5 + $0xd8] sm:$0xff]  ;;  %v511_v5 = vld [vmem:[#allocation5 + $0xc0] sm:$0xff]  ;;  %v513_v6 = vld [vmem:[#allocation5 + $0xd0] sm:$0xff]  ;;  %v8648_v11 = vor.u32 %v1542_v2, %v1541_v1  ;;  %v8661_v37 = vor.u32 %v1386_v28, %v1385_v27 }
  0x72   : > { %830 = vmatprep.subr.mxu0 %v546_v46  ;;  %762 = vmatpush1.msra.mxu1 %v535_v50  ;;  %v504_v7 = vld [vmem:[#allocation5 + $0x88] sm:$0xff]  ;;  %v506_v9 = vld [vmem:[#allocation5 + $0x98] sm:$0xff]  ;;  %v503_v12 = vld [vmem:[#allocation5 + $0x80] sm:$0xff] }
  0x73   : > { %831 = vmatpush1.msra.mxu0 %v545_v47  ;;  %763 = vmatprep.subr.mxu1 %v528_v51  ;;  %v505_v13 = vld [vmem:[#allocation5 + $0x90] sm:$0xff]  ;;  %v496_v14 = vld [vmem:[#allocation5 + $0x48] sm:$0xff]  ;;  %v498_v15 = vld [vmem:[#allocation5 + $0x58] sm:$0xff]  ;;  %v1548_v21 = vrot.slane %v8648_v11, %v8628_v33  ;;  %v1556_v35 = vrot.slane %v8648_v11, %v8646_v10  ;;  %v1396_v50 = vrot.slane %v8661_v37, %v8635_v48 }
  0x74   : > { %832 = vmatprep.subr.mxu0 %v538_v49  ;;  %764 = vmatpush1.msra.mxu1 %v527_v55  ;;  %v495_v16 = vld [vmem:[#allocation5 + $0x40] sm:$0xff]  ;;  %v497_v17 = vld [vmem:[#allocation5 + $0x50] sm:$0xff]  ;;  %v488_v18 = vld [vmem:[#allocation5 + $0x8] sm:$0xff]  ;;  %v1694_v49 = vrot.slane %v8640_v61, %v8646_v10 }
  0x75   : > { %833 = vmatpush1.msra.mxu0 %v537_v54  ;;  %765 = vmatprep.subr.mxu1 %v520_v57  ;;  %v490_v19 = vld [vmem:[#allocation5 + $0x18] sm:$0xff]  ;;  %v487_v22 = vld [vmem:[#allocation5] sm:$0xff]  ;;  %v489_v23 = vld [vmem:[#allocation5 + $0x10] sm:$0xff] }
  0x76   : > { %834 = vmatprep.subr.mxu0 %v530_v56  ;;  %1915 = vrot.lane.b32.xlu0 %v1888_v58, %s8420_s30  ;;  %v736_v25 = vld [vmem:[#allocation5 + $0x7c8] sm:$0xff]  ;;  %v738_v26 = vld [vmem:[#allocation5 + $0x7d8] sm:$0xff]  ;;  %v735_v29 = vld [vmem:[#allocation5 + $0x7c0] sm:$0xff] }
  0x77   : > { %835 = vmatpush1.msra.mxu0 %v529_v59  ;;  %766 = vmatpush1.msra.mxu1 %v519_v62  ;;  %v737_v30 = vld [vmem:[#allocation5 + $0x7d0] sm:$0xff]  ;;  %v728_v31 = vld [vmem:[#allocation5 + $0x788] sm:$0xff]  ;;  %v730_v32 = vld [vmem:[#allocation5 + $0x798] sm:$0xff] }
  0x78   : > { %836 = vmatprep.subr.mxu0 %v522_v60  ;;  %767 = vmatprep.subr.mxu1 %v512_v0  ;;  %v727_v36 = vld [vmem:[#allocation5 + $0x780] sm:$0xff]  ;;  %v729_v38 = vld [vmem:[#allocation5 + $0x790] sm:$0xff]  ;;  %v720_v39 = vld [vmem:[#allocation5 + $0x748] sm:$0xff]  ;;  %v1552_v60 = vrot.slane %v8648_v11, %v8635_v48 }
  0x79   : > { %837 = vmatpush1.msra.mxu0 %v521_v63  ;;  %768 = vmatpush1.msra.mxu1 %v511_v5  ;;  %v722_v41 = vld [vmem:[#allocation5 + $0x758] sm:$0xff]  ;;  %v719_v44 = vld [vmem:[#allocation5 + $0x740] sm:$0xff]  ;;  %v721_v45 = vld [vmem:[#allocation5 + $0x750] sm:$0xff] }
  0x7a   : > { %838 = vmatprep.subr.mxu0 %v514_v4  ;;  %769 = vmatprep.subr.mxu1 %v504_v7  ;;  %v1247_v42 = vld [vmem:[#allocation7 + $0x2] ss:$8 sm:$0xf]  ;;  %v1046_v4 = vld [vmem:[#allocation7] ss:$8 sm:$0xf] }
  0x7b   : > { %839 = vmatpush1.msra.mxu0 %v513_v6  ;;  %1717 = vrot.lane.b32.xlu0 %v1690_v8, %s8421_s19  ;;  %v1248_v43 = vld [vmem:[#allocation7 + $0x2] ss:$8 sm:$0xf0]  ;;  %v1047_v5 = vld [vmem:[#allocation7] ss:$8 sm:$0xf0] }
  0x7c   : > { %840 = vmatprep.subr.mxu0 %v506_v9  ;;  %770 = vmatpush1.msra.mxu1 %v503_v12  ;;  %v712_v46 = vld [vmem:[#allocation5 + $0x708] sm:$0xff]  ;;  %v714_v47 = vld [vmem:[#allocation5 + $0x718] sm:$0xff]  ;;  %v8669_v51 = vor.u32 %v1248_v43, %v1247_v42  ;;  %v711_v52 = vld [vmem:[#allocation5 + $0x700] sm:$0xff]  ;;  %v1392_v12 = vrot.slane %v8661_v37, %v8628_v33 }
  0x7d   : > { %841 = vmatpush1.msra.mxu0 %v505_v13  ;;  %771 = vmatprep.subr.mxu1 %v496_v14  ;;  %v713_v53 = vld [vmem:[#allocation5 + $0x710] sm:$0xff]  ;;  %v704_v54 = vld [vmem:[#allocation5 + $0x6c8] sm:$0xff]  ;;  %v706_v55 = vld [vmem:[#allocation5 + $0x6d8] sm:$0xff]  ;;  %v8683_v14 = vor.u32 %v1047_v5, %v1046_v4 }
  0x7e   : > { %842 = vmatprep.subr.mxu0 %v498_v15  ;;  %772 = vmatpush1.msra.mxu1 %v495_v16  ;;  %v703_v56 = vld [vmem:[#allocation5 + $0x6c0] sm:$0xff]  ;;  %v705_v57 = vld [vmem:[#allocation5 + $0x6d0] sm:$0xff]  ;;  %v696_v58 = vld [vmem:[#allocation5 + $0x688] sm:$0xff]  ;;  %v1254_v62 = vrot.slane %v8669_v51, %v8628_v33  ;;  %v1262_v13 = vrot.slane %v8669_v51, %v8646_v10 }
  0x7f   : > { %843 = vmatpush1.msra.mxu0 %v497_v17  ;;  %773 = vmatprep.subr.mxu1 %v488_v18  ;;  %v698_v59 = vld [vmem:[#allocation5 + $0x698] sm:$0xff]  ;;  %v695_v63 = vld [vmem:[#allocation5 + $0x680] sm:$0xff]  ;;  %v697_v0 = vld [vmem:[#allocation5 + $0x690] sm:$0xff] }
  0x80   : > { %844 = vmatprep.subr.mxu0 %v490_v19  ;;  %1917 = vrot.lane.b32.xlu1 %v1892_v20, %s8420_s30  ;;  %v688_v1 = vld [vmem:[#allocation5 + $0x648] sm:$0xff]  ;;  %v690_v2 = vld [vmem:[#allocation5 + $0x658] sm:$0xff]  ;;  %v687_v6 = vld [vmem:[#allocation5 + $0x640] sm:$0xff] }
  0x81   : > { %1577 = vrot.lane.b32.xlu0 %v1548_v21, %s8422_s3  ;;  %774 = vmatpush1.msra.mxu1 %v487_v22  ;;  %v689_v7 = vld [vmem:[#allocation5 + $0x650] sm:$0xff]  ;;  %v680_v8 = vld [vmem:[#allocation5 + $0x608] sm:$0xff]  ;;  %v682_v9 = vld [vmem:[#allocation5 + $0x618] sm:$0xff] }
  0x82   : > { %845 = vmatpush1.msra.mxu0 %v489_v23  ;;  %775 = vmatprep.subr.mxu1 %v736_v25  ;;  %v679_v15 = vld [vmem:[#allocation5 + $0x600] sm:$0xff]  ;;  %v681_v16 = vld [vmem:[#allocation5 + $0x610] sm:$0xff]  ;;  %v672_v17 = vld [vmem:[#allocation5 + $0x5c8] sm:$0xff]  ;;  %v1400_v23 = vrot.slane %v8661_v37, %v8646_v10  ;;  %v1057_v25 = vrot.slane %v8683_v14, %v8635_v48 }
  0x83   : > { %846 = vmatprep.subr.mxu0 %v738_v26  ;;  %776 = vmatpush2.msra.mxu1 %v735_v29  ;;  %v674_v18 = vld [vmem:[#allocation5 + $0x5d8] sm:$0xff]  ;;  %v671_v19 = vld [vmem:[#allocation5 + $0x5c0] sm:$0xff]  ;;  %v673_v20 = vld [vmem:[#allocation5 + $0x5d0] sm:$0xff]  ;;  %v8692_v26 = vsub.s32 3, %v8625_v24 }
  0x84   : > { %847 = vmatpush2.msra.mxu0 %v737_v30  ;;  %777 = vmatprep.subr.mxu1 %v728_v31  ;;  %v664_v21 = vld [vmem:[#allocation5 + $0x588] sm:$0xff]  ;;  %v666_v22 = vld [vmem:[#allocation5 + $0x598] sm:$0xff]  ;;  %v663_v27 = vld [vmem:[#allocation5 + $0x580] sm:$0xff] }
  0x85   : > { %848 = vmatprep.subr.mxu0 %v730_v32  ;;  %1715 = vrot.lane.b32.xlu1 %v1686_v34, %s8421_s19  ;;  %v665_v28 = vld [vmem:[#allocation5 + $0x590] sm:$0xff]  ;;  %v656_v29 = vld [vmem:[#allocation5 + $0x548] sm:$0xff]  ;;  %v658_v30 = vld [vmem:[#allocation5 + $0x558] sm:$0xff] }
  0x86   : > { %1581 = vrot.lane.b32.xlu0 %v1556_v35, %s8422_s3  ;;  %778 = vmatpush2.msra.mxu1 %v727_v36  ;;  %v655_v31 = vld [vmem:[#allocation5 + $0x540] sm:$0xff]  ;;  %v657_v32 = vld [vmem:[#allocation5 + $0x550] sm:$0xff]  ;;  %v648_v34 = vld [vmem:[#allocation5 + $0x508] sm:$0xff]  ;;  %v1258_v36 = vrot.slane %v8669_v51, %v8635_v48 }
  0x87   : > { %849 = vmatpush2.msra.mxu0 %v729_v38  ;;  %779 = vmatprep.subr.mxu1 %v720_v39  ;;  %v650_v35 = vld [vmem:[#allocation5 + $0x518] sm:$0xff]  ;;  %v1896_v38 = vrot.slane %v8630_v40, %v8692_v26  ;;  %v8701_v39 = vsub.s32 5, %v8625_v24  ;;  %v649_v42 = vld [vmem:[#allocation5 + $0x510] sm:$0xff]  ;;  %v640_v43 = vld [vmem:[#allocation5 + $0x4c8] sm:$0xff] }
  0x88   : > { %850 = vmatprep.subr.mxu0 %v722_v41  ;;  %780 = vmatpush2.msra.mxu1 %v719_v44  ;;  %v647_v41 = vld [vmem:[#allocation5 + $0x500] sm:$0xff]  ;;  %v642_v44 = vld [vmem:[#allocation5 + $0x4d8] sm:$0xff]  ;;  %v612_v4 = vld [vmem:[#allocation5 + $0x3e8] sm:$0xff] }
  0x89   : > { %851 = vmatpush2.msra.mxu0 %v721_v45  ;;  %781 = vmatprep.subr.mxu1 %v712_v46  ;;  %10851 = vst [vmem:[#allocation15_spill] sm:$0xff] %v8701_v39  ;;  %v639_v45 = vld [vmem:[#allocation5 + $0x4c0] sm:$0xff]  ;;  %v641_v46 = vld [vmem:[#allocation5 + $0x4d0] sm:$0xff]  ;;  %v614_v5 = vld [vmem:[#allocation5 + $0x3f8] sm:$0xff] }
  0x8a   : > { %852 = vmatprep.subr.mxu0 %v714_v47  ;;  %1719 = vrot.lane.b32.xlu1 %v1694_v49, %s8421_s19  ;;  %v632_v47 = vld [vmem:[#allocation5 + $0x488] sm:$0xff]  ;;  %v634_v49 = vld [vmem:[#allocation5 + $0x498] sm:$0xff] }
  0x8b   : > { %1423 = vrot.lane.b32.xlu0 %v1396_v50, %s8423_s5  ;;  %782 = vmatpush2.msra.mxu1 %v711_v52  ;;  %v1904_v50 = vrot.slane %v8630_v40, %v8701_v39  ;;  %v1053_v52 = vrot.slane %v8683_v14, %v8628_v33 }
  0x8c   : > { %853 = vmatpush2.msra.mxu0 %v713_v53  ;;  %783 = vmatprep.subr.mxu1 %v704_v54  ;;  %v631_v53 = vld [vmem:[#allocation5 + $0x480] sm:$0xff]  ;;  %v633_v54 = vld [vmem:[#allocation5 + $0x490] sm:$0xff] }
  0x8d   : > { %854 = vmatprep.subr.mxu0 %v706_v55  ;;  %784 = vmatpush2.msra.mxu1 %v703_v56  ;;  %v624_v55 = vld [vmem:[#allocation5 + $0x448] sm:$0xff]  ;;  %v626_v56 = vld [vmem:[#allocation5 + $0x458] sm:$0xff] }
  0x8e   : > { %855 = vmatpush2.msra.mxu0 %v705_v57  ;;  %785 = vmatprep.subr.mxu1 %v696_v58  ;;  %v623_v57 = vld [vmem:[#allocation5 + $0x440] sm:$0xff]  ;;  %v625_v58 = vld [vmem:[#allocation5 + $0x450] sm:$0xff] }
  0x8f   : > { %856 = vmatprep.subr.mxu0 %v698_v59  ;;  %1579 = vrot.lane.b32.xlu1 %v1552_v60, %s8422_s3  ;;  %v616_v59 = vld [vmem:[#allocation5 + $0x408] sm:$0xff]  ;;  %v618_v60 = vld [vmem:[#allocation5 + $0x418] sm:$0xff] }
  0x90   : > { %1283 = vrot.lane.b32.xlu0 %v1254_v62, %s8420_s30  ;;  %786 = vmatpush2.msra.mxu1 %v695_v63  ;;  %v1698_v62 = vrot.slane %v8640_v61, %v8692_v26  ;;  %v1061_v63 = vrot.slane %v8683_v14, %v8646_v10 }
  0x91   : > { %857 = vmatpush2.msra.mxu0 %v697_v0  ;;  %787 = vmatprep.subr.mxu1 %v688_v1  ;;  %v8716_v0 = vsub.s32 4, %v8625_v24  ;;  %v615_v1 = vld [vmem:[#allocation5 + $0x400] sm:$0xff] }
  0x92   : > { %858 = vmatprep.subr.mxu0 %v690_v2  ;;  %788 = vmatpush2.msra.mxu1 %v687_v6  ;;  %v617_v2 = vld [vmem:[#allocation5 + $0x410] sm:$0xff]  ;;  %v1560_v6 = vrot.slane %v8648_v11, %v8692_v26 }
  0x93   : > { %859 = vmatpush2.msra.mxu0 %v689_v7  ;;  %789 = vmatprep.subr.mxu1 %v680_v8  ;;  %v1900_v7 = vrot.slane %v8630_v40, %v8716_v0  ;;  %v8725_v8 = vsub.s32 6, %v8625_v24 }
  0x94   : > { %860 = vmatprep.subr.mxu0 %v682_v9  ;;  %1421 = vrot.lane.b32.xlu1 %v1392_v12, %s8423_s5  ;;  %v1706_v9 = vrot.slane %v8640_v61, %v8701_v39 }
  0x95   : > { %1287 = vrot.lane.b32.xlu0 %v1262_v13, %s8420_s30  ;;  %790 = vmatpush2.msra.mxu1 %v679_v15  ;;  %v1908_v12 = vrot.slane %v8630_v40, %v8725_v8  ;;  %v1568_v13 = vrot.slane %v8648_v11, %v8701_v39  ;;  %v1702_v15 = vrot.slane %v8640_v61, %v8716_v0 }
  0x96   : > { %861 = vmatpush2.msra.mxu0 %v681_v16  ;;  %791 = vmatprep.subr.mxu1 %v672_v17  ;;  %v1404_v16 = vrot.slane %v8661_v37, %v8692_v26  ;;  %v1564_v17 = vrot.slane %v8648_v11, %v8716_v0 }
  0x97   : > { %862 = vmatprep.subr.mxu0 %v674_v18  ;;  %792 = vmatpush2.msra.mxu1 %v671_v19  ;;  %v1266_v18 = vrot.slane %v8669_v51, %v8692_v26  ;;  %v1710_v19 = vrot.slane %v8640_v61, %v8725_v8 }
  0x98   : > { %863 = vmatpush2.msra.mxu0 %v673_v20  ;;  %793 = vmatprep.subr.mxu1 %v664_v21  ;;  %v1412_v20 = vrot.slane %v8661_v37, %v8701_v39  ;;  %v1572_v21 = vrot.slane %v8648_v11, %v8725_v8 }
  0x99   : > { %864 = vmatprep.subr.mxu0 %v666_v22  ;;  %1425 = vrot.lane.b32.xlu1 %v1400_v23, %s8423_s5  ;;  %v1274_v22 = vrot.slane %v8669_v51, %v8701_v39  ;;  %v1408_v23 = vrot.slane %v8661_v37, %v8716_v0 }
  0x9a   : > { %1084 = vrot.lane.b32.xlu0 %v1057_v25, %s8421_s19  ;;  %794 = vmatpush2.msra.mxu1 %v663_v27  ;;  %v1065_v25 = vrot.slane %v8683_v14, %v8692_v26  ;;  %v1270_v27 = vrot.slane %v8669_v51, %v8716_v0 }
  0x9b   : > { %865 = vmatpush2.msra.mxu0 %v665_v28  ;;  %795 = vmatprep.subr.mxu1 %v656_v29  ;;  %v1073_v28 = vrot.slane %v8683_v14, %v8701_v39  ;;  %v1416_v29 = vrot.slane %v8661_v37, %v8725_v8 }
  0x9c   : > { %866 = vmatprep.subr.mxu0 %v658_v30  ;;  %796 = vmatpush2.msra.mxu1 %v655_v31  ;;  %v8776_v30 = vsub.s32 7, %v8625_v24  ;;  %v1077_v24 = vrot.slane %v8683_v14, %v8725_v8 }
  0x9d   : > { %867 = vmatpush2.msra.mxu0 %v657_v32  ;;  %797 = vmatprep.subr.mxu1 %v648_v34  ;;  %v1278_v32 = vrot.slane %v8669_v51, %v8725_v8  ;;  %v1069_v34 = vrot.slane %v8683_v14, %v8716_v0 }
  0x9e   : > { %868 = vmatprep.subr.mxu0 %v650_v35  ;;  %1285 = vrot.lane.b32.xlu1 %v1258_v36, %s8420_s30  ;;  %10852 = vst [vmem:[#allocation16_spill] sm:$0xff] %v8776_v30  ;;  %v1912_v31 = vrot.slane %v8630_v40, %v8776_v30  ;;  %v1714_v40 = vrot.slane %v8640_v61, %v8776_v30 }
  0x9f   : > { %1919 = vrot.lane.b32.xlu0 %v1896_v38, %s8420_s30  ;;  %798 = vmatpush2.msra.mxu1 %v647_v41  ;;  %v1576_v35 = vrot.slane %v8648_v11, %v8776_v30  ;;  %v1420_v36 = vrot.slane %v8661_v37, %v8776_v30  ;;  %v1282_v41 = vrot.slane %v8669_v51, %v8776_v30 }
  0xa0   : > { %869 = vmatpush2.msra.mxu0 %v649_v42  ;;  %799 = vmatprep.subr.mxu1 %v640_v43  ;;  %v1081_v61 = vrot.slane %v8683_v14, %v8776_v30 }
  0xa1   : > { %870 = vmatprep.subr.mxu0 %v642_v44  ;;  %800 = vmatpush2.msra.mxu1 %v639_v45 }
  0xa2   : > { %871 = vmatpush2.msra.mxu0 %v641_v46  ;;  %801 = vmatprep.subr.mxu1 %v632_v47 }
  0xa3   : > { %872 = vmatprep.subr.mxu0 %v634_v49  ;;  %1923 = vrot.lane.b32.xlu0 %v1904_v50, %s8420_s30 }
  0xa4   : > { %1082 = vrot.lane.b32.xlu1 %v1053_v52, %s8421_s19  ;;  %802 = vmatpush2.msra.mxu1 %v631_v53 }
  0xa5   : > { %873 = vmatpush2.msra.mxu0 %v633_v54  ;;  %803 = vmatprep.subr.mxu1 %v624_v55 }
  0xa6   : > { %874 = vmatprep.subr.mxu0 %v626_v56  ;;  %804 = vmatpush2.msra.mxu1 %v623_v57 }
  0xa7   : > { %875 = vmatpush2.msra.mxu0 %v625_v58  ;;  %805 = vmatprep.subr.mxu1 %v616_v59 }
  0xa8   : > { %876 = vmatprep.subr.mxu0 %v618_v60  ;;  %1721 = vrot.lane.b32.xlu0 %v1698_v62, %s8421_s19 }
  0xa9   : > { %1086 = vrot.lane.b32.xlu1 %v1061_v63, %s8421_s19  ;;  %806 = vmatpush2.msra.mxu1 %v615_v1 }
  0xaa   : > { %877 = vmatpush2.msra.mxu0 %v617_v2  ;;  %885 = vmatprep.subr.mxu1 %v612_v4  ;;  %v611_v4 = vld [vmem:[#allocation5 + $0x3e0] sm:$0xff] }
  0xab   : > { %956 = vmatprep.subr.mxu0 %v614_v5  ;;  %v613_v5 = vld [vmem:[#allocation5 + $0x3f0] sm:$0xff] }
  0xac   : > { %1583 = vrot.lane.b32.xlu0 %v1560_v6, %s8422_s3  ;;  %v604_v6 = vld [vmem:[#allocation5 + $0x3a8] sm:$0xff] }
  0xad   : > { %1921 = vrot.lane.b32.xlu1 %v1900_v7, %s8420_s30 }
  0xb0   : > { %1725 = vrot.lane.b32.xlu0 %v1706_v9, %s8421_s19  ;;  %v606_v9 = vld [vmem:[#allocation5 + $0x3b8] sm:$0xff] }
  0xb1   : > { %1925 = vrot.lane.b32.xlu1 %v1908_v12, %s8420_s30  ;;  %v603_v12 = vld [vmem:[#allocation5 + $0x3a0] sm:$0xff] }
  0xb4   : > { %1587 = vrot.lane.b32.xlu0 %v1568_v13, %s8422_s3  ;;  %v605_v13 = vld [vmem:[#allocation5 + $0x3b0] sm:$0xff] }
  0xb5   : > { %1723 = vrot.lane.b32.xlu1 %v1702_v15, %s8421_s19 }
  0xb8   : > { %1427 = vrot.lane.b32.xlu0 %v1404_v16, %s8423_s5  ;;  %v596_v16 = vld [vmem:[#allocation5 + $0x368] sm:$0xff] }
  0xb9   : > { %1585 = vrot.lane.b32.xlu1 %v1564_v17, %s8422_s3  ;;  %v598_v17 = vld [vmem:[#allocation5 + $0x378] sm:$0xff] }
  0xbc   : > { %1289 = vrot.lane.b32.xlu0 %v1266_v18, %s8420_s30  ;;  %v595_v18 = vld [vmem:[#allocation5 + $0x360] sm:$0xff] }
  0xbd   : > { %1727 = vrot.lane.b32.xlu1 %v1710_v19, %s8421_s19  ;;  %v597_v19 = vld [vmem:[#allocation5 + $0x370] sm:$0xff] }
  0xc0   : > { %1431 = vrot.lane.b32.xlu0 %v1412_v20, %s8423_s5  ;;  %v588_v20 = vld [vmem:[#allocation5 + $0x328] sm:$0xff] }
  0xc1   : > { %1589 = vrot.lane.b32.xlu1 %v1572_v21, %s8422_s3  ;;  %v590_v21 = vld [vmem:[#allocation5 + $0x338] sm:$0xff] }
  0xc4   : > { %1293 = vrot.lane.b32.xlu0 %v1274_v22, %s8420_s30  ;;  %v587_v22 = vld [vmem:[#allocation5 + $0x320] sm:$0xff] }
  0xc5   : > { %1429 = vrot.lane.b32.xlu1 %v1408_v23, %s8423_s5  ;;  %v589_v23 = vld [vmem:[#allocation5 + $0x330] sm:$0xff] }
  0xc8   : > { %1088 = vrot.lane.b32.xlu0 %v1065_v25, %s8421_s19 }
  0xc9   : > { %1291 = vrot.lane.b32.xlu1 %v1270_v27, %s8420_s30  ;;  %v580_v27 = vld [vmem:[#allocation5 + $0x2e8] sm:$0xff] }
  0xcc   : > { %1092 = vrot.lane.b32.xlu0 %v1073_v28, %s8421_s19  ;;  %v582_v28 = vld [vmem:[#allocation5 + $0x2f8] sm:$0xff] }
  0xcd   : > { %1433 = vrot.lane.b32.xlu1 %v1416_v29, %s8423_s5  ;;  %v579_v29 = vld [vmem:[#allocation5 + $0x2e0] sm:$0xff] }
  0xd0   : > { %1927 = vrot.lane.b32.xlu0 %v1912_v31, %s8420_s30  ;;  %v581_v31 = vld [vmem:[#allocation5 + $0x2f0] sm:$0xff] }
  0xd1   : > { %1295 = vrot.lane.b32.xlu1 %v1278_v32, %s8420_s30 }
  0xd4   : > { %1591 = vrot.lane.b32.xlu0 %v1576_v35, %s8422_s3  ;;  %v573_v35 = vld [vmem:[#allocation5 + $0x2b0] sm:$0xff] }
  0xd5   : > { %1090 = vrot.lane.b32.xlu1 %v1069_v34, %s8421_s19  ;;  %v572_v34 = vld [vmem:[#allocation5 + $0x2a8] sm:$0xff] }
  0xd8   : > { %1297 = vrot.lane.b32.xlu0 %v1282_v41, %s8420_s30  ;;  %v566_v41 = vld [vmem:[#allocation5 + $0x278] sm:$0xff] }
  0xd9   : > { %1094 = vrot.lane.b32.xlu1 %v1077_v24, %s8421_s19  ;;  %v574_v24 = vld [vmem:[#allocation5 + $0x2b8] sm:$0xff] }
  0xdc   : > { %1194 = vrot.lane.b32.xlu0 %v10829_v3, %s8424_s17 }
  0xdd   : > { %1729 = vrot.lane.b32.xlu1 %v1714_v40, %s8421_s19  ;;  %v571_v40 = vld [vmem:[#allocation5 + $0x2a0] sm:$0xff] }
  0xe1   : > { %1435 = vrot.lane.b32.xlu1 %v1420_v36, %s8423_s5  ;;  %v564_v36 = vld [vmem:[#allocation5 + $0x268] sm:$0xff] }
  0xe3   : > { %v8800_v38 = vpop.permute.xlu0 %1913 }
  0xe5   : > { %1096 = vrot.lane.b32.xlu1 %v1081_v61, %s8421_s19  ;;  %v563_v61 = vld [vmem:[#allocation5 + $0x260] sm:$0xff] }
  0xe8   : > { %v8808_v11 = vpop.permute.xlu0 %1915 }
  0xe9   : > { %1841 = vrot.lane.b32.xlu1 %v10829_v3, %s8424_s17 }
  0xed   : > { %v8813_v37 = vpop.permute.xlu0 %1717 }
  0xf2   : > { %v8817_v51 = vpop.permute.xlu1 %1917 }
  0xf3   : > { %v8819_v42 = vpop.permute.xlu0 %1577 }
  0xf7   : > { %v8821_v43 = vpop.permute.xlu1 %1715 }
  0xf8   : > { %v8823_v14 = vpop.permute.xlu0 %1581 }
  0xfc   : > { %v8825_v44 = vpop.permute.xlu1 %1719 }
  0xfd   : > { %v8827_v45 = vpop.permute.xlu0 %1423 }
 0x101   : > { %v8829_v46 = vpop.permute.xlu1 %1579 }
 0x102   : > { %v8831_v47 = vpop.permute.xlu0 %1283 }
 0x103   : > { %v1315_v49 = vmul.f32 0.0, %v8831_v47 }
 0x105   : > { %1333 = vrot.lane.b32.xlu1 %v1315_v49, %s8421_s19  ;;  %v565_v49 = vld [vmem:[#allocation5 + $0x270] sm:$0xff] }
 0x106   : > { %v8835_v50 = vpop.permute.xlu1 %1421 }
 0x107   : > { %v1454_v52 = vmul.f32 0.0, %v8835_v50  ;;  %v8841_v54 = vpop.permute.xlu0 %1287 }
 0x109   : > { %1472 = vrot.lane.b32.xlu0 %v1454_v52, %s8422_s3 }
 0x10b   : > { %v8839_v53 = vpop.permute.xlu1 %1425 }
 0x10c   : > { %v8845_v56 = vpop.permute.xlu0 %1084 }
 0x110   : > { %v8843_v55 = vpop.permute.xlu1 %1285 }
 0x111   : > { %v8851_v59 = vpop.permute.xlu0 %1919 }
 0x115   : > { %v8857_v63 = vpop.permute.xlu0 %1923 }
 0x116   : > { %v8847_v57 = vpop.permute.xlu1 %1082 }
 0x117   : > { %v1115_v58 = vmul.f32 0.0, %v8847_v57 }
 0x119   : > { %1133 = vrot.lane.b32.xlu1 %v1115_v58, %s8420_s30  ;;  %v556_v58 = vld [vmem:[#allocation5 + $0x228] sm:$0xff] }
 0x11a   : > { %v8865_v15 = vpop.permute.xlu0 %1721 }
 0x11b   : > { %v8853_v60 = vpop.permute.xlu1 %1086 }
 0x11e   : > { %v8869_v32 = vpop.permute.xlu0 %1583 }
 0x11f   : > { %v8855_v62 = vpop.permute.xlu1 %1921 }
 0x121   : > { %v8859_v1 = vpop.f32.mrf.mxu0 }
 0x123   : > { %v484_v2 = vpop.f32.mrf.mxu0  ;;  %v8861_v7 = vpop.permute.xlu1 %1925 }
 0x124   : > { %807 = vmatprep.mubr.f32.mxu1 %v484_v2  ;;  %878 = vmatprep.mubr.f32.mxu0 %v484_v2 }
 0x125   : > { %808 = vmatmul.mubr.f32.vlgmr.msra.gmra.mxu1 %v8859_v1  ;;  %879 = vmatmul.mubr.f32.vlgmr.msra.gmra.mxu0 %v8859_v1 }
 0x126   : > { %886 = vmatpush1.msra.mxu1 %v611_v4  ;;  %957 = vmatpush1.msra.mxu0 %v613_v5  ;;  %v555_v4 = vld [vmem:[#allocation5 + $0x220] sm:$0xff]  ;;  %v557_v5 = vld [vmem:[#allocation5 + $0x230] sm:$0xff] }
 0x127   : > { %887 = vmatprep.subr.mxu1 %v604_v6  ;;  %949 = vmatprep.mubr.f32.mxu1 %v484_v2  ;;  %v8867_v25 = vpop.permute.xlu1 %1723  ;;  %v8873_v6 = vpop.permute.xlu0 %1725 }
 0x128   : > { %958 = vmatprep.subr.mxu0 %v606_v9  ;;  %1020 = vmatprep.mubr.f32.mxu0 %v484_v2  ;;  %v558_v2 = vld [vmem:[#allocation5 + $0x238] sm:$0xff]  ;;  %v548_v9 = vld [vmem:[#allocation5 + $0x1e8] sm:$0xff] }
 0x129   : > { %888 = vmatpush1.msra.mxu1 %v603_v12  ;;  %959 = vmatpush1.msra.mxu0 %v605_v13  ;;  %v550_v12 = vld [vmem:[#allocation5 + $0x1f8] sm:$0xff]  ;;  %v547_v13 = vld [vmem:[#allocation5 + $0x1e0] sm:$0xff] }
 0x12a   : > { %889 = vmatprep.subr.mxu1 %v596_v16  ;;  %960 = vmatprep.subr.mxu0 %v598_v17  ;;  %v549_v16 = vld [vmem:[#allocation5 + $0x1f0] sm:$0xff]  ;;  %v540_v17 = vld [vmem:[#allocation5 + $0x1a8] sm:$0xff] }
 0x12b   : > { %890 = vmatpush1.msra.mxu1 %v595_v18  ;;  %961 = vmatpush1.msra.mxu0 %v597_v19  ;;  %v8871_v52 = vpop.permute.xlu1 %1585  ;;  %v542_v18 = vld [vmem:[#allocation5 + $0x1b8] sm:$0xff]  ;;  %v539_v19 = vld [vmem:[#allocation5 + $0x1a0] sm:$0xff] }
 0x12c   : > { %891 = vmatprep.subr.mxu1 %v588_v20  ;;  %962 = vmatprep.subr.mxu0 %v590_v21  ;;  %v541_v20 = vld [vmem:[#allocation5 + $0x1b0] sm:$0xff] }
 0x12d   : > { %892 = vmatpush1.msra.mxu1 %v587_v22  ;;  %963 = vmatpush1.msra.mxu0 %v589_v23  ;;  %v532_v22 = vld [vmem:[#allocation5 + $0x168] sm:$0xff]  ;;  %v534_v23 = vld [vmem:[#allocation5 + $0x178] sm:$0xff] }
 0x12e   : > { %893 = vmatprep.subr.mxu1 %v580_v27  ;;  %964 = vmatprep.subr.mxu0 %v582_v28  ;;  %v531_v27 = vld [vmem:[#allocation5 + $0x160] sm:$0xff]  ;;  %v533_v28 = vld [vmem:[#allocation5 + $0x170] sm:$0xff] }
 0x12f   : > { %894 = vmatpush1.msra.mxu1 %v579_v29  ;;  %965 = vmatpush1.msra.mxu0 %v581_v31  ;;  %v8875_v21 = vpop.permute.xlu1 %1727  ;;  %v8877_v29 = vpop.permute.xlu0 %1587  ;;  %v524_v31 = vld [vmem:[#allocation5 + $0x128] sm:$0xff] }
 0x130   : > { %895 = vmatprep.subr.mxu1 %v572_v34  ;;  %966 = vmatprep.subr.mxu0 %v574_v24  ;;  %v526_v34 = vld [vmem:[#allocation5 + $0x138] sm:$0xff]  ;;  %v523_v24 = vld [vmem:[#allocation5 + $0x120] sm:$0xff] }
 0x131   : > { %896 = vmatpush1.msra.mxu1 %v571_v40  ;;  %967 = vmatpush1.msra.mxu0 %v573_v35  ;;  %v525_v40 = vld [vmem:[#allocation5 + $0x130] sm:$0xff]  ;;  %v516_v35 = vld [vmem:[#allocation5 + $0xe8] sm:$0xff] }
 0x132   : > { %897 = vmatprep.subr.mxu1 %v564_v36  ;;  %968 = vmatprep.subr.mxu0 %v566_v41  ;;  %v518_v36 = vld [vmem:[#allocation5 + $0xf8] sm:$0xff]  ;;  %v515_v41 = vld [vmem:[#allocation5 + $0xe0] sm:$0xff] }
 0x133   : > { %898 = vmatpush1.msra.mxu1 %v563_v61  ;;  %969 = vmatpush1.msra.mxu0 %v565_v49  ;;  %v517_v61 = vld [vmem:[#allocation5 + $0xf0] sm:$0xff]  ;;  %v8879_v49 = vpop.permute.xlu1 %1589 }
 0x134   : > { %899 = vmatprep.subr.mxu1 %v556_v58  ;;  %970 = vmatprep.subr.mxu0 %v558_v2  ;;  %v508_v58 = vld [vmem:[#allocation5 + $0xa8] sm:$0xff]  ;;  %v510_v2 = vld [vmem:[#allocation5 + $0xb8] sm:$0xff] }
 0x135   : > { %900 = vmatpush1.msra.mxu1 %v555_v4  ;;  %971 = vmatpush1.msra.mxu0 %v557_v5  ;;  %v507_v4 = vld [vmem:[#allocation5 + $0xa0] sm:$0xff]  ;;  %v509_v5 = vld [vmem:[#allocation5 + $0xb0] sm:$0xff] }
 0x136   : > { %901 = vmatprep.subr.mxu1 %v548_v9  ;;  %972 = vmatprep.subr.mxu0 %v550_v12  ;;  %v8881_v9 = vpop.permute.xlu0 %1427  ;;  %v500_v12 = vld [vmem:[#allocation5 + $0x68] sm:$0xff] }
 0x137   : > { %902 = vmatpush1.msra.mxu1 %v547_v13  ;;  %973 = vmatpush1.msra.mxu0 %v549_v16  ;;  %v502_v13 = vld [vmem:[#allocation5 + $0x78] sm:$0xff]  ;;  %v499_v16 = vld [vmem:[#allocation5 + $0x60] sm:$0xff] }
 0x138   : > { %903 = vmatprep.subr.mxu1 %v540_v17  ;;  %974 = vmatprep.subr.mxu0 %v542_v18  ;;  %v501_v17 = vld [vmem:[#allocation5 + $0x70] sm:$0xff]  ;;  %v492_v18 = vld [vmem:[#allocation5 + $0x28] sm:$0xff] }
 0x139   : > { %904 = vmatpush1.msra.mxu1 %v539_v19  ;;  %975 = vmatpush1.msra.mxu0 %v541_v20  ;;  %v494_v19 = vld [vmem:[#allocation5 + $0x38] sm:$0xff]  ;;  %v491_v20 = vld [vmem:[#allocation5 + $0x20] sm:$0xff] }
 0x13a   : > { %905 = vmatprep.subr.mxu1 %v532_v22  ;;  %976 = vmatprep.subr.mxu0 %v534_v23  ;;  %v493_v22 = vld [vmem:[#allocation5 + $0x30] sm:$0xff]  ;;  %v8883_v23 = vpop.permute.xlu1 %1429 }
 0x13b   : > { %906 = vmatpush1.msra.mxu1 %v531_v27  ;;  %977 = vmatpush1.msra.mxu0 %v533_v28  ;;  %v740_v27 = vld [vmem:[#allocation5 + $0x7e8] sm:$0xff]  ;;  %v742_v28 = vld [vmem:[#allocation5 + $0x7f8] sm:$0xff] }
 0x13c   : > { %907 = vmatprep.subr.mxu1 %v524_v31  ;;  %978 = vmatprep.subr.mxu0 %v526_v34  ;;  %v739_v31 = vld [vmem:[#allocation5 + $0x7e0] sm:$0xff]  ;;  %v741_v34 = vld [vmem:[#allocation5 + $0x7f0] sm:$0xff] }
 0x13d   : > { %908 = vmatpush1.msra.mxu1 %v523_v24  ;;  %979 = vmatpush1.msra.mxu0 %v525_v40  ;;  %v8885_v24 = vpop.permute.xlu0 %1289  ;;  %v732_v40 = vld [vmem:[#allocation5 + $0x7a8] sm:$0xff] }
 0x13e   : > { %909 = vmatprep.subr.mxu1 %v516_v35  ;;  %980 = vmatprep.subr.mxu0 %v518_v36  ;;  %v734_v35 = vld [vmem:[#allocation5 + $0x7b8] sm:$0xff]  ;;  %v731_v36 = vld [vmem:[#allocation5 + $0x7a0] sm:$0xff] }
 0x13f   : > { %910 = vmatpush1.msra.mxu1 %v515_v41  ;;  %981 = vmatpush1.msra.mxu0 %v517_v61  ;;  %v733_v41 = vld [vmem:[#allocation5 + $0x7b0] sm:$0xff]  ;;  %v724_v61 = vld [vmem:[#allocation5 + $0x768] sm:$0xff] }
 0x140   : > { %911 = vmatprep.subr.mxu1 %v508_v58  ;;  %982 = vmatprep.subr.mxu0 %v510_v2  ;;  %v726_v58 = vld [vmem:[#allocation5 + $0x778] sm:$0xff]  ;;  %v723_v2 = vld [vmem:[#allocation5 + $0x760] sm:$0xff] }
 0x141   : > { %912 = vmatpush1.msra.mxu1 %v507_v4  ;;  %983 = vmatpush1.msra.mxu0 %v509_v5  ;;  %v725_v4 = vld [vmem:[#allocation5 + $0x770] sm:$0xff]  ;;  %v8887_v5 = vpop.permute.xlu1 %1291 }
 0x142   : > { %913 = vmatprep.subr.mxu1 %v500_v12  ;;  %984 = vmatprep.subr.mxu0 %v502_v13  ;;  %v716_v12 = vld [vmem:[#allocation5 + $0x728] sm:$0xff]  ;;  %v718_v13 = vld [vmem:[#allocation5 + $0x738] sm:$0xff] }
 0x143   : > { %914 = vmatpush1.msra.mxu1 %v499_v16  ;;  %985 = vmatpush1.msra.mxu0 %v501_v17  ;;  %v715_v16 = vld [vmem:[#allocation5 + $0x720] sm:$0xff]  ;;  %v717_v17 = vld [vmem:[#allocation5 + $0x730] sm:$0xff] }
 0x144   : > { %915 = vmatprep.subr.mxu1 %v492_v18  ;;  %986 = vmatprep.subr.mxu0 %v494_v19  ;;  %v8889_v18 = vpop.permute.xlu0 %1431  ;;  %v708_v19 = vld [vmem:[#allocation5 + $0x6e8] sm:$0xff] }
 0x145   : > { %916 = vmatpush1.msra.mxu1 %v491_v20  ;;  %987 = vmatpush1.msra.mxu0 %v493_v22  ;;  %v710_v20 = vld [vmem:[#allocation5 + $0x6f8] sm:$0xff]  ;;  %v707_v22 = vld [vmem:[#allocation5 + $0x6e0] sm:$0xff] }
 0x146   : > { %917 = vmatprep.subr.mxu1 %v740_v27  ;;  %988 = vmatprep.subr.mxu0 %v742_v28  ;;  %v709_v27 = vld [vmem:[#allocation5 + $0x6f0] sm:$0xff]  ;;  %v700_v28 = vld [vmem:[#allocation5 + $0x6a8] sm:$0xff] }
 0x147   : > { %918 = vmatpush2.msra.mxu1 %v739_v31  ;;  %989 = vmatpush2.msra.mxu0 %v741_v34  ;;  %v702_v31 = vld [vmem:[#allocation5 + $0x6b8] sm:$0xff]  ;;  %v699_v34 = vld [vmem:[#allocation5 + $0x6a0] sm:$0xff] }
 0x148   : > { %919 = vmatprep.subr.mxu1 %v732_v40  ;;  %990 = vmatprep.subr.mxu0 %v734_v35  ;;  %v701_v40 = vld [vmem:[#allocation5 + $0x6b0] sm:$0xff]  ;;  %v8891_v35 = vpop.permute.xlu1 %1433 }
 0x149   : > { %920 = vmatpush2.msra.mxu1 %v731_v36  ;;  %991 = vmatpush2.msra.mxu0 %v733_v41  ;;  %v692_v36 = vld [vmem:[#allocation5 + $0x668] sm:$0xff]  ;;  %v694_v41 = vld [vmem:[#allocation5 + $0x678] sm:$0xff] }
 0x14a   : > { %921 = vmatprep.subr.mxu1 %v724_v61  ;;  %992 = vmatprep.subr.mxu0 %v726_v58  ;;  %v691_v61 = vld [vmem:[#allocation5 + $0x660] sm:$0xff]  ;;  %v693_v58 = vld [vmem:[#allocation5 + $0x670] sm:$0xff] }
 0x14b   : > { %922 = vmatpush2.msra.mxu1 %v723_v2  ;;  %993 = vmatpush2.msra.mxu0 %v725_v4  ;;  %v8893_v2 = vpop.permute.xlu0 %1293  ;;  %v684_v4 = vld [vmem:[#allocation5 + $0x628] sm:$0xff] }
 0x14c   : > { %923 = vmatprep.subr.mxu1 %v716_v12  ;;  %994 = vmatprep.subr.mxu0 %v718_v13  ;;  %v686_v12 = vld [vmem:[#allocation5 + $0x638] sm:$0xff]  ;;  %v683_v13 = vld [vmem:[#allocation5 + $0x620] sm:$0xff] }
 0x14d   : > { %924 = vmatpush2.msra.mxu1 %v715_v16  ;;  %995 = vmatpush2.msra.mxu0 %v717_v17  ;;  %v685_v16 = vld [vmem:[#allocation5 + $0x630] sm:$0xff]  ;;  %v676_v17 = vld [vmem:[#allocation5 + $0x5e8] sm:$0xff] }
 0x14e   : > { %925 = vmatprep.subr.mxu1 %v708_v19  ;;  %996 = vmatprep.subr.mxu0 %v710_v20  ;;  %v678_v19 = vld [vmem:[#allocation5 + $0x5f8] sm:$0xff]  ;;  %v675_v20 = vld [vmem:[#allocation5 + $0x5e0] sm:$0xff] }
 0x14f   : > { %926 = vmatpush2.msra.mxu1 %v707_v22  ;;  %997 = vmatpush2.msra.mxu0 %v709_v27  ;;  %v677_v22 = vld [vmem:[#allocation5 + $0x5f0] sm:$0xff]  ;;  %v8895_v27 = vpop.permute.xlu1 %1295 }
 0x150   : > { %927 = vmatprep.subr.mxu1 %v700_v28  ;;  %998 = vmatprep.subr.mxu0 %v702_v31  ;;  %v668_v28 = vld [vmem:[#allocation5 + $0x5a8] sm:$0xff]  ;;  %v670_v31 = vld [vmem:[#allocation5 + $0x5b8] sm:$0xff] }
 0x151   : > { %928 = vmatpush2.msra.mxu1 %v699_v34  ;;  %999 = vmatpush2.msra.mxu0 %v701_v40  ;;  %v667_v34 = vld [vmem:[#allocation5 + $0x5a0] sm:$0xff]  ;;  %v669_v40 = vld [vmem:[#allocation5 + $0x5b0] sm:$0xff] }
 0x152   : > { %929 = vmatprep.subr.mxu1 %v692_v36  ;;  %1000 = vmatprep.subr.mxu0 %v694_v41  ;;  %v8897_v36 = vpop.permute.xlu0 %1088  ;;  %v660_v41 = vld [vmem:[#allocation5 + $0x568] sm:$0xff] }
 0x153   : > { %930 = vmatpush2.msra.mxu1 %v691_v61  ;;  %1001 = vmatpush2.msra.mxu0 %v693_v58  ;;  %v662_v61 = vld [vmem:[#allocation5 + $0x578] sm:$0xff]  ;;  %v659_v58 = vld [vmem:[#allocation5 + $0x560] sm:$0xff] }
 0x154   : > { %931 = vmatprep.subr.mxu1 %v684_v4  ;;  %1002 = vmatprep.subr.mxu0 %v686_v12  ;;  %v661_v4 = vld [vmem:[#allocation5 + $0x570] sm:$0xff]  ;;  %v652_v12 = vld [vmem:[#allocation5 + $0x528] sm:$0xff] }
 0x155   : > { %932 = vmatpush2.msra.mxu1 %v683_v13  ;;  %1003 = vmatpush2.msra.mxu0 %v685_v16  ;;  %v654_v13 = vld [vmem:[#allocation5 + $0x538] sm:$0xff]  ;;  %v651_v16 = vld [vmem:[#allocation5 + $0x520] sm:$0xff] }
 0x156   : > { %933 = vmatprep.subr.mxu1 %v676_v17  ;;  %1004 = vmatprep.subr.mxu0 %v678_v19  ;;  %v653_v17 = vld [vmem:[#allocation5 + $0x530] sm:$0xff]  ;;  %v8899_v19 = vpop.permute.xlu1 %1090  ;;  %v8901_v3 = vpop.permute.xlu0 %1092 }
 0x157   : > { %934 = vmatpush2.msra.mxu1 %v675_v20  ;;  %1005 = vmatpush2.msra.mxu0 %v677_v22  ;;  %v644_v20 = vld [vmem:[#allocation5 + $0x4e8] sm:$0xff]  ;;  %v646_v22 = vld [vmem:[#allocation5 + $0x4f8] sm:$0xff] }
 0x158   : > { %935 = vmatprep.subr.mxu1 %v668_v28  ;;  %1006 = vmatprep.subr.mxu0 %v670_v31  ;;  %v643_v28 = vld [vmem:[#allocation5 + $0x4e0] sm:$0xff]  ;;  %v645_v31 = vld [vmem:[#allocation5 + $0x4f0] sm:$0xff] }
 0x159   : > { %936 = vmatpush2.msra.mxu1 %v667_v34  ;;  %1007 = vmatpush2.msra.mxu0 %v669_v40  ;;  %v636_v34 = vld [vmem:[#allocation5 + $0x4a8] sm:$0xff]  ;;  %v638_v40 = vld [vmem:[#allocation5 + $0x4b8] sm:$0xff] }
 0x15a   : > { %937 = vmatprep.subr.mxu1 %v660_v41  ;;  %1008 = vmatprep.subr.mxu0 %v662_v61  ;;  %v635_v41 = vld [vmem:[#allocation5 + $0x4a0] sm:$0xff]  ;;  %v637_v61 = vld [vmem:[#allocation5 + $0x4b0] sm:$0xff]  ;;  %v8903_v30 = vpop.permute.xlu1 %1094  ;;  %v8905_v39 = vpop.permute.xlu0 %1927 }
 0x15b   : > { %938 = vmatpush2.msra.mxu1 %v659_v58  ;;  %1009 = vmatpush2.msra.mxu0 %v661_v4  ;;  %v628_v58 = vld [vmem:[#allocation5 + $0x468] sm:$0xff]  ;;  %v630_v4 = vld [vmem:[#allocation5 + $0x478] sm:$0xff] }
 0x15c   : > { %939 = vmatprep.subr.mxu1 %v652_v12  ;;  %1010 = vmatprep.subr.mxu0 %v654_v13  ;;  %v627_v12 = vld [vmem:[#allocation5 + $0x460] sm:$0xff]  ;;  %v629_v13 = vld [vmem:[#allocation5 + $0x470] sm:$0xff] }
 0x15d   : > { %940 = vmatpush2.msra.mxu1 %v651_v16  ;;  %1011 = vmatpush2.msra.mxu0 %v653_v17  ;;  %v620_v16 = vld [vmem:[#allocation5 + $0x428] sm:$0xff]  ;;  %v622_v17 = vld [vmem:[#allocation5 + $0x438] sm:$0xff] }
 0x15e   : > { %941 = vmatprep.subr.mxu1 %v644_v20  ;;  %1012 = vmatprep.subr.mxu0 %v646_v22  ;;  %v619_v20 = vld [vmem:[#allocation5 + $0x420] sm:$0xff]  ;;  %v621_v22 = vld [vmem:[#allocation5 + $0x430] sm:$0xff] }
 0x15f   : > { %942 = vmatpush2.msra.mxu1 %v643_v28  ;;  %1013 = vmatpush2.msra.mxu0 %v645_v31  ;;  %v1953_v28 = vmul.f32 0.0, %v8905_v39  ;;  %v8910_v31 = vpop.permute.xlu1 %1729 }
 0x160   : > { %943 = vmatprep.subr.mxu1 %v636_v34  ;;  %1014 = vmatprep.subr.mxu0 %v638_v40  ;;  %v1755_v34 = vmul.f32 0.0, %v8910_v31  ;;  %v10853_v40 = vmov 0.0  }
 0x161   : > { %944 = vmatpush2.msra.mxu1 %v635_v41  ;;  %1015 = vmatpush2.msra.mxu0 %v637_v61  ;;  %v8916_v41 = vpop.permute.xlu0 %1591 }
 0x162   : > { %945 = vmatprep.subr.mxu1 %v628_v58  ;;  %1016 = vmatprep.subr.mxu0 %v630_v4  ;;  %v1617_v61 = vmul.f32 0.0, %v8916_v41  ;;  %v1930_v4 = vsel %vm1151_vm2, %v8808_v11, %v8817_v51 }
 0x163   : > { %946 = vmatpush2.msra.mxu1 %v627_v12  ;;  %1017 = vmatpush2.msra.mxu0 %v629_v13 }
 0x164   : > { %947 = vmatprep.subr.mxu1 %v620_v16  ;;  %1018 = vmatprep.subr.mxu0 %v622_v17  ;;  %v8425_v16 = vmov 0   ;;  %v1732_v17 = vsel %vm1098_vm3, %v8813_v37, %v8825_v44 }
 0x165   : > { %948 = vmatpush2.msra.mxu1 %v619_v20  ;;  %1019 = vmatpush2.msra.mxu0 %v621_v22 }
 0x166   : > { %950 = vmatmul.mubr.f32.vlgmr.msra.gmra.mxu1 %v8859_v1  ;;  %1021 = vmatmul.mubr.f32.vlgmr.msra.gmra.mxu0 %v8859_v1 }
 0x167   : > { %1979 = vrot.lane.b32.xlu1 %v1953_v28, %s8421_s19  ;;  %2150 = vmatprep.mubr.f32.mxu1 %v10853_v40 }
 0x168   : > { %2221 = vmatprep.mubr.f32.mxu0 %v10853_v40  ;;  %8248 = vset.pattern.permute.xlu0 %v8425_v16 }
 0x16b   : > { %1781 = vrot.lane.b32.xlu1 %v1755_v34, %s8420_s30 }
 0x16f   : > { %1643 = vrot.lane.b32.xlu1 %v1617_v61, %s8423_s5  ;;  %v1594_v61 = vsel %vm1490_vm4, %v8829_v46, %v8823_v14 }
 0x1e5   : > { %v8921_v58 = vpop.f32.mrf.mxu1  ;;  %v8923_v1 = vpop.f32.mrf.mxu0 }
 0x1e6   : > { %1829 = vrot.lane.b32.xlu0 %v8923_v1, %s8424_s17  ;;  %1825 = vrot.lane.b32.xlu1 %v8921_v58, %s8424_s17  ;;  %v1947_v12 = vmul.f32 %v1930_v4, %v8923_v1  ;;  %v1945_v20 = vmul.f32 %v8800_v38, %v8921_v58  ;;  %v1749_v22 = vmul.f32 %v1732_v17, %v8923_v1 }
 0x1e7   : > { %v8936_v13 = vpop.f32.mrf.mxu1  ;;  %v1747_v28 = vmul.f32 %v8821_v43, %v8921_v58  ;;  %v1609_v34 = vmul.f32 %v8819_v42, %v8921_v58  ;;  %v1299_v4 = vsel %vm1151_vm2, %v8831_v47, %v8843_v55  ;;  %v1438_v17 = vsel %vm1437_vm5, %v8835_v50, %v8827_v45 }
 0x1e8   : > { %v1316_v16 = vmul.f32 %v1299_v4, %v8921_v58  ;;  %v1099_v47 = vsel %vm1098_vm3, %v8847_v57, %v8845_v56  ;;  %v1440_v50 = vsel %vm1437_vm5, %v8839_v53, %v8881_v9  ;;  %v1593_v57 = vsel %vm1490_vm4, %v8819_v42, %v8829_v46 }
 0x1e9   : > { %v1101_v42 = vsel %vm1098_vm3, %v8853_v60, %v8897_v36 }
 0x1ea   : > { %1196 = vrot.lane.b32.xlu0 %v8921_v58, %s8424_s17  ;;  %1967 = vrot.lane.b32.xlu1 %v1947_v12, %s8421_s19  ;;  %v1611_v12 = vmul.f32 %v1594_v61, %v8923_v1  ;;  %v1301_v61 = vsel %vm1151_vm2, %v8841_v54, %v8885_v24  ;;  %v1118_v46 = vmul.f32 %v1101_v42, %v8923_v1 }
 0x1eb   : > { %v1318_v4 = vmul.f32 %v1301_v61, %v8923_v1  ;;  %v1734_v42 = vsel %vm1098_vm3, %v8865_v15, %v8867_v25 }
 0x1ee   : > { %1200 = vrot.lane.b32.xlu0 %v8923_v1, %s8424_s17  ;;  %1827 = vrot.lane.b32.xlu1 %v8936_v13, %s8424_s17 }
 0x1f2   : > { %1963 = vrot.lane.b32.xlu0 %v1945_v20, %s8421_s19  ;;  %1769 = vrot.lane.b32.xlu1 %v1749_v22, %s8420_s30  ;;  %v1455_v20 = vmul.f32 %v1438_v17, %v8921_v58  ;;  %v1116_v22 = vmul.f32 %v1099_v47, %v8921_v58 }
 0x1f6   : > { %1765 = vrot.lane.b32.xlu0 %v1747_v28, %s8420_s30  ;;  %1627 = vrot.lane.b32.xlu1 %v1609_v34, %s8423_s5  ;;  %v8977_v28 = vpop.f32.mrf.mxu0  ;;  %v1457_v34 = vmul.f32 %v1440_v50, %v8923_v1  ;;  %v1300_v50 = vsel %vm1151_vm2, %v8843_v55, %v8841_v54  ;;  %v1102_v54 = vsel %vm1098_vm3, %v8897_v36, %v8899_v19 }
 0x1f7   : > { %v1119_v55 = vmul.f32 %v1102_v54, %v8977_v28  ;;  %v1443_v54 = vsel %vm1437_vm5, %v8889_v18, %v8891_v35 }
 0x1fa   : > { %1631 = vrot.lane.b32.xlu0 %v1611_v12, %s8423_s5  ;;  %1335 = vrot.lane.b32.xlu1 %v1316_v16, %s8421_s19  ;;  %v1610_v12 = vmul.f32 %v1593_v57, %v8936_v13  ;;  %v1439_v16 = vsel %vm1437_vm5, %v8827_v45, %v8839_v53  ;;  %v1931_v45 = vsel %vm1151_vm2, %v8817_v51, %v8851_v59 }
 0x1fb   : > { %v1456_v17 = vmul.f32 %v1439_v16, %v8936_v13  ;;  %v1948_v47 = vmul.f32 %v1931_v45, %v8977_v28  ;;  %v1733_v57 = vsel %vm1098_vm3, %v8825_v44, %v8865_v15  ;;  %v1932_v44 = vsel %vm1151_vm2, %v8851_v59, %v8855_v62  ;;  %v1436_v59 = vpop.permute.xlu1 %1435 }
 0x1fc   : > { %v1750_v61 = vmul.f32 %v1733_v57, %v8977_v28  ;;  %v1596_v45 = vsel %vm1490_vm4, %v8869_v32, %v8871_v52 }
 0x1fe   : > { %1474 = vrot.lane.b32.xlu0 %v1455_v20, %s8422_s3  ;;  %1198 = vrot.lane.b32.xlu1 %v8936_v13, %s8424_s17  ;;  %v1929_v20 = vsel %vm1151_vm2, %v8800_v38, %v8808_v11  ;;  %v1441_v38 = vsel %vm1437_vm5, %v8881_v9, %v8883_v23  ;;  %v1317_v9 = vmul.f32 %v1300_v50, %v8936_v13 }
 0x1ff   : > { %v1946_v53 = vmul.f32 %v1929_v20, %v8936_v13  ;;  %v1458_v51 = vmul.f32 %v1441_v38, %v8977_v28  ;;  %v1442_v20 = vsel %vm1437_vm5, %v8883_v23, %v8889_v18  ;;  %v1736_v23 = vsel %vm1098_vm3, %v8873_v6, %v8875_v21 }
 0x202   : > { %1831 = vrot.lane.b32.xlu0 %v8977_v28, %s8424_s17  ;;  %1135 = vrot.lane.b32.xlu1 %v1116_v22, %s8420_s30  ;;  %v1731_v22 = vsel %vm1098_vm3, %v8821_v43, %v8813_v37  ;;  %v1302_v37 = vsel %vm1151_vm2, %v8885_v24, %v8887_v5 }
 0x203   : > { %v1748_v11 = vmul.f32 %v1731_v22, %v8936_v13  ;;  %v1319_v43 = vmul.f32 %v1302_v37, %v8977_v28  ;;  %v1303_v22 = vsel %vm1151_vm2, %v8887_v5, %v8893_v2  ;;  %v1598_v5 = vsel %vm1490_vm4, %v8877_v29, %v8879_v49 }
 0x206   : > { %1478 = vrot.lane.b32.xlu0 %v1457_v34, %s8422_s3  ;;  %1202 = vrot.lane.b32.xlu1 %v8977_v28, %s8424_s17  ;;  %v1100_v34 = vsel %vm1098_vm3, %v8845_v56, %v8853_v60  ;;  %v1595_v56 = vsel %vm1490_vm4, %v8823_v14, %v8869_v32  ;;  %v1934_v14 = vsel %vm1151_vm2, %v8857_v63, %v8861_v7 }
 0x207   : > { %v1117_v24 = vmul.f32 %v1100_v34, %v8936_v13  ;;  %v1612_v60 = vmul.f32 %v1595_v56, %v8977_v28  ;;  %v1298_v56 = vpop.permute.xlu0 %1297 }
 0x20a   : > { %1339 = vrot.lane.b32.xlu0 %v1318_v4, %s8421_s19  ;;  %1629 = vrot.lane.b32.xlu1 %v1610_v12, %s8423_s5 }
 0x20e   : > { %1139 = vrot.lane.b32.xlu0 %v1118_v46, %s8420_s30  ;;  %1476 = vrot.lane.b32.xlu1 %v1456_v17, %s8422_s3 }
 0x212   : > { %1965 = vrot.lane.b32.xlu0 %v1946_v53, %s8421_s19  ;;  %1969 = vrot.lane.b32.xlu1 %v1948_v47, %s8421_s19  ;;  %v9094_v53 = vpop.permute.xlu1 %1096 }
 0x216   : > { %1767 = vrot.lane.b32.xlu0 %v1748_v11, %s8420_s30  ;;  %1480 = vrot.lane.b32.xlu1 %v1458_v51, %s8422_s3  ;;  %v9106_v38 = vpop.permute.xlu1 %1841  ;;  %v1103_v51 = vsel %vm1098_vm3, %v8899_v19, %v8901_v3  ;;  %v1933_v19 = vsel %vm1151_vm2, %v8855_v62, %v8857_v63  ;;  %v1304_v62 = vsel %vm1151_vm2, %v8893_v2, %v8895_v27 }
 0x21a   : > { %1341 = vrot.lane.b32.xlu1 %v1319_v43, %s8421_s19  ;;  %1337 = vrot.lane.b32.xlu0 %v1317_v9, %s8421_s19  ;;  %v9120_v43 = vpop.permute.xlu1 %1333 }
 0x21e   : > { %1141 = vrot.lane.b32.xlu1 %v1119_v55, %s8420_s30  ;;  %1137 = vrot.lane.b32.xlu0 %v1117_v24, %s8420_s30  ;;  %v9126_v34 = vpop.permute.xlu1 %1133 }
 0x222   : > { %1771 = vrot.lane.b32.xlu0 %v1750_v61, %s8420_s30  ;;  %v9141_v57 = vpop.permute.xlu1 %1979  ;;  %v1735_v61 = vsel %vm1098_vm3, %v8867_v25, %v8873_v6  ;;  %v1104_v25 = vsel %vm1098_vm3, %v8901_v3, %v8903_v30 }
 0x226   : > { %v9058_v36 = vpop.f32.mrf.mxu1  ;;  %1633 = vrot.lane.b32.xlu0 %v1612_v60, %s8423_s5  ;;  %v9063_v4 = vpop.f32.mrf.mxu0  ;;  %v1597_v60 = vsel %vm1490_vm4, %v8871_v52, %v8877_v29  ;;  %v1935_v29 = vsel %vm1151_vm2, %v8861_v7, %v8905_v39 }
 0x227   : > { %1833 = vrot.lane.b32.xlu1 %v9058_v36, %s8424_s17  ;;  %v1949_v12 = vmul.f32 %v1932_v44, %v9058_v36  ;;  %v1951_v16 = vmul.f32 %v1934_v14, %v9063_v4  ;;  %v1751_v17 = vmul.f32 %v1734_v42, %v9058_v36  ;;  %v1459_v15 = vmul.f32 %v1442_v20, %v9058_v36  ;;  %v9161_v2 = vpop.permute.xlu1 %1781  ;;  %v9164_v14 = vpop.permute.xlu0 %1194 }
 0x228   : > { %v9082_v46 = vpop.f32.mrf.mxu1  ;;  %v1613_v47 = vmul.f32 %v1596_v45, %v9058_v36  ;;  %v1320_v32 = vmul.f32 %v1303_v22, %v9058_v36  ;;  %v1753_v11 = vmul.f32 %v1736_v23, %v9063_v4  ;;  %v1120_v50 = vmul.f32 %v1103_v51, %v9058_v36  ;;  %v9124_v9 = vpop.f32.mrf.mxu0  ;;  %v3217_v45 = vld [vmem:[#allocation7 + $0x40] ss:$8 sm:$0xf] }
 0x229   : > { %v1615_v37 = vmul.f32 %v1598_v5, %v9063_v4  ;;  %v1950_v55 = vmul.f32 %v1933_v19, %v9082_v46  ;;  %v1460_v24 = vmul.f32 %v1443_v54, %v9082_v46  ;;  %v1752_v63 = vmul.f32 %v1735_v61, %v9082_v46  ;;  %v3020_v19 = vld [vmem:[#allocation7 + $0x6] ss:$8 sm:$0xf] }
 0x22a   : > { %1204 = vrot.lane.b32.xlu0 %v9058_v36, %s8424_s17  ;;  %v1321_v18 = vmul.f32 %v1304_v62, %v9082_v46  ;;  %v1614_v6 = vmul.f32 %v1597_v60, %v9082_v46  ;;  %v1121_v44 = vmul.f32 %v1104_v25, %v9082_v46  ;;  %v1952_v42 = vmul.f32 %v1935_v29, %v9124_v9  ;;  %v3021_v54 = vld [vmem:[#allocation7 + $0x6] ss:$8 sm:$0xf0]  ;;  %v2883_v29 = vld [vmem:[#allocation7 + $0x5] ss:$8 sm:$0xf] }
 0x22b   : > { %1837 = vrot.lane.b32.xlu1 %v9063_v4, %s8424_s17  ;;  %v9172_v3 = vpop.permute.xlu1 %1643  ;;  %v9233_v61 = vor.u32 %v3021_v54, %v3020_v19 }
 0x22e   : > { %1971 = vrot.lane.b32.xlu0 %v1949_v12, %s8421_s19  ;;  %v1444_v12 = vsel %vm1437_vm5, %v8891_v35, %v1436_v59  ;;  %v1462_v35 = vmul.f32 %v1436_v59, %v9124_v9  ;;  %v1599_v59 = vsel %vm1490_vm4, %v8879_v49, %v8916_v41 }
 0x22f   : > { %1975 = vrot.lane.b32.xlu1 %v1951_v16, %s8421_s19  ;;  %v1461_v52 = vmul.f32 %v1444_v12, %v9063_v4  ;;  %v9179_v16 = vpop.permute.xlu0 %1472  ;;  %v1616_v23 = vmul.f32 %v1599_v59, %v9124_v9 }
 0x232   : > { %1835 = vrot.lane.b32.xlu0 %v9082_v46, %s8424_s17 }
 0x233   : > { %1773 = vrot.lane.b32.xlu1 %v1751_v17, %s8420_s30  ;;  %v1737_v17 = vsel %vm1098_vm3, %v8875_v21, %v8910_v31 }
 0x234   : > { %v1754_v7 = vmul.f32 %v1737_v17, %v9124_v9 }
 0x236   : > { %1482 = vrot.lane.b32.xlu0 %v1459_v15, %s8422_s3  ;;  %v3218_v15 = vld [vmem:[#allocation7 + $0x40] ss:$8 sm:$0xf0] }
 0x237   : > { %1635 = vrot.lane.b32.xlu1 %v1613_v47, %s8423_s5  ;;  %v1323_v47 = vmul.f32 %v1298_v56, %v9124_v9  ;;  %v9199_v21 = vor.u32 %v3218_v15, %v3217_v45  ;;  %v3031_v15 = vrot.slane %v9233_v61, %v8635_v48 }
 0x239   : > { %v3224_v49 = vrot.slane %v9199_v21, %v8628_v33  ;;  %v3232_v25 = vrot.slane %v9199_v21, %v8646_v10 }
 0x23a   : > { %1343 = vrot.lane.b32.xlu0 %v1320_v32, %s8421_s19  ;;  %v1123_v32 = vmul.f32 %v9094_v53, %v9124_v9 }
 0x23b   : > { %1777 = vrot.lane.b32.xlu1 %v1753_v11, %s8420_s30  ;;  %v1305_v11 = vsel %vm1151_vm2, %v8895_v27, %v1298_v56  ;;  %v1028_v56 = vld [vmem:[%s10819_s4] sm:$0xff] }
 0x23c   : > { %v1322_v5 = vmul.f32 %v1305_v11, %v9063_v4  ;;  %v2731_v11 = vld [vmem:[#allocation7 + $0x3] ss:$8 sm:$0xf0] }
 0x23e   : > { %1143 = vrot.lane.b32.xlu0 %v1120_v50, %s8420_s30  ;;  %v3228_v50 = vrot.slane %v9199_v21, %v8635_v48 }
 0x23f   : > { %1639 = vrot.lane.b32.xlu1 %v1615_v37, %s8423_s5 }
 0x242   : > { %1839 = vrot.lane.b32.xlu0 %v9124_v9, %s8424_s17 }
 0x243   : > { %1206 = vrot.lane.b32.xlu1 %v9082_v46, %s8424_s17 }
 0x246   : > { %1973 = vrot.lane.b32.xlu0 %v1950_v55, %s8421_s19  ;;  %v1105_v55 = vsel %vm1098_vm3, %v8903_v30, %v9094_v53  ;;  %v3027_v30 = vrot.slane %v9233_v61, %v8628_v33 }
 0x247   : > { %1484 = vrot.lane.b32.xlu1 %v1460_v24, %s8422_s3  ;;  %v3236_v24 = vrot.slane %v9199_v21, %v8692_v26 }
 0x24a   : > { %1775 = vrot.lane.b32.xlu0 %v1752_v63, %s8420_s30 }
 0x24b   : > { %1345 = vrot.lane.b32.xlu1 %v1321_v18, %s8421_s19  ;;  %v1122_v18 = vmul.f32 %v1105_v55, %v9063_v4 }
 0x24e   : > { %1637 = vrot.lane.b32.xlu0 %v1614_v6, %s8423_s5  ;;  %v3035_v6 = vrot.slane %v9233_v61, %v8646_v10 }
 0x24f   : > { %1145 = vrot.lane.b32.xlu1 %v1121_v44, %s8420_s30 }
 0x252   : > { %1486 = vrot.lane.b32.xlu0 %v1461_v52, %s8422_s3  ;;  %v3240_v52 = vrot.slane %v9199_v21, %v8716_v0 }
 0x253   : > { %1210 = vrot.lane.b32.xlu1 %v9124_v9, %s8424_s17 }
 0x256   : > { %1977 = vrot.lane.b32.xlu0 %v1952_v42, %s8421_s19  ;;  %v2884_v42 = vld [vmem:[#allocation7 + $0x5] ss:$8 sm:$0xf0] }
 0x257   : > { %1488 = vrot.lane.b32.xlu1 %v1462_v35, %s8422_s3  ;;  %v3043_v35 = vrot.slane %v9233_v61, %v8716_v0  ;;  %v9270_v45 = vor.u32 %v2884_v42, %v2883_v29 }
 0x258   : > { %v9188_v20 = vpop.permute.xlu0 %1829  ;;  %v9190_v39 = vpop.permute.xlu1 %1825 }
 0x259   : > { %v2890_v55 = vrot.slane %v9270_v45, %v8628_v33 }
 0x25a   : > { %1779 = vrot.lane.b32.xlu0 %v1754_v7, %s8420_s30 }
 0x25b   : > { %1349 = vrot.lane.b32.xlu1 %v1323_v47, %s8421_s19  ;;  %v2894_v47 = vrot.slane %v9270_v45, %v8635_v48 }
 0x25c   : > { %v9201_v31 = vpop.permute.xlu0 %1196  ;;  %v9203_v22 = vpop.permute.xlu1 %1967 }
 0x25e   : > { %1641 = vrot.lane.b32.xlu0 %v1616_v23, %s8423_s5 }
 0x25f   : > { %1149 = vrot.lane.b32.xlu1 %v1123_v32, %s8420_s30  ;;  %v2730_v32 = vld [vmem:[#allocation7 + $0x3] ss:$8 sm:$0xf] }
 0x260   : > { %v9214_v41 = vpop.permute.xlu0 %1200  ;;  %v9216_v51 = vpop.permute.xlu1 %1827 }
 0x262   : > { %1347 = vrot.lane.b32.xlu0 %v1322_v5, %s8421_s19  ;;  %v2902_v5 = vrot.slane %v9270_v45, %v8692_v26 }
 0x263   : > { %3253 = vrot.lane.b32.xlu1 %v3224_v49, %s8420_s30  ;;  %v3039_v49 = vrot.slane %v9233_v61, %v8692_v26 }
 0x264   : > { %v1964_v37 = vpop.permute.xlu0 %1963  ;;  %v9223_v27 = vpop.permute.xlu1 %1769 }
 0x266   : > { %1208 = vrot.lane.b32.xlu0 %v9063_v4, %s8424_s17 }
 0x267   : > { %3255 = vrot.lane.b32.xlu1 %v3228_v50, %s8420_s30  ;;  %v9288_v50 = vor.u32 %v2731_v11, %v2730_v32  ;;  %v1844_v32 = vsel %vm1212_vm6, %v9216_v51, %v9188_v20 }
 0x268   : > { %v9235_v62 = vpop.permute.xlu0 %1765  ;;  %v9237_v63 = vpop.permute.xlu1 %1627 }
 0x269   : > { %v2753_v11 = vrot.slane %v9288_v50, %v8716_v0 }
 0x26a   : > { %1147 = vrot.lane.b32.xlu0 %v1122_v18, %s8420_s30 }
 0x26b   : > { %3259 = vrot.lane.b32.xlu1 %v3236_v24, %s8420_s30  ;;  %v2737_v24 = vrot.slane %v9288_v50, %v8628_v33 }
 0x26c   : > { %v9247_v53 = vpop.permute.xlu0 %1631  ;;  %v9249_v60 = vpop.permute.xlu1 %1335 }
 0x26e   : > { %2079 = vperm.xlu0 %8248, %v1028_v56  }
 0x26f   : > { %3056 = vrot.lane.b32.xlu1 %v3027_v30, %s8421_s19  ;;  %v2898_v30 = vrot.slane %v9270_v45, %v8646_v10 }
 0x270   : > { %v9256_v44 = vpop.permute.xlu0 %1474  ;;  %v9258_v12 = vpop.permute.xlu1 %1198 }
 0x272   : > { %3257 = vrot.lane.b32.xlu0 %v3232_v25, %s8420_s30  ;;  %v2745_v25 = vrot.slane %v9288_v50, %v8646_v10 }
 0x273   : > { %3060 = vrot.lane.b32.xlu1 %v3035_v6, %s8421_s19 }
 0x274   : > { %v9266_v17 = vpop.permute.xlu0 %1831  ;;  %v9268_v7 = vpop.permute.xlu1 %1135 }
 0x276   : > { %3261 = vrot.lane.b32.xlu0 %v3240_v52, %s8420_s30 }
 0x277   : > { %3064 = vrot.lane.b32.xlu1 %v3043_v35, %s8421_s19  ;;  %v2906_v35 = vrot.slane %v9270_v45, %v8716_v0 }
 0x278   : > { %v9278_v59 = vpop.permute.xlu0 %1478  ;;  %v9280_v23 = vpop.permute.xlu1 %1202 }
 0x27a   : > { %3058 = vrot.lane.b32.xlu0 %v3031_v15, %s8421_s19  ;;  %v2593_v15 = vld [vmem:[#allocation7 + $0x2] ss:$8 sm:$0xf] }
 0x27b   : > { %2921 = vrot.lane.b32.xlu1 %v2894_v47, %s8422_s3  ;;  %v2594_v47 = vld [vmem:[#allocation7 + $0x2] ss:$8 sm:$0xf0] }
 0x27c   : > { %v9290_v19 = vpop.permute.xlu0 %1339  ;;  %v1630_v54 = vpop.permute.xlu1 %1629 }
 0x27e   : > { %3062 = vrot.lane.b32.xlu0 %v3039_v49, %s8421_s19  ;;  %v1843_v49 = vsel %vm1212_vm6, %v9190_v39, %v9216_v51  ;;  %v1646_v39 = vsel %vm1437_vm5, %v1630_v54, %v9247_v53 }
 0x27f   : > { %2925 = vrot.lane.b32.xlu1 %v2902_v5, %s8422_s3 }
 0x280   : > { %v9298_v18 = vpop.permute.xlu0 %1139  ;;  %v9300_v56 = vpop.permute.xlu1 %1476 }
 0x282   : > { %2919 = vrot.lane.b32.xlu0 %v2890_v55, %s8422_s3 }
 0x283   : > { %2766 = vrot.lane.b32.xlu1 %v2737_v24, %s8423_s5 }
 0x284   : > { %v1966_v6 = vpop.permute.xlu0 %1965  ;;  %v9308_v52 = vpop.permute.xlu1 %1969 }
 0x285   : > { %v1982_v29 = vsel %vm1098_vm3, %v1966_v6, %v9203_v22  ;;  %v1981_v42 = vsel %vm1098_vm3, %v1964_v37, %v1966_v6 }
 0x286   : > { %2100 = vmatprep.subr.mxu1 %v1982_v29  ;;  %2923 = vrot.lane.b32.xlu0 %v2898_v30, %s8422_s3  ;;  %v9331_v30 = vor.u32 %v2594_v47, %v2593_v15  ;;  %v2396_v29 = vld [vmem:[#allocation7] ss:$8 sm:$0xf]  ;;  %v1492_v47 = vsel %vm1490_vm4, %v9256_v44, %v9300_v56 }
 0x287   : > { %2101 = vmatpush1.msra.mxu1 %v1981_v42  ;;  %2770 = vrot.lane.b32.xlu1 %v2745_v25, %s8423_s5  ;;  %v2741_v25 = vrot.slane %v9288_v50, %v8635_v48  ;;  %v2397_v42 = vld [vmem:[#allocation7] ss:$8 sm:$0xf0] }
 0x288   : > { %2102 = vmatprep.subr.mxu1 %v1844_v32  ;;  %v1768_v37 = vpop.permute.xlu0 %1767  ;;  %v9325_v5 = vpop.permute.xlu1 %1480  ;;  %v2604_v51 = vrot.slane %v9331_v30, %v8635_v48 }
 0x289   : > { %2103 = vmatpush1.msra.mxu1 %v1843_v49  ;;  %v1784_v55 = vsel %vm1151_vm2, %v1768_v37, %v9223_v27  ;;  %v1783_v24 = vsel %vm1151_vm2, %v9235_v62, %v1768_v37  ;;  %v1645_v62 = vsel %vm1437_vm5, %v9237_v63, %v1630_v54  ;;  %v2612_v63 = vrot.slane %v9331_v30, %v8692_v26 }
 0x28a   : > { %2104 = vmatprep.subr.mxu1 %v1784_v55  ;;  %2927 = vrot.lane.b32.xlu0 %v2906_v35, %s8422_s3  ;;  %v2749_v35 = vrot.slane %v9288_v50, %v8692_v26  ;;  %v9358_v54 = vor.u32 %v2397_v42, %v2396_v29  ;;  %v1351_v49 = vsel %vm1098_vm3, %v9120_v43, %v9249_v60 }
 0x28b   : > { %2105 = vmatpush1.msra.mxu1 %v1783_v24  ;;  %2774 = vrot.lane.b32.xlu1 %v2753_v11, %s8423_s5  ;;  %v1491_v11 = vsel %vm1490_vm4, %v9179_v16, %v9256_v44  ;;  %v2600_v55 = vrot.slane %v9331_v30, %v8628_v33  ;;  %v1214_v16 = vsel %vm1212_vm6, %v9201_v31, %v9258_v12 }
 0x28c   : > { %2106 = vmatprep.subr.mxu1 %v1646_v39  ;;  %v9341_v6 = vpop.permute.xlu0 %1337  ;;  %v9349_v15 = vpop.permute.xlu1 %1341  ;;  %v2403_v44 = vrot.slane %v9358_v54, %v8628_v33  ;;  %v1213_v43 = vsel %vm1212_vm6, %v9164_v14, %v9201_v31  ;;  %v9391_v39 = vld [vmem:[%s10854_s23] sm:$0xff]  ;;  %v1152_v33 = vsel %vm1151_vm2, %v9126_v34, %v9268_v7  ;;  %v2608_v14 = vrot.slane %v9331_v30, %v8646_v10 }
 0x28d   : > { %2107 = vmatpush1.msra.mxu1 %v1645_v62  ;;  %v1352_v37 = vsel %vm1098_vm3, %v9249_v60, %v9341_v6  ;;  %v2411_v31 = vrot.slane %v9358_v54, %v8646_v10  ;;  %v2616_v34 = vrot.slane %v9331_v30, %v8716_v0  ;;  %v2407_v42 = vrot.slane %v9358_v54, %v8635_v48 }
 0x28e   : > { %2108 = vmatprep.subr.mxu1 %v8936_v13  ;;  %2768 = vrot.lane.b32.xlu0 %v2741_v25, %s8423_s5  ;;  %v2415_v48 = vrot.slane %v9358_v54, %v8692_v26 }
 0x28f   : > { %2109 = vmatpush1.msra.mxu1 %v8921_v58  ;;  %2631 = vrot.lane.b32.xlu1 %v2604_v51, %s8420_s30 }
 0x290   : > { %2110 = vmatprep.subr.mxu1 %v1492_v47  ;;  %v9360_v32 = vpop.permute.xlu0 %1137  ;;  %v9383_v60 = vpop.permute.xlu1 %1141 }
 0x291   : > { %2111 = vmatpush1.msra.mxu1 %v1491_v11  ;;  %v1153_v25 = vsel %vm1151_vm2, %v9268_v7, %v9360_v32  ;;  %v2419_v7 = vrot.slane %v9358_v54, %v8716_v0  ;;  %v1983_v11 = vsel %vm1098_vm3, %v9203_v22, %v9308_v52  ;;  %v1845_v22 = vsel %vm1212_vm6, %v9188_v20, %v9266_v17 }
 0x292   : > { %2112 = vmatprep.subr.mxu1 %v1352_v37  ;;  %2772 = vrot.lane.b32.xlu0 %v2749_v35, %s8423_s5  ;;  %v3248_v35 = vrot.slane %v9199_v21, %v8725_v8 }
 0x293   : > { %2113 = vmatpush1.msra.mxu1 %v1351_v49  ;;  %2635 = vrot.lane.b32.xlu1 %v2612_v63, %s8420_s30  ;;  %v10855_v49 = vld [vmem:[#allocation15_spill] sm:$0xff] }
 0x294   : > { %2114 = vmatprep.subr.mxu1 %v1214_v16  ;;  %v1772_v24 = vpop.permute.xlu0 %1771 }
 0x295   : > { %2115 = vmatpush1.msra.mxu1 %v1213_v43  ;;  %v1785_v43 = vsel %vm1151_vm2, %v9223_v27, %v1772_v24 }
 0x296   : > { %2116 = vmatprep.subr.mxu1 %v1153_v25  ;;  %2629 = vrot.lane.b32.xlu0 %v2600_v55, %s8420_s30  ;;  %v3047_v55 = vrot.slane %v9233_v61, %v10855_v49  ;;  %v10856_v25 = vld [vmem:[#allocation16_spill] sm:$0xff] }
 0x297   : > { %2117 = vmatpush1.msra.mxu1 %v1152_v33  ;;  %2432 = vrot.lane.b32.xlu1 %v2403_v44, %s8421_s19  ;;  %v3244_v44 = vrot.slane %v9199_v21, %v10855_v49  ;;  %v3055_v20 = vrot.slane %v9233_v61, %v10856_v25 }
 0x298   : > { %7620 = vmatmul.mubr.msk.f32.vlgmr.msra.gmra.mxu1 %vm2082_vm7, %v9391_v39  ;;  %v1634_v51 = vpop.permute.xlu0 %1633 }
 0x299   : > { %v9404_v62 = vpop.permute.xlu1 %1833  ;;  %2292 = vmatprep.mubr.f32.mxu1 %v10853_v40  ;;  %v1647_v27 = vsel %vm1437_vm5, %v9247_v53, %v1634_v51  ;;  %v3051_v53 = vrot.slane %v9233_v61, %v8725_v8  ;;  %v1353_v61 = vsel %vm1098_vm3, %v9341_v6, %v9290_v19  ;;  %v1155_v6 = vsel %vm1151_vm2, %v9298_v18, %v9383_v60 }
 0x29a   : > { %2633 = vrot.lane.b32.xlu0 %v2608_v14, %s8420_s30  ;;  %v1846_v37 = vsel %vm1212_vm6, %v9266_v17, %v9404_v62 }
 0x29b   : > { %2436 = vrot.lane.b32.xlu1 %v2411_v31, %s8421_s19  ;;  %v3252_v31 = vrot.slane %v9199_v21, %v10856_v25  ;;  %v1494_v21 = vsel %vm1490_vm4, %v9278_v59, %v9325_v5 }
 0x29c   : > { %v9413_v29 = vpop.permute.xlu0 %1204 }
 0x29d   : > { %v9415_v10 = vpop.permute.xlu1 %1837 }
 0x29e   : > { %2637 = vrot.lane.b32.xlu0 %v2616_v34, %s8420_s30 }
 0x29f   : > { %2440 = vrot.lane.b32.xlu1 %v2419_v7, %s8421_s19 }
 0x2a0   : > { %v9423_v47 = vpop.permute.xlu0 %1971 }
 0x2a1   : > { %v9425_v63 = vpop.permute.xlu1 %1975  ;;  %v1984_v0 = vsel %vm1098_vm3, %v9308_v52, %v9423_v47 }
 0x2a2   : > { %2171 = vmatprep.subr.mxu0 %v1984_v0  ;;  %2434 = vrot.lane.b32.xlu0 %v2407_v42, %s8421_s19  ;;  %v2757_v42 = vrot.slane %v9288_v50, %v10855_v49 }
 0x2a3   : > { %2172 = vmatpush1.msra.mxu0 %v1983_v11  ;;  %3265 = vrot.lane.b32.xlu1 %v3248_v35, %s8420_s30  ;;  %v1354_v35 = vsel %vm1098_vm3, %v9290_v19, %v9349_v15  ;;  %v2765_v19 = vrot.slane %v9288_v50, %v10856_v25 }
 0x2a4   : > { %2173 = vmatprep.subr.mxu0 %v1846_v37  ;;  %v9442_v16 = vpop.permute.xlu0 %1835 }
 0x2a5   : > { %v9447_v52 = vpop.permute.xlu1 %1773  ;;  %2174 = vmatpush1.msra.mxu0 %v1845_v22  ;;  %v1154_v22 = vsel %vm1151_vm2, %v9360_v32, %v9298_v18 }
 0x2a6   : > { %v1786_v26 = vsel %vm1151_vm2, %v1772_v24, %v9447_v52  ;;  %2438 = vrot.lane.b32.xlu0 %v2415_v48, %s8421_s19  ;;  %v2914_v24 = vrot.slane %v9270_v45, %v8725_v8  ;;  %v1215_v48 = vsel %vm1212_vm6, %v9258_v12, %v9214_v41  ;;  %v2624_v12 = vrot.slane %v9331_v30, %v8725_v8 }
 0x2a7   : > { %2175 = vmatprep.subr.mxu0 %v1786_v26  ;;  %3066 = vrot.lane.b32.xlu1 %v3047_v55, %s8421_s19 }
 0x2a8   : > { %2176 = vmatpush1.msra.mxu0 %v1785_v43  ;;  %v9459_v17 = vpop.permute.xlu0 %1482  ;;  %v1848_v43 = vsel %vm1212_vm6, %v9442_v16, %v9415_v10 }
 0x2a9   : > { %v9461_v33 = vpop.permute.xlu1 %1635 }
 0x2aa   : > { %v1648_v14 = vsel %vm1437_vm5, %v1634_v51, %v9461_v33  ;;  %3263 = vrot.lane.b32.xlu0 %v3244_v44, %s8420_s30  ;;  %v1493_v51 = vsel %vm1490_vm4, %v9300_v56, %v9278_v59  ;;  %v1216_v59 = vsel %vm1212_vm6, %v9214_v41, %v9280_v23  ;;  %v2910_v56 = vrot.slane %v9270_v45, %v10855_v49 }
 0x2ab   : > { %2177 = vmatprep.subr.mxu0 %v1648_v14  ;;  %3070 = vrot.lane.b32.xlu1 %v3055_v20, %s8421_s19  ;;  %v2918_v41 = vrot.slane %v9270_v45, %v10856_v25  ;;  %v2761_v45 = vrot.slane %v9288_v50, %v8725_v8  ;;  %v2423_v20 = vrot.slane %v9358_v54, %v10855_v49 }
 0x2ac   : > { %2178 = vmatpush1.msra.mxu0 %v1647_v27  ;;  %v9473_v34 = vpop.permute.xlu0 %1343 }
 0x2ad   : > { %2179 = vmatprep.subr.mxu0 %v8977_v28  ;;  %v9476_v7 = vpop.permute.xlu1 %1777 }
 0x2ae   : > { %2180 = vmatpush1.msra.mxu0 %v8923_v1  ;;  %3267 = vrot.lane.b32.xlu0 %v3252_v31, %s8420_s30 }
 0x2af   : > { %2181 = vmatprep.subr.mxu0 %v1494_v21  ;;  %2931 = vrot.lane.b32.xlu1 %v2914_v24, %s8422_s3  ;;  %v2620_v24 = vrot.slane %v9331_v30, %v10855_v49  ;;  %v2628_v49 = vrot.slane %v9331_v30, %v10856_v25 }
 0x2b0   : > { %2182 = vmatpush1.msra.mxu0 %v1493_v51  ;;  %v9494_v0 = vpop.permute.xlu0 %1143 }
 0x2b1   : > { %2183 = vmatprep.subr.mxu0 %v1354_v35  ;;  %v9496_v11 = vpop.permute.xlu1 %1639 }
 0x2b2   : > { %2184 = vmatpush1.msra.mxu0 %v1353_v61  ;;  %3068 = vrot.lane.b32.xlu0 %v3051_v53, %s8421_s19  ;;  %v1355_v61 = vsel %vm1098_vm3, %v9349_v15, %v9473_v34 }
 0x2b3   : > { %2185 = vmatprep.subr.mxu0 %v1216_v59  ;;  %2776 = vrot.lane.b32.xlu1 %v2757_v42, %s8423_s5 }
 0x2b4   : > { %2186 = vmatpush1.msra.mxu0 %v1215_v48  ;;  %v9516_v37 = vpop.permute.xlu0 %1839  ;;  %v1217_v48 = vsel %vm1212_vm6, %v9280_v23, %v9413_v29  ;;  %v1156_v23 = vsel %vm1151_vm2, %v9383_v60, %v9494_v0 }
 0x2b5   : > { %2187 = vmatprep.subr.mxu0 %v1155_v6  ;;  %v9518_v55 = vpop.permute.xlu1 %1206  ;;  %v1850_v15 = vsel %vm1212_vm6, %v9516_v37, %v9106_v38 }
 0x2b6   : > { %2188 = vmatpush1.msra.mxu0 %v1154_v22  ;;  %2929 = vrot.lane.b32.xlu0 %v2910_v56, %s8422_s3  ;;  %v1218_v56 = vsel %vm1212_vm6, %v9413_v29, %v9518_v55  ;;  %v1849_v29 = vsel %vm1212_vm6, %v9415_v10, %v9516_v37 }
 0x2b7   : > { %7621 = vmatmul.mubr.msk.f32.vlgmr.msra.gmra.mxu0 %vm2082_vm7, %v9391_v39  ;;  %2780 = vrot.lane.b32.xlu1 %v2765_v19, %s8423_s5 }
 0x2b8   : > { %v1974_v26 = vpop.permute.xlu0 %1973  ;;  %2363 = vmatprep.mubr.f32.mxu0 %v10853_v40 }
 0x2b9   : > { %v9532_v44 = vpop.permute.xlu1 %1484  ;;  %v1986_v18 = vsel %vm1098_vm3, %v1974_v26, %v9425_v63  ;;  %v1985_v32 = vsel %vm1098_vm3, %v9423_v47, %v1974_v26  ;;  %v1847_v47 = vsel %vm1212_vm6, %v9404_v62, %v9442_v16  ;;  %v2431_v62 = vrot.slane %v9358_v54, %v10856_v25 }
 0x2ba   : > { %2242 = vmatprep.subr.mxu1 %v1986_v18  ;;  %2933 = vrot.lane.b32.xlu0 %v2918_v41, %s8422_s3  ;;  %v1496_v35 = vsel %vm1490_vm4, %v9459_v17, %v9532_v44 }
 0x2bb   : > { %2243 = vmatpush1.msra.mxu1 %v1985_v32  ;;  %2641 = vrot.lane.b32.xlu1 %v2624_v12, %s8420_s30 }
 0x2bc   : > { %2244 = vmatprep.subr.mxu1 %v1848_v43  ;;  %v1776_v14 = vpop.permute.xlu0 %1775 }
 0x2bd   : > { %v9550_v31 = vpop.permute.xlu1 %1345  ;;  %2245 = vmatpush1.msra.mxu1 %v1847_v47  ;;  %v1788_v50 = vsel %vm1151_vm2, %v1776_v14, %v9476_v7  ;;  %v1787_v27 = vsel %vm1151_vm2, %v9447_v52, %v1776_v14 }
 0x2be   : > { %2246 = vmatprep.subr.mxu1 %v1788_v50  ;;  %2778 = vrot.lane.b32.xlu0 %v2761_v45, %s8423_s5  ;;  %v1356_v30 = vsel %vm1098_vm3, %v9473_v34, %v9550_v31 }
 0x2bf   : > { %2247 = vmatpush1.msra.mxu1 %v1787_v27  ;;  %2442 = vrot.lane.b32.xlu1 %v2423_v20, %s8421_s19 }
 0x2c0   : > { %v1638_v16 = vpop.permute.xlu0 %1637 }
 0x2c1   : > { %v9562_v21 = vpop.permute.xlu1 %1145  ;;  %v1650_v53 = vsel %vm1437_vm5, %v1638_v16, %v9496_v11  ;;  %v1649_v52 = vsel %vm1437_vm5, %v9461_v33, %v1638_v16  ;;  %v1495_v33 = vsel %vm1490_vm4, %v9325_v5, %v9459_v17 }
 0x2c2   : > { %2248 = vmatprep.subr.mxu1 %v1650_v53  ;;  %2639 = vrot.lane.b32.xlu0 %v2620_v24, %s8420_s30  ;;  %v1157_v34 = vsel %vm1151_vm2, %v9494_v0, %v9562_v21 }
 0x2c3   : > { %2249 = vmatpush1.msra.mxu1 %v1649_v52  ;;  %2446 = vrot.lane.b32.xlu1 %v2431_v62, %s8421_s19 }
 0x2c4   : > { %2250 = vmatprep.subr.mxu1 %v9082_v46  ;;  %v1487_v51 = vpop.permute.xlu0 %1486 }
 0x2c5   : > { %v1211_v42 = vpop.permute.xlu1 %1210  ;;  %2251 = vmatpush1.msra.mxu1 %v9058_v36  ;;  %v1497_v37 = vsel %vm1490_vm4, %v9532_v44, %v1487_v51 }
 0x2c6   : > { %2252 = vmatprep.subr.mxu1 %v1496_v35  ;;  %2643 = vrot.lane.b32.xlu0 %v2628_v49, %s8420_s30 }
 0x2c7   : > { %2253 = vmatpush1.msra.mxu1 %v1495_v33 }
 0x2c8   : > { %v1978_v25 = vpop.permute.xlu0 %1977  ;;  %2254 = vmatprep.subr.mxu1 %v1356_v30 }
 0x2c9   : > { %v1489_v59 = vpop.permute.xlu1 %1488  ;;  %2255 = vmatpush1.msra.mxu1 %v1355_v61  ;;  %v1988_v5 = vsel %vm1098_vm3, %v1978_v25, %v9141_v57  ;;  %v1987_v17 = vsel %vm1098_vm3, %v9425_v63, %v1978_v25  ;;  %v2427_v57 = vrot.slane %v9358_v54, %v8725_v8 }
 0x2ca   : > { %2256 = vmatprep.subr.mxu1 %v1218_v56  ;;  %2313 = vmatprep.subr.mxu0 %v1988_v5  ;;  %v1498_v0 = vsel %vm1490_vm4, %v1487_v51, %v1489_v59 }
 0x2cb   : > { %2257 = vmatpush1.msra.mxu1 %v1217_v48  ;;  %2314 = vmatpush1.msra.mxu0 %v1987_v17 }
 0x2cc   : > { %2315 = vmatprep.subr.mxu0 %v1850_v15  ;;  %v1780_v63 = vpop.permute.xlu0 %1779  ;;  %2258 = vmatprep.subr.mxu1 %v1157_v34 }
 0x2cd   : > { %v1350_v19 = vpop.permute.xlu1 %1349  ;;  %2259 = vmatpush1.msra.mxu1 %v1156_v23  ;;  %2316 = vmatpush1.msra.mxu0 %v1849_v29  ;;  %v1790_v38 = vsel %vm1151_vm2, %v1780_v63, %v9161_v2  ;;  %v1789_v8 = vsel %vm1151_vm2, %v9476_v7, %v1780_v63 }
 0x2ce   : > { %2317 = vmatprep.subr.mxu0 %v1790_v38  ;;  %7622 = vmatmul.mubr.msk.f32.vlgmr.msra.gmra.mxu1 %vm2082_vm7, %v9391_v39 }
 0x2cf   : > { %2318 = vmatpush1.msra.mxu0 %v1789_v8  ;;  %2444 = vrot.lane.b32.xlu0 %v2427_v57, %s8421_s19 }
 0x2d0   : > { %v1642_v54 = vpop.permute.xlu0 %1641  ;;  %3484 = vmatprep.mubr.f32.mxu1 %v10853_v40 }
 0x2d1   : > { %v1150_v60 = vpop.permute.xlu1 %1149  ;;  %v1652_v10 = vsel %vm1437_vm5, %v1642_v54, %v9172_v3  ;;  %v1651_v2 = vsel %vm1437_vm5, %v9496_v11, %v1642_v54 }
 0x2d2   : > { %2319 = vmatprep.subr.mxu0 %v1652_v10 }
 0x2d3   : > { %2320 = vmatpush1.msra.mxu0 %v1651_v2 }
 0x2d4   : > { %2321 = vmatprep.subr.mxu0 %v9124_v9  ;;  %v1348_v7 = vpop.permute.xlu0 %1347 }
 0x2d5   : > { %2322 = vmatpush1.msra.mxu0 %v9063_v4  ;;  %v9626_v6 = vpop.permute.xlu1 %3253  ;;  %v1358_v3 = vsel %vm1098_vm3, %v1348_v7, %v1350_v19  ;;  %v1357_v11 = vsel %vm1098_vm3, %v9550_v31, %v1348_v7 }
 0x2d6   : > { %2323 = vmatprep.subr.mxu0 %v1498_v0 }
 0x2d7   : > { %2324 = vmatpush1.msra.mxu0 %v1497_v37 }
 0x2d8   : > { %v1209_v22 = vpop.permute.xlu0 %1208  ;;  %2325 = vmatprep.subr.mxu0 %v1358_v3 }
 0x2d9   : > { %2326 = vmatpush1.msra.mxu0 %v1357_v11  ;;  %v1220_v41 = vsel %vm1212_vm6, %v1209_v22, %v1211_v42  ;;  %v1219_v12 = vsel %vm1212_vm6, %v9518_v55, %v1209_v22  ;;  %v9636_v26 = vpop.permute.xlu1 %3255 }
 0x2da   : > { %2327 = vmatprep.subr.mxu0 %v1220_v41 }
 0x2db   : > { %2328 = vmatpush1.msra.mxu0 %v1219_v12 }
 0x2dc   : > { %v1148_v18 = vpop.permute.xlu0 %1147 }
 0x2dd   : > { %v1159_v44 = vsel %vm1151_vm2, %v1148_v18, %v1150_v60  ;;  %v1158_v32 = vsel %vm1151_vm2, %v9562_v21, %v1148_v18  ;;  %v9641_v45 = vpop.permute.xlu1 %3259 }
 0x2de   : > { %2329 = vmatprep.subr.mxu0 %v1159_v44 }
 0x2df   : > { %2330 = vmatpush1.msra.mxu0 %v1158_v32 }
 0x2e0   : > { %7623 = vmatmul.mubr.msk.f32.vlgmr.msra.gmra.mxu0 %vm2082_vm7, %v9391_v39 }
 0x2e1   : > { %v9645_v43 = vpop.permute.xlu1 %3056  ;;  %3555 = vmatprep.mubr.f32.mxu0 %v10853_v40 }
 0x2e5   : > { %v9648_v55 = vpop.permute.xlu1 %3060 }
 0x2e9   : > { %v9650_v20 = vpop.permute.xlu0 %2079  ;;  %v9652_v14 = vpop.permute.xlu1 %3064 }
 0x2ed   : > { %v9654_v47 = vpop.permute.xlu0 %3257  ;;  %v9656_v31 = vpop.permute.xlu1 %2921 }
 0x2f1   : > { %v9658_v50 = vpop.permute.xlu0 %3261  ;;  %v9660_v27 = vpop.permute.xlu1 %2925 }
 0x2f5   : > { %v9662_v24 = vpop.permute.xlu0 %3058  ;;  %v9664_v39 = vpop.permute.xlu1 %2766 }
 0x2f6   : > { %v2798_v62 = vmul.f32 0.0, %v9664_v39 }
 0x2f8   : > { %2816 = vrot.lane.b32.xlu0 %v2798_v62, %s8422_s3 }
 0x2f9   : > { %v9668_v16 = vpop.permute.xlu0 %3062  ;;  %v9670_v21 = vpop.permute.xlu1 %2770 }
 0x2fc   : > { %8250 = vrot.lane.b32.xlu0 %v10853_v40, %s8424_s17 }
 0x2fd   : > { %v9674_v53 = vpop.permute.xlu0 %2919  ;;  %v9676_v52 = vpop.permute.xlu1 %2774 }
 0x301   : > { %v9678_v49 = vpop.permute.xlu0 %2923  ;;  %v2632_v51 = vpop.permute.xlu1 %2631 }
 0x305   : > { %v9680_v42 = vpop.permute.xlu0 %2927  ;;  %v2636_v35 = vpop.permute.xlu1 %2635 }
 0x309   : > { %v9682_v33 = vpop.permute.xlu0 %2768  ;;  %v2433_v30 = vpop.permute.xlu1 %2432 }
 0x30a   : > { %v2464_v17 = vmul.f32 0.0, %v2433_v30 }
 0x30d   : > { %v9684_v25 = vpop.permute.xlu0 %2772  ;;  %v2437_v61 = vpop.permute.xlu1 %2436 }
 0x311   : > { %v2630_v59 = vpop.permute.xlu0 %2629  ;;  %v9686_v56 = vpop.permute.xlu1 %2440 }
 0x312   : > { %v2661_v5 = vmul.f32 0.0, %v2630_v59 }
 0x314   : > { %2679 = vrot.lane.b32.xlu1 %v2661_v5, %s8421_s19 }
 0x315   : > { %v2634_v48 = vpop.permute.xlu0 %2633  ;;  %v3266_v15 = vpop.permute.xlu1 %3265 }
 0x316   : > { %v2646_v34 = vsel %vm1151_vm2, %v2632_v51, %v2634_v48  ;;  %v9691_v57 = vsel %vm1151_vm2, %v2634_v48, %v2636_v35 }
 0x318   : > { %2482 = vrot.lane.b32.xlu1 %v2464_v17, %s8420_s30 }
 0x319   : > { %v9694_v63 = vpop.permute.xlu0 %2637  ;;  %v9696_v23 = vpop.permute.xlu1 %3066 }
 0x31a   : > { %v9700_v29 = vsel %vm1151_vm2, %v2636_v35, %v9694_v63 }
 0x31d   : > { %v2435_v19 = vpop.permute.xlu0 %2434  ;;  %v3071_v38 = vpop.permute.xlu1 %3070 }
 0x31e   : > { %v2448_v8 = vsel %vm1098_vm3, %v2433_v30, %v2435_v19  ;;  %v2449_v54 = vsel %vm1098_vm3, %v2435_v19, %v2437_v61  ;;  %v3096_v60 = vmul.f32 0.0, %v3071_v38 }
 0x320   : > { %3122 = vrot.lane.b32.xlu0 %v3096_v60, %s8420_s30  ;;  %v2782_v60 = vsel %vm1437_vm5, %v9664_v39, %v9682_v33  ;;  %v3072_v39 = vsel %vm1098_vm3, %v9645_v43, %v9662_v24 }
 0x321   : > { %v2439_v10 = vpop.permute.xlu0 %2438 }
 0x322   : > { %v9706_v2 = vsel %vm1098_vm3, %v2437_v61, %v2439_v10  ;;  %v9710_v7 = vsel %vm1098_vm3, %v2439_v10, %v9686_v56  ;;  %v2645_v10 = vsel %vm1151_vm2, %v2630_v59, %v2632_v51 }
 0x325   : > { %v9712_v0 = vpop.permute.xlu0 %3263 }
 0x326   : > { %v9716_v37 = vsel %vm1151_vm2, %v9712_v0, %v3266_v15 }
 0x329   : > { %v3268_v3 = vpop.permute.xlu0 %3267 }
 0x32a   : > { %v9719_v22 = vsel %vm1151_vm2, %v3266_v15, %v3268_v3  ;;  %v3293_v11 = vmul.f32 0.0, %v3268_v3 }
 0x32c   : > { %3319 = vrot.lane.b32.xlu1 %v3293_v11, %s8421_s19 }
 0x32d   : > { %v3069_v41 = vpop.permute.xlu0 %3068 }
 0x32e   : > { %v9724_v12 = vsel %vm1098_vm3, %v9696_v23, %v3069_v41  ;;  %v9727_v18 = vsel %vm1098_vm3, %v3069_v41, %v3071_v38  ;;  %v3269_v41 = vsel %vm1151_vm2, %v9626_v6, %v9636_v26 }
 0x331   : > { %v9729_v44 = vpop.permute.xlu0 %2929 }
 0x335   : > { %v9731_v32 = vpop.permute.xlu0 %2933 }
 0x336   : > { %v2959_v62 = vmul.f32 0.0, %v9731_v32 }
 0x338   : > { %2985 = vrot.lane.b32.xlu0 %v2959_v62, %s8423_s5 }
 0x358   : > { %v2152_v35 = vpop.f32.mrf.mxu1 }
 0x359   : > { %v2153_v30 = vadd.f32 %v2152_v35, %v9650_v20 }
 0x35a   : > { %v2154_v61 = vpop.f32.mrf.mxu1 }
 0x35b   : > { %v9736_v5 = vmax.f32 %v2153_v30, 0.0  ;;  %v2155_v17 = vadd.f32 %v2154_v61, %v9650_v20 }
 0x35d   : > { %3166 = vrot.lane.b32.xlu1 %v9736_v5, %s8424_s17  ;;  %2544 = vrot.lane.b32.xlu0 %v9736_v5, %s8424_s17  ;;  %v9743_v48 = vmax.f32 %v2155_v17, 0.0  ;;  %v3285_v15 = vmul.f32 %v9626_v6, %v9736_v5  ;;  %v2951_v19 = vmul.f32 %v9674_v53, %v9736_v5  ;;  %v3088_v38 = vmul.f32 %v9645_v43, %v9736_v5 }
 0x35e   : > { %v2662_v3 = vmul.f32 %v2645_v10, %v9736_v5  ;;  %v2799_v11 = vmul.f32 %v2782_v60, %v9736_v5  ;;  %v2465_v51 = vmul.f32 %v2448_v8, %v9736_v5  ;;  %v2935_v6 = vsel %vm1490_vm4, %v9674_v53, %v9656_v31 }
 0x35f   : > { %v3286_v62 = vmul.f32 %v3269_v41, %v9743_v48  ;;  %v3089_v59 = vmul.f32 %v3072_v39, %v9743_v48  ;;  %v2952_v35 = vmul.f32 %v2935_v6, %v9743_v48  ;;  %v2663_v30 = vmul.f32 %v2646_v34, %v9743_v48 }
 0x360   : > { %v2783_v43 = vsel %vm1437_vm5, %v9682_v33, %v9670_v21  ;;  %v2466_v17 = vmul.f32 %v2449_v54, %v9743_v48  ;;  %v2784_v39 = vsel %vm1437_vm5, %v9670_v21, %v9684_v25  ;;  %v3271_v6 = vsel %vm1151_vm2, %v9654_v47, %v9641_v45 }
 0x361   : > { %3168 = vrot.lane.b32.xlu1 %v9743_v48, %s8424_s17  ;;  %3303 = vrot.lane.b32.xlu0 %v3285_v15, %s8421_s19  ;;  %v2800_v61 = vmul.f32 %v2783_v43, %v9743_v48  ;;  %v2937_v43 = vsel %vm1490_vm4, %v9678_v49, %v9660_v27 }
 0x365   : > { %2969 = vrot.lane.b32.xlu1 %v2951_v19, %s8423_s5  ;;  %3106 = vrot.lane.b32.xlu0 %v3088_v38, %s8420_s30  ;;  %v3270_v19 = vsel %vm1151_vm2, %v9636_v26, %v9654_v47  ;;  %v3073_v26 = vsel %vm1098_vm3, %v9662_v24, %v9648_v55  ;;  %v2936_v24 = vsel %vm1490_vm4, %v9656_v31, %v9678_v49 }
 0x366   : > { %v3075_v31 = vsel %vm1098_vm3, %v9668_v16, %v9652_v14  ;;  %v2938_v49 = vsel %vm1490_vm4, %v9660_v27, %v9680_v42 }
 0x369   : > { %2681 = vrot.lane.b32.xlu1 %v2662_v3, %s8421_s19  ;;  %2818 = vrot.lane.b32.xlu0 %v2799_v11, %s8422_s3 }
 0x36d   : > { %2546 = vrot.lane.b32.xlu1 %v9743_v48, %s8424_s17  ;;  %3305 = vrot.lane.b32.xlu0 %v3286_v62, %s8421_s19 }
 0x371   : > { %2484 = vrot.lane.b32.xlu1 %v2465_v51, %s8420_s30  ;;  %3108 = vrot.lane.b32.xlu0 %v3089_v59, %s8420_s30 }
 0x375   : > { %2971 = vrot.lane.b32.xlu1 %v2952_v35, %s8423_s5  ;;  %2683 = vrot.lane.b32.xlu0 %v2663_v30, %s8421_s19  ;;  %v9852_v30 = vpop.permute.xlu1 %2931 }
 0x377   : > { %v2223_v8 = vpop.f32.mrf.mxu0 }
 0x378   : > { %v2224_v15 = vadd.f32 %v2223_v8, %v9650_v20  ;;  %v3074_v8 = vsel %vm1098_vm3, %v9648_v55, %v9668_v16 }
 0x379   : > { %v2225_v53 = vpop.f32.mrf.mxu0  ;;  %2820 = vrot.lane.b32.xlu1 %v2800_v61, %s8422_s3  ;;  %2486 = vrot.lane.b32.xlu0 %v2466_v17, %s8420_s30  ;;  %v2779_v61 = vpop.permute.xlu0 %2778  ;;  %v2785_v17 = vsel %vm1437_vm5, %v9684_v25, %v9676_v52 }
 0x37a   : > { %v9793_v34 = vmax.f32 %v2224_v15, 0.0  ;;  %v2226_v33 = vadd.f32 %v2225_v53, %v9650_v20  ;;  %v2777_v15 = vpop.permute.xlu1 %2776 }
 0x37c   : > { %v3287_v38 = vmul.f32 %v3270_v19, %v9793_v34  ;;  %v9803_v54 = vmax.f32 %v2226_v33, 0.0  ;;  %v3090_v60 = vmul.f32 %v3073_v26, %v9793_v34  ;;  %v2664_v10 = vmul.f32 %v9691_v57, %v9793_v34 }
 0x37d   : > { %3170 = vrot.lane.b32.xlu0 %v9793_v34, %s8424_s17  ;;  %v2467_v41 = vmul.f32 %v9706_v2, %v9793_v34  ;;  %v2953_v57 = vmul.f32 %v2936_v24, %v9793_v34  ;;  %v3272_v2 = vsel %vm1151_vm2, %v9641_v45, %v9658_v50  ;;  %v2801_v59 = vmul.f32 %v2784_v39, %v9793_v34  ;;  %v2640_v25 = vpop.permute.xlu0 %2639 }
 0x37e   : > { %3307 = vrot.lane.b32.xlu1 %v3287_v38, %s8421_s19  ;;  %v3288_v21 = vmul.f32 %v3271_v6, %v9803_v54  ;;  %v2954_v45 = vmul.f32 %v2937_v43, %v9803_v54  ;;  %v3091_v47 = vmul.f32 %v3074_v8, %v9803_v54  ;;  %v2802_v55 = vmul.f32 %v2785_v17, %v9803_v54 }
 0x37f   : > { %v2786_v19 = vsel %vm1437_vm5, %v9676_v52, %v2777_v15  ;;  %v2665_v27 = vmul.f32 %v9700_v29, %v9803_v54  ;;  %v2649_v26 = vsel %vm1151_vm2, %v9694_v63, %v2640_v25  ;;  %v3076_v29 = vsel %vm1098_vm3, %v9652_v14, %v9696_v23 }
 0x381   : > { %2548 = vrot.lane.b32.xlu0 %v9793_v34, %s8424_s17 }
 0x382   : > { %3172 = vrot.lane.b32.xlu1 %v9803_v54, %s8424_s17 }
 0x386   : > { %3110 = vrot.lane.b32.xlu1 %v3090_v60, %s8420_s30  ;;  %v9886_v60 = vpop.permute.xlu1 %2780 }
 0x38a   : > { %2685 = vrot.lane.b32.xlu1 %v2664_v10, %s8421_s19  ;;  %v2642_v24 = vpop.permute.xlu1 %2641 }
 0x38b   : > { %v2650_v8 = vsel %vm1151_vm2, %v2640_v25, %v2642_v24 }
 0x38e   : > { %2550 = vrot.lane.b32.xlu1 %v9803_v54, %s8424_s17  ;;  %v2294_v3 = vpop.f32.mrf.mxu1  ;;  %v2443_v39 = vpop.permute.xlu1 %2442 }
 0x38f   : > { %v2295_v11 = vadd.f32 %v2294_v3, %v9650_v20  ;;  %v2468_v3 = vmul.f32 %v9710_v7, %v9803_v54  ;;  %v2939_v7 = vsel %vm1490_vm4, %v9680_v42, %v9729_v44 }
 0x390   : > { %v2296_v16 = vpop.f32.mrf.mxu1 }
 0x391   : > { %v9822_v62 = vmax.f32 %v2295_v11, 0.0  ;;  %v2297_v33 = vadd.f32 %v2296_v16, %v9650_v20  ;;  %v9897_v11 = vpop.permute.xlu0 %2643 }
 0x392   : > { %2488 = vrot.lane.b32.xlu1 %v2467_v41, %s8420_s30  ;;  %v9924_v6 = vpop.permute.xlu1 %2446 }
 0x393   : > { %3174 = vrot.lane.b32.xlu0 %v9822_v62, %s8424_s17  ;;  %v3289_v51 = vmul.f32 %v3272_v2, %v9822_v62  ;;  %v3092_v35 = vmul.f32 %v3075_v31, %v9822_v62  ;;  %v2955_v53 = vmul.f32 %v2938_v49, %v9822_v62  ;;  %v2803_v38 = vmul.f32 %v2786_v19, %v9822_v62 }
 0x394   : > { %v9888_v52 = vmax.f32 %v2297_v33, 0.0  ;;  %v2666_v10 = vmul.f32 %v2649_v26, %v9822_v62  ;;  %v3273_v2 = vsel %vm1151_vm2, %v9658_v50, %v9712_v0  ;;  %v2787_v31 = vsel %vm1437_vm5, %v2777_v15, %v2779_v61 }
 0x395   : > { %v2445_v23 = vpop.permute.xlu0 %2444  ;;  %v2788_v50 = vsel %vm1437_vm5, %v2779_v61, %v9886_v60  ;;  %v2941_v33 = vsel %vm1490_vm4, %v9852_v30, %v9731_v32 }
 0x396   : > { %2552 = vrot.lane.b32.xlu1 %v9822_v62, %s8424_s17  ;;  %v3093_v63 = vmul.f32 %v3076_v29, %v9888_v52  ;;  %v2956_v14 = vmul.f32 %v2939_v7, %v9888_v52  ;;  %v9940_v17 = vpop.permute.xlu1 %2679  ;;  %v2667_v61 = vmul.f32 %v2650_v8, %v9888_v52 }
 0x397   : > { %2973 = vrot.lane.b32.xlu0 %v2953_v57, %s8423_s5 }
 0x399   : > { %v9917_v42 = vpop.permute.xlu0 %2816 }
 0x39a   : > { %3311 = vrot.lane.b32.xlu1 %v3289_v51, %s8421_s19 }
 0x39b   : > { %2822 = vrot.lane.b32.xlu0 %v2801_v59, %s8422_s3  ;;  %v3290_v59 = vmul.f32 %v3273_v2, %v9888_v52 }
 0x39d   : > { %v9931_v43 = vpop.permute.xlu0 %8250 }
 0x39e   : > { %3114 = vrot.lane.b32.xlu1 %v3092_v35, %s8420_s30 }
 0x39f   : > { %3309 = vrot.lane.b32.xlu0 %v3288_v21, %s8421_s19  ;;  %v2804_v21 = vmul.f32 %v2787_v31, %v9888_v52 }
 0x3a0   : > { %v2365_v41 = vpop.f32.mrf.mxu0 }
 0x3a1   : > { %v2366_v57 = vadd.f32 %v2365_v41, %v9650_v20  ;;  %v9945_v49 = vpop.permute.xlu0 %3122  ;;  %v2454_v41 = vsel %vm1098_vm3, %v2445_v23, %v9924_v6 }
 0x3a2   : > { %2975 = vrot.lane.b32.xlu1 %v2954_v45, %s8423_s5  ;;  %v2367_v0 = vpop.f32.mrf.mxu0 }
 0x3a3   : > { %3112 = vrot.lane.b32.xlu0 %v3091_v47, %s8420_s30  ;;  %v9915_v51 = vmax.f32 %v2366_v57, 0.0  ;;  %v2368_v45 = vadd.f32 %v2367_v0, %v9650_v20  ;;  %v9950_v20 = vpop.permute.xlu1 %2482 }
 0x3a5   : > { %v3291_v35 = vmul.f32 %v9716_v37, %v9915_v51  ;;  %v2805_v47 = vmul.f32 %v2788_v50, %v9915_v51  ;;  %v2651_v37 = vsel %vm1151_vm2, %v2642_v24, %v9897_v11  ;;  %v9947_v15 = vmax.f32 %v2368_v45, 0.0 }
 0x3a6   : > { %2824 = vrot.lane.b32.xlu1 %v2802_v55, %s8422_s3  ;;  %v2668_v55 = vmul.f32 %v2651_v37, %v9915_v51  ;;  %v3094_v19 = vmul.f32 %v9724_v12, %v9915_v51  ;;  %v2453_v24 = vsel %vm1098_vm3, %v2443_v39, %v2445_v23 }
 0x3a7   : > { %2977 = vrot.lane.b32.xlu0 %v2955_v53, %s8423_s5  ;;  %v3095_v16 = vmul.f32 %v9727_v18, %v9947_v15  ;;  %v9961_v25 = vpop.permute.xlu1 %3319  ;;  %v8252_v18 = vunpack.i.l.bf16 %v9931_v43  ;;  %v2470_v57 = vmul.f32 %v2453_v24, %v9888_v52  ;;  %v2806_v23 = vmul.f32 %v9886_v60, %v9947_v15 }
 0x3a8   : > { %v2669_v31 = vmul.f32 %v9897_v11, %v9947_v15  ;;  %v2472_v0 = vmul.f32 %v9924_v6, %v9947_v15 }
 0x3aa   : > { %2826 = vrot.lane.b32.xlu1 %v2803_v38, %s8422_s3  ;;  %v9957_v53 = vpop.permute.xlu0 %2985  ;;  %v2940_v38 = vsel %vm1490_vm4, %v9729_v44, %v9852_v30  ;;  %v3292_v44 = vmul.f32 %v9719_v22, %v9947_v15  ;;  %v2452_v30 = vsel %vm1098_vm3, %v9686_v56, %v2443_v39  ;;  %v2471_v56 = vmul.f32 %v2454_v41, %v9915_v51 }
 0x3ab   : > { %2687 = vrot.lane.b32.xlu0 %v2665_v27, %s8421_s19  ;;  %v2958_v27 = vmul.f32 %v2941_v33, %v9947_v15  ;;  %v2957_v12 = vmul.f32 %v2940_v38, %v9915_v51 }
 0x3ae   : > { %2689 = vrot.lane.b32.xlu1 %v2666_v10, %s8421_s19 }
 0x3af   : > { %2490 = vrot.lane.b32.xlu0 %v2468_v3, %s8420_s30 }
 0x3b2   : > { %3116 = vrot.lane.b32.xlu1 %v3093_v63, %s8420_s30  ;;  %v2469_v63 = vmul.f32 %v2452_v30, %v9822_v62 }
 0x3b3   : > { %3176 = vrot.lane.b32.xlu0 %v9888_v52, %s8424_s17 }
 0x3b6   : > { %2979 = vrot.lane.b32.xlu1 %v2956_v14, %s8423_s5 }
 0x3b7   : > { %2554 = vrot.lane.b32.xlu0 %v9888_v52, %s8424_s17 }
 0x3ba   : > { %3178 = vrot.lane.b32.xlu1 %v9915_v51, %s8424_s17 }
 0x3bb   : > { %3313 = vrot.lane.b32.xlu0 %v3290_v59, %s8421_s19 }
 0x3be   : > { %3315 = vrot.lane.b32.xlu1 %v3291_v35, %s8421_s19 }
 0x3bf   : > { %2828 = vrot.lane.b32.xlu0 %v2804_v21, %s8422_s3 }
 0x3c2   : > { %2830 = vrot.lane.b32.xlu1 %v2805_v47, %s8422_s3 }
 0x3c3   : > { %2691 = vrot.lane.b32.xlu0 %v2667_v61, %s8421_s19 }
 0x3c6   : > { %2693 = vrot.lane.b32.xlu1 %v2668_v55, %s8421_s19 }
 0x3c7   : > { %3180 = vrot.lane.b32.xlu0 %v9947_v15, %s8424_s17 }
 0x3ca   : > { %3120 = vrot.lane.b32.xlu1 %v3095_v16, %s8420_s30 }
 0x3cb   : > { %3118 = vrot.lane.b32.xlu0 %v3094_v19, %s8420_s30 }
 0x3ce   : > { %2983 = vrot.lane.b32.xlu1 %v2958_v27, %s8423_s5 }
 0x3cf   : > { %v9975_v26 = vpop.permute.xlu0 %2544  ;;  %2981 = vrot.lane.b32.xlu0 %v2957_v12, %s8423_s5  ;;  %v3167_v10 = vpop.permute.xlu1 %3166 }
 0x3d0   : > { %v9980_v32 = vsel %vm1212_vm6, %v8252_v18, %v9975_v26 }
 0x3d2   : > { %2556 = vrot.lane.b32.xlu1 %v9915_v51, %s8424_s17 }
 0x3d3   : > { %v3304_v3 = vpop.permute.xlu0 %3303  ;;  %3317 = vrot.lane.b32.xlu0 %v3292_v44, %s8421_s19  ;;  %v3169_v29 = vpop.permute.xlu1 %3168 }
 0x3d4   : > { %v3184_v6 = vsel %vm1212_vm6, %v3167_v10, %v3169_v29 }
 0x3d6   : > { %2492 = vrot.lane.b32.xlu1 %v2469_v63, %s8420_s30 }
 0x3d7   : > { %v3107_v22 = vpop.permute.xlu0 %3106  ;;  %2558 = vrot.lane.b32.xlu0 %v9947_v15, %s8424_s17  ;;  %v2970_v7 = vpop.permute.xlu1 %2969 }
 0x3da   : > { %2496 = vrot.lane.b32.xlu1 %v2471_v56, %s8420_s30 }
 0x3db   : > { %v2819_v14 = vpop.permute.xlu0 %2818  ;;  %2494 = vrot.lane.b32.xlu0 %v2470_v57, %s8420_s30  ;;  %v2682_v2 = vpop.permute.xlu1 %2681 }
 0x3dc   : > { %v2834_v57 = vsel %vm1490_vm4, %v9917_v42, %v2819_v14 }
 0x3df   : > { %v3306_v39 = vpop.permute.xlu0 %3305  ;;  %2832 = vrot.lane.b32.xlu0 %v2806_v23, %s8422_s3  ;;  %v10003_v59 = vpop.permute.xlu1 %2546 }
 0x3e0   : > { %v3321_v61 = vsel %vm1098_vm3, %v3304_v3, %v3306_v39 }
 0x3e3   : > { %v3109_v35 = vpop.permute.xlu0 %3108  ;;  %2695 = vrot.lane.b32.xlu0 %v2669_v31, %s8421_s19  ;;  %v2485_v50 = vpop.permute.xlu1 %2484 }
 0x3e4   : > { %v3124_v38 = vsel %vm1151_vm2, %v3107_v22, %v3109_v35 }
 0x3e7   : > { %v10010_v21 = vpop.permute.xlu0 %2683  ;;  %2498 = vrot.lane.b32.xlu0 %v2472_v0, %s8420_s30  ;;  %v2972_v60 = vpop.permute.xlu1 %2971 }
 0x3e8   : > { %v2987_v41 = vsel %vm1437_vm5, %v2970_v7, %v2972_v60  ;;  %v2698_v7 = vsel %vm1098_vm3, %v2682_v2, %v10010_v21 }
 0x3eb   : > { %v10013_v8 = vpop.permute.xlu0 %2486  ;;  %v10015_v45 = vpop.permute.xlu1 %2820 }
 0x3ec   : > { %v2835_v56 = vsel %vm1490_vm4, %v2819_v14, %v10015_v45 }
 0x3ef   : > { %v3171_v47 = vpop.permute.xlu0 %3170 }
 0x3f0   : > { %v3308_v37 = vpop.permute.xlu1 %3307  ;;  %v3185_v55 = vsel %vm1212_vm6, %v3169_v29, %v3171_v47 }
 0x3f1   : > { %v3322_v11 = vsel %vm1098_vm3, %v3306_v39, %v3308_v37  ;;  %v2697_v39 = vsel %vm1098_vm3, %v9940_v17, %v2682_v2  ;;  %v2501_v17 = vsel %vm1151_vm2, %v2485_v50, %v10013_v8 }
 0x3f2   : > { %3434 = vmatprep.subr.mxu1 %v3322_v11 }
 0x3f3   : > { %3435 = vmatpush1.msra.mxu1 %v3321_v61  ;;  %v10027_v12 = vpop.permute.xlu0 %2548 }
 0x3f4   : > { %3436 = vmatprep.subr.mxu1 %v3185_v55  ;;  %v3173_v16 = vpop.permute.xlu1 %3172 }
 0x3f5   : > { %3437 = vmatpush1.msra.mxu1 %v3184_v6  ;;  %v3186_v0 = vsel %vm1212_vm6, %v3171_v47, %v3173_v16 }
 0x3f8   : > { %v3111_v19 = vpop.permute.xlu1 %3110 }
 0x3f9   : > { %v3125_v33 = vsel %vm1151_vm2, %v3109_v35, %v3111_v19  ;;  %v10070_v35 = vld [vmem:[%s10857_s22] sm:$0xff] }
 0x3fa   : > { %3438 = vmatprep.subr.mxu1 %v3125_v33 }
 0x3fb   : > { %3439 = vmatpush1.msra.mxu1 %v3124_v38 }
 0x3fc   : > { %v10023_v18 = vpop.permute.xlu1 %2685 }
 0x400   : > { %v10025_v27 = vpop.permute.xlu1 %2550 }
 0x404   : > { %v10029_v44 = vpop.permute.xlu1 %2488 }
 0x405   : > { %v10031_v30 = vpop.permute.xlu0 %3174 }
 0x406   : > { %v3187_v2 = vsel %vm1212_vm6, %v3173_v16, %v10031_v30 }
 0x408   : > { %v10033_v10 = vpop.permute.xlu1 %2552 }
 0x409   : > { %v10038_v3 = vsel %vm1212_vm6, %v10025_v27, %v10033_v10  ;;  %v2974_v29 = vpop.permute.xlu0 %2973 }
 0x40a   : > { %v2988_v63 = vsel %vm1437_vm5, %v2972_v60, %v2974_v29 }
 0x40b   : > { %3440 = vmatprep.subr.mxu1 %v2988_v63 }
 0x40c   : > { %v10042_v24 = vpop.permute.xlu1 %3311  ;;  %3441 = vmatpush1.msra.mxu1 %v2987_v41 }
 0x40d   : > { %v2823_v22 = vpop.permute.xlu0 %2822  ;;  %3442 = vmatprep.subr.mxu1 %v9743_v48  ;;  %v2561_v48 = vsel %vm1212_vm6, %v9975_v26, %v10003_v59  ;;  %v2500_v26 = vsel %vm1151_vm2, %v9950_v20, %v2485_v50 }
 0x40e   : > { %3443 = vmatpush1.msra.mxu1 %v9736_v5  ;;  %v2836_v16 = vsel %vm1490_vm4, %v10015_v45, %v2823_v22  ;;  %v2562_v45 = vsel %vm1212_vm6, %v10003_v59, %v10027_v12 }
 0x40f   : > { %3444 = vmatprep.subr.mxu1 %v2835_v56 }
 0x410   : > { %v10050_v23 = vpop.permute.xlu1 %3114  ;;  %3445 = vmatpush1.msra.mxu1 %v2834_v57 }
 0x411   : > { %v3310_v31 = vpop.permute.xlu0 %3309  ;;  %3446 = vmatprep.subr.mxu1 %v2698_v7 }
 0x412   : > { %v3323_v5 = vsel %vm1098_vm3, %v3308_v37, %v3310_v31  ;;  %3447 = vmatpush1.msra.mxu1 %v2697_v39  ;;  %v3324_v42 = vsel %vm1098_vm3, %v3310_v31, %v10042_v24 }
 0x413   : > { %3448 = vmatprep.subr.mxu1 %v2561_v48  ;;  %3505 = vmatprep.subr.mxu0 %v3324_v42 }
 0x414   : > { %v2976_v14 = vpop.permute.xlu1 %2975  ;;  %3449 = vmatpush1.msra.mxu1 %v9980_v32  ;;  %3506 = vmatpush1.msra.mxu0 %v3323_v5 }
 0x415   : > { %v3113_v60 = vpop.permute.xlu0 %3112  ;;  %3450 = vmatprep.subr.mxu1 %v2501_v17  ;;  %3507 = vmatprep.subr.mxu0 %v3187_v2  ;;  %v2989_v47 = vsel %vm1437_vm5, %v2974_v29, %v2976_v14 }
 0x416   : > { %v3126_v32 = vsel %vm1151_vm2, %v3111_v19, %v3113_v60  ;;  %3451 = vmatpush1.msra.mxu1 %v2500_v26  ;;  %3508 = vmatpush1.msra.mxu0 %v3186_v0  ;;  %v3127_v37 = vsel %vm1151_vm2, %v3113_v60, %v10050_v23  ;;  %v8253_v60 = vunpack.i.h.bf16 %v9931_v43 }
 0x417   : > { %7624 = vmatmul.mubr.msk.f32.vlgmr.msra.gmra.mxu1 %vm2082_vm7, %v10070_v35  ;;  %3509 = vmatprep.subr.mxu0 %v3127_v37 }
 0x418   : > { %v10080_v11 = vpop.permute.xlu1 %2824  ;;  %3510 = vmatpush1.msra.mxu0 %v3126_v32  ;;  %3626 = vmatprep.mubr.f32.mxu1 %v10853_v40 }
 0x419   : > { %v2978_v20 = vpop.permute.xlu0 %2977  ;;  %v2837_v6 = vsel %vm1490_vm4, %v2823_v22, %v10080_v11 }
 0x41a   : > { %v2990_v50 = vsel %vm1437_vm5, %v2976_v14, %v2978_v20 }
 0x41b   : > { %3511 = vmatprep.subr.mxu0 %v2990_v50 }
 0x41c   : > { %v10085_v61 = vpop.permute.xlu1 %2826  ;;  %3512 = vmatpush1.msra.mxu0 %v2989_v47 }
 0x41d   : > { %v10087_v55 = vpop.permute.xlu0 %2687  ;;  %3513 = vmatprep.subr.mxu0 %v9803_v54  ;;  %v2699_v54 = vsel %vm1098_vm3, %v10010_v21, %v10023_v18  ;;  %v2502_v21 = vsel %vm1151_vm2, %v10013_v8, %v10029_v44 }
 0x41e   : > { %3514 = vmatpush1.msra.mxu0 %v9793_v34  ;;  %v2700_v33 = vsel %vm1098_vm3, %v10023_v18, %v10087_v55  ;;  %v2563_v34 = vsel %vm1212_vm6, %v10027_v12, %v10025_v27 }
 0x41f   : > { %3515 = vmatprep.subr.mxu0 %v2837_v6 }
 0x420   : > { %v10095_v19 = vpop.permute.xlu1 %2689  ;;  %3516 = vmatpush1.msra.mxu0 %v2836_v16 }
 0x421   : > { %v10103_v38 = vpop.permute.xlu0 %2490  ;;  %3517 = vmatprep.subr.mxu0 %v2700_v33  ;;  %v2701_v43 = vsel %vm1098_vm3, %v10087_v55, %v10095_v19 }
 0x422   : > { %3518 = vmatpush1.msra.mxu0 %v2699_v54  ;;  %v2503_v63 = vsel %vm1151_vm2, %v10029_v44, %v10103_v38 }
 0x423   : > { %3519 = vmatprep.subr.mxu0 %v2563_v34 }
 0x424   : > { %v3117_v29 = vpop.permute.xlu1 %3116  ;;  %3520 = vmatpush1.msra.mxu0 %v2562_v45 }
 0x425   : > { %v3177_v18 = vpop.permute.xlu0 %3176  ;;  %3521 = vmatprep.subr.mxu0 %v2503_v63 }
 0x426   : > { %3522 = vmatpush1.msra.mxu0 %v2502_v21  ;;  %v3188_v7 = vsel %vm1212_vm6, %v10031_v30, %v3177_v18 }
 0x427   : > { %7625 = vmatmul.mubr.msk.f32.vlgmr.msra.gmra.mxu0 %vm2082_vm7, %v10070_v35 }
 0x428   : > { %v2980_v27 = vpop.permute.xlu1 %2979  ;;  %3697 = vmatprep.mubr.f32.mxu0 %v10853_v40 }
 0x429   : > { %v10120_v59 = vpop.permute.xlu0 %2554  ;;  %v2991_v26 = vsel %vm1437_vm5, %v2978_v20, %v2980_v27  ;;  %v2838_v20 = vsel %vm1490_vm4, %v10080_v11, %v10085_v61 }
 0x42a   : > { %v2565_v11 = vsel %vm1212_vm6, %v10033_v10, %v10120_v59 }
 0x42c   : > { %v3179_v12 = vpop.permute.xlu1 %3178 }
 0x42d   : > { %v3314_v41 = vpop.permute.xlu0 %3313  ;;  %v3189_v44 = vsel %vm1212_vm6, %v3177_v18, %v3179_v12 }
 0x42e   : > { %v3325_v8 = vsel %vm1098_vm3, %v10042_v24, %v3314_v41  ;;  %v3128_v24 = vsel %vm1151_vm2, %v10050_v23, %v3117_v29 }
 0x430   : > { %v3316_v22 = vpop.permute.xlu1 %3315 }
 0x431   : > { %v10122_v56 = vpop.permute.xlu0 %2828  ;;  %v3326_v57 = vsel %vm1098_vm3, %v3314_v41, %v3316_v22 }
 0x432   : > { %3576 = vmatprep.subr.mxu1 %v3326_v57  ;;  %v2839_v23 = vsel %vm1490_vm4, %v10085_v61, %v10122_v56 }
 0x433   : > { %3577 = vmatpush1.msra.mxu1 %v3325_v8 }
 0x434   : > { %3578 = vmatprep.subr.mxu1 %v3189_v44  ;;  %v2831_v40 = vpop.permute.xlu1 %2830 }
 0x435   : > { %3579 = vmatpush1.msra.mxu1 %v3188_v7  ;;  %v10130_v39 = vpop.permute.xlu0 %2691  ;;  %v2840_v54 = vsel %vm1490_vm4, %v10122_v56, %v2831_v40 }
 0x438   : > { %v10132_v31 = vpop.permute.xlu1 %2693 }
 0x439   : > { %v3181_v5 = vpop.permute.xlu0 %3180 }
 0x43c   : > { %v3121_v48 = vpop.permute.xlu1 %3120 }
 0x43d   : > { %v3119_v42 = vpop.permute.xlu0 %3118  ;;  %v3131_v61 = vsel %vm1151_vm2, %v3121_v48, %v9945_v49 }
 0x43e   : > { %v3129_v14 = vsel %vm1151_vm2, %v3117_v29, %v3119_v42  ;;  %v3130_v6 = vsel %vm1151_vm2, %v3119_v42, %v3121_v48 }
 0x43f   : > { %3580 = vmatprep.subr.mxu1 %v3129_v14 }
 0x440   : > { %v2984_v17 = vpop.permute.xlu1 %2983  ;;  %3581 = vmatpush1.msra.mxu1 %v3128_v24 }
 0x441   : > { %v2982_v2 = vpop.permute.xlu0 %2981  ;;  %v2994_v55 = vsel %vm1437_vm5, %v2984_v17, %v9957_v53 }
 0x442   : > { %v2992_v30 = vsel %vm1437_vm5, %v2980_v27, %v2982_v2 }
 0x443   : > { %3582 = vmatprep.subr.mxu1 %v2992_v30 }
 0x444   : > { %3583 = vmatpush1.msra.mxu1 %v2991_v26  ;;  %v2557_v32 = vpop.permute.xlu1 %2556 }
 0x445   : > { %v3318_v0 = vpop.permute.xlu0 %3317  ;;  %3584 = vmatprep.subr.mxu1 %v9888_v52  ;;  %v2702_v52 = vsel %vm1098_vm3, %v10095_v19, %v10130_v39  ;;  %v2993_v19 = vsel %vm1437_vm5, %v2982_v2, %v2984_v17  ;;  %v2566_v45 = vsel %vm1212_vm6, %v10120_v59, %v2557_v32 }
 0x446   : > { %v3327_v37 = vsel %vm1098_vm3, %v3316_v22, %v3318_v0  ;;  %3585 = vmatpush1.msra.mxu1 %v9822_v62  ;;  %v3328_v50 = vsel %vm1098_vm3, %v3318_v0, %v9961_v25  ;;  %v3191_v62 = vsel %vm1212_vm6, %v3181_v5, %v8253_v60  ;;  %v3190_v25 = vsel %vm1212_vm6, %v3179_v12, %v3181_v5 }
 0x447   : > { %3586 = vmatprep.subr.mxu1 %v2839_v23  ;;  %3647 = vmatprep.subr.mxu0 %v3328_v50 }
 0x448   : > { %3587 = vmatpush1.msra.mxu1 %v2838_v20  ;;  %3648 = vmatpush1.msra.mxu0 %v3327_v37  ;;  %v2493_v16 = vpop.permute.xlu1 %2492 }
 0x449   : > { %v2559_v47 = vpop.permute.xlu0 %2558  ;;  %3588 = vmatprep.subr.mxu1 %v2702_v52  ;;  %3649 = vmatprep.subr.mxu0 %v3191_v62  ;;  %v2504_v49 = vsel %vm1151_vm2, %v10103_v38, %v2493_v16 }
 0x44a   : > { %3589 = vmatpush1.msra.mxu1 %v2701_v43  ;;  %3650 = vmatpush1.msra.mxu0 %v3190_v25 }
 0x44b   : > { %3590 = vmatprep.subr.mxu1 %v2565_v11  ;;  %3651 = vmatprep.subr.mxu0 %v3131_v61 }
 0x44c   : > { %3591 = vmatpush1.msra.mxu1 %v10038_v3  ;;  %3652 = vmatpush1.msra.mxu0 %v3130_v6  ;;  %v2497_v29 = vpop.permute.xlu1 %2496 }
 0x44d   : > { %v2495_v33 = vpop.permute.xlu0 %2494  ;;  %3653 = vmatprep.subr.mxu0 %v2994_v55 }
 0x44e   : > { %3654 = vmatpush1.msra.mxu0 %v2993_v19  ;;  %v2505_v10 = vsel %vm1151_vm2, %v2493_v16, %v2495_v33  ;;  %v2506_v18 = vsel %vm1151_vm2, %v2495_v33, %v2497_v29 }
 0x44f   : > { %3592 = vmatprep.subr.mxu1 %v2505_v10  ;;  %3655 = vmatprep.subr.mxu0 %v9947_v15  ;;  %v2703_v15 = vsel %vm1098_vm3, %v10130_v39, %v10132_v31 }
 0x450   : > { %3593 = vmatpush1.msra.mxu1 %v2504_v49  ;;  %3656 = vmatpush1.msra.mxu0 %v9915_v51  ;;  %v2567_v51 = vsel %vm1212_vm6, %v2557_v32, %v2559_v47 }
 0x451   : > { %v2833_v3 = vpop.permute.xlu0 %2832  ;;  %7626 = vmatmul.mubr.msk.f32.vlgmr.msra.gmra.mxu1 %vm2082_vm7, %v10070_v35 }
 0x452   : > { %v2841_v53 = vsel %vm1490_vm4, %v2831_v40, %v2833_v3 }
 0x453   : > { %3657 = vmatprep.subr.mxu0 %v2841_v53 }
 0x454   : > { %3658 = vmatpush1.msra.mxu0 %v2840_v54 }
 0x455   : > { %v2696_v34 = vpop.permute.xlu0 %2695 }
 0x456   : > { %v2704_v38 = vsel %vm1098_vm3, %v10132_v31, %v2696_v34 }
 0x457   : > { %3659 = vmatprep.subr.mxu0 %v2704_v38 }
 0x458   : > { %3660 = vmatpush1.msra.mxu0 %v2703_v15 }
 0x459   : > { %v2499_v63 = vpop.permute.xlu0 %2498  ;;  %3661 = vmatprep.subr.mxu0 %v2567_v51 }
 0x45a   : > { %3662 = vmatpush1.msra.mxu0 %v2566_v45  ;;  %v2507_v21 = vsel %vm1151_vm2, %v2497_v29, %v2499_v63 }
 0x45b   : > { %3663 = vmatprep.subr.mxu0 %v2507_v21 }
 0x45c   : > { %3664 = vmatpush1.msra.mxu0 %v2506_v18 }
 0x45d   : > { %7627 = vmatmul.mubr.msk.f32.vlgmr.msra.gmra.mxu0 %vm2082_vm7, %v10070_v35 }
 0x4d7   : > { %v3486_v27 = vpop.f32.mrf.mxu1 }
 0x4d8   : > { %v3487_v12 = vadd.f32 %v3486_v27, %v8921_v58 }
 0x4d9   : > { %v3488_v41 = vpop.f32.mrf.mxu1 }
 0x4da   : > { %v3704_v22 = vmax.f32 %v3487_v12, 0.0  ;;  %v3489_v59 = vadd.f32 %v3488_v41, %v8936_v13 }
 0x4dc   : > { %3712 = vst [vmem:[#allocation4 + $0x30] sm:$0xff] %v3704_v22  ;;  %v3705_v56 = vmax.f32 %v3489_v59, 0.0 }
 0x4de   : > { %3713 = vst [vmem:[#allocation4] sm:$0xff] %v3705_v56 }
 0x4e7   : > { %v3557_v57 = vpop.f32.mrf.mxu0 }
 0x4e8   : > { %v3558_v8 = vadd.f32 %v3557_v57, %v8923_v1 }
 0x4e9   : > { %v3559_v44 = vpop.f32.mrf.mxu0 }
 0x4ea   : > { %v3706_v7 = vmax.f32 %v3558_v8, 0.0  ;;  %v3560_v40 = vadd.f32 %v3559_v44, %v8977_v28 }
 0x4ec   : > { %3714 = vst [vmem:[#allocation4 + $0x18] sm:$0xff] %v3706_v7  ;;  %v3707_v39 = vmax.f32 %v3560_v40, 0.0 }
 0x4ee   : > { %3715 = vst [vmem:[#allocation4 + $0x10] sm:$0xff] %v3707_v39 }
 0x511   : > { %v3628_v35 = vpop.f32.mrf.mxu1 }
 0x512   : > { %v3629_v58 = vadd.f32 %v3628_v35, %v9058_v36 }
 0x513   : > { %v3630_v31 = vpop.f32.mrf.mxu1 }
 0x514   : > { %v3708_v5 = vmax.f32 %v3629_v58, 0.0  ;;  %v3631_v13 = vadd.f32 %v3630_v31, %v9082_v46 }
 0x516   : > { %3716 = vst [vmem:[#allocation4 + $0x8] sm:$0xff] %v3708_v5  ;;  %v3709_v48 = vmax.f32 %v3631_v13, 0.0 }
 0x518   : > { %3717 = vst [vmem:[#allocation4 + $0x20] sm:$0xff] %v3709_v48 }
 0x51d   : > { %v3699_v42 = vpop.f32.mrf.mxu0 }
 0x51e   : > { %v3700_v1 = vadd.f32 %v3699_v42, %v9063_v4 }
 0x51f   : > { %v3701_v14 = vpop.f32.mrf.mxu0 }
 0x520   : > { %v3710_v24 = vmax.f32 %v3700_v1, 0.0  ;;  %v3702_v28 = vadd.f32 %v3701_v14, %v9124_v9 }
 0x522   : > { %3718 = vst [vmem:[#allocation4 + $0x28] sm:$0xff] %v3710_v24  ;;  %v3711_v17 = vmax.f32 %v3702_v28, 0.0 }
 0x524   : > { %3719 = vst [vmem:[#allocation4 + $0x38] sm:$0xff] %v3711_v17 }
 0x525 PF: > { %v3792_v36 = vld [vmem:[%s8601_s27 + $0x1c0] sm:$0xff]  ;;  %v3723_v31 = vld [vmem:[#allocation4 + $0x10] sm:$0xff] }
 0x526   : > { %v3796_v4 = vld [vmem:[%s8601_s27 + $0x1e0] sm:$0xff]  ;;  %v10231_v1 = vpack.c.bf16 %v3723_v31, %v3723_v31 }
 0x527   : > { %v3920_v46 = vld [vmem:[%s8601_s27 + $0x5c0] sm:$0xff]  ;;  %v7685_v9 = vcombine.high %v3792_v36, %v3796_v4  ;;  %v7684_v30 = vcombine.low %v3792_v36, %v3796_v4 }
 0x528   : > { %v3924_v2 = vld [vmem:[%s8601_s27 + $0x5e0] sm:$0xff]  ;;  %6881 = vmatprep.mubr.bf16.mxu1 %v10231_v1 }
 0x529   : > { %v3784_v26 = vld [vmem:[%s8601_s27 + $0x180] sm:$0xff]  ;;  %v7813_v60 = vcombine.high %v3920_v46, %v3924_v2  ;;  %v7812_v32 = vcombine.low %v3920_v46, %v3924_v2  ;;  %6808 = vmatprep.subr.bf16.mxu0 %v7685_v9 }
 0x52a   : > { %v3788_v0 = vld [vmem:[%s8601_s27 + $0x1a0] sm:$0xff]  ;;  %6809 = vmatpush1.bf16.msra.mxu0 %v7684_v30 }
 0x52b   : > { %v7677_v37 = vcombine.high %v3784_v26, %v3788_v0  ;;  %v3912_v23 = vld [vmem:[%s8601_s27 + $0x580] sm:$0xff]  ;;  %6849 = vmatprep.subr.bf16.mxu1 %v7813_v60  ;;  %v7676_v47 = vcombine.low %v3784_v26, %v3788_v0 }
 0x52c   : > { %v3916_v50 = vld [vmem:[%s8601_s27 + $0x5a0] sm:$0xff]  ;;  %6850 = vmatpush1.bf16.msra.mxu1 %v7812_v32 }
 0x52d   : > { %v3776_v20 = vld [vmem:[%s8601_s27 + $0x140] sm:$0xff]  ;;  %v7805_v52 = vcombine.high %v3912_v23, %v3916_v50  ;;  %6810 = vmatprep.subr.bf16.mxu0 %v7677_v37  ;;  %v7804_v11 = vcombine.low %v3912_v23, %v3916_v50 }
 0x52e   : > { %v3780_v62 = vld [vmem:[%s8601_s27 + $0x160] sm:$0xff]  ;;  %6811 = vmatpush1.bf16.msra.mxu0 %v7676_v47 }
 0x52f   : > { %v3904_v43 = vld [vmem:[%s8601_s27 + $0x540] sm:$0xff]  ;;  %v7669_v61 = vcombine.high %v3776_v20, %v3780_v62  ;;  %6851 = vmatprep.subr.bf16.mxu1 %v7805_v52  ;;  %v7668_v10 = vcombine.low %v3776_v20, %v3780_v62 }
 0x530   : > { %v3908_v25 = vld [vmem:[%s8601_s27 + $0x560] sm:$0xff]  ;;  %6852 = vmatpush1.bf16.msra.mxu1 %v7804_v11 }
 0x531   : > { %v7797_v6 = vcombine.high %v3904_v43, %v3908_v25  ;;  %v3768_v16 = vld [vmem:[%s8601_s27 + $0x100] sm:$0xff]  ;;  %6812 = vmatprep.subr.bf16.mxu0 %v7669_v61  ;;  %v7796_v49 = vcombine.low %v3904_v43, %v3908_v25 }
 0x532   : > { %v3772_v55 = vld [vmem:[%s8601_s27 + $0x120] sm:$0xff]  ;;  %6813 = vmatpush1.bf16.msra.mxu0 %v7668_v10 }
 0x533   : > { %v3896_v19 = vld [vmem:[%s8601_s27 + $0x500] sm:$0xff]  ;;  %v7661_v3 = vcombine.high %v3768_v16, %v3772_v55  ;;  %6853 = vmatprep.subr.bf16.mxu1 %v7797_v6  ;;  %v7660_v51 = vcombine.low %v3768_v16, %v3772_v55 }
 0x534   : > { %v3900_v33 = vld [vmem:[%s8601_s27 + $0x520] sm:$0xff]  ;;  %6854 = vmatpush1.bf16.msra.mxu1 %v7796_v49 }
 0x535   : > { %v7789_v53 = vcombine.high %v3896_v19, %v3900_v33  ;;  %v3760_v54 = vld [vmem:[%s8601_s27 + $0xc0] sm:$0xff]  ;;  %6814 = vmatprep.subr.bf16.mxu0 %v7661_v3  ;;  %v7788_v45 = vcombine.low %v3896_v19, %v3900_v33 }
 0x536   : > { %v3764_v34 = vld [vmem:[%s8601_s27 + $0xe0] sm:$0xff]  ;;  %6815 = vmatpush1.bf16.msra.mxu0 %v7660_v51 }
 0x537   : > { %v3888_v38 = vld [vmem:[%s8601_s27 + $0x4c0] sm:$0xff]  ;;  %v7653_v29 = vcombine.high %v3760_v54, %v3764_v34  ;;  %6855 = vmatprep.subr.bf16.mxu1 %v7789_v53  ;;  %v7652_v41 = vcombine.low %v3760_v54, %v3764_v34 }
 0x538   : > { %v3892_v15 = vld [vmem:[%s8601_s27 + $0x4e0] sm:$0xff]  ;;  %6856 = vmatpush1.bf16.msra.mxu1 %v7788_v45 }
 0x539   : > { %v7781_v63 = vcombine.high %v3888_v38, %v3892_v15  ;;  %v3752_v21 = vld [vmem:[%s8601_s27 + $0x80] sm:$0xff]  ;;  %6816 = vmatprep.subr.bf16.mxu0 %v7653_v29  ;;  %v7780_v22 = vcombine.low %v3888_v38, %v3892_v15 }
 0x53a   : > { %v3756_v18 = vld [vmem:[%s8601_s27 + $0xa0] sm:$0xff]  ;;  %6817 = vmatpush1.bf16.msra.mxu0 %v7652_v41 }
 0x53b   : > { %v3880_v27 = vld [vmem:[%s8601_s27 + $0x480] sm:$0xff]  ;;  %v7645_v59 = vcombine.high %v3752_v21, %v3756_v18  ;;  %6857 = vmatprep.subr.bf16.mxu1 %v7781_v63  ;;  %v7644_v40 = vcombine.low %v3752_v21, %v3756_v18 }
 0x53c   : > { %v3884_v12 = vld [vmem:[%s8601_s27 + $0x4a0] sm:$0xff]  ;;  %6858 = vmatpush1.bf16.msra.mxu1 %v7780_v22 }
 0x53d   : > { %v7773_v56 = vcombine.high %v3880_v27, %v3884_v12  ;;  %v3744_v57 = vld [vmem:[%s8601_s27 + $0x40] sm:$0xff]  ;;  %6818 = vmatprep.subr.bf16.mxu0 %v7645_v59  ;;  %v7772_v39 = vcombine.low %v3880_v27, %v3884_v12 }
 0x53e   : > { %v3748_v8 = vld [vmem:[%s8601_s27 + $0x60] sm:$0xff]  ;;  %6819 = vmatpush1.bf16.msra.mxu0 %v7644_v40 }
 0x53f   : > { %v3872_v44 = vld [vmem:[%s8601_s27 + $0x440] sm:$0xff]  ;;  %v7637_v35 = vcombine.high %v3744_v57, %v3748_v8  ;;  %6859 = vmatprep.subr.bf16.mxu1 %v7773_v56  ;;  %v7636_v28 = vcombine.low %v3744_v57, %v3748_v8 }
 0x540   : > { %v3876_v7 = vld [vmem:[%s8601_s27 + $0x460] sm:$0xff]  ;;  %6860 = vmatpush1.bf16.msra.mxu1 %v7772_v39 }
 0x541   : > { %v3721_v58 = vld [vmem:[#allocation4] sm:$0xff]  ;;  %v7765_v5 = vcombine.high %v3872_v44, %v3876_v7  ;;  %6820 = vmatprep.subr.bf16.mxu0 %v7637_v35  ;;  %v7764_v17 = vcombine.low %v3872_v44, %v3876_v7 }
 0x542   : > { %v3736_v13 = vld [vmem:[%s8601_s27] sm:$0xff]  ;;  %v10229_v42 = vpack.c.bf16 %v3721_v58, %v3721_v58  ;;  %6821 = vmatpush1.bf16.msra.mxu0 %v7636_v28 }
 0x543   : > { %v3740_v48 = vld [vmem:[%s8601_s27 + $0x20] sm:$0xff]  ;;  %6861 = vmatprep.subr.bf16.mxu1 %v7765_v5 }
 0x544   : > { %v3864_v14 = vld [vmem:[%s8601_s27 + $0x400] sm:$0xff]  ;;  %6840 = vmatprep.mubr.bf16.mxu0 %v10229_v42  ;;  %v7629_v36 = vcombine.high %v3736_v13, %v3740_v48  ;;  %v7628_v26 = vcombine.low %v3736_v13, %v3740_v48  ;;  %6862 = vmatpush1.bf16.msra.mxu1 %v7764_v17 }
 0x545   : > { %v3868_v24 = vld [vmem:[%s8601_s27 + $0x420] sm:$0xff] }
 0x546   : > { %v7757_v4 = vcombine.high %v3864_v14, %v3868_v24  ;;  %v3856_v46 = vld [vmem:[%s8601_s27 + $0x3c0] sm:$0xff]  ;;  %6822 = vmatprep.subr.bf16.mxu0 %v7629_v36  ;;  %v7756_v0 = vcombine.low %v3864_v14, %v3868_v24 }
 0x547   : > { %v3860_v9 = vld [vmem:[%s8601_s27 + $0x3e0] sm:$0xff]  ;;  %6823 = vmatpush1.bf16.msra.mxu0 %v7628_v26 }
 0x548   : > { %v3984_v2 = vld [vmem:[%s8601_s27 + $0x7c0] sm:$0xff]  ;;  %v7749_v60 = vcombine.high %v3856_v46, %v3860_v9  ;;  %6863 = vmatprep.subr.bf16.mxu1 %v7757_v4  ;;  %v7748_v52 = vcombine.low %v3856_v46, %v3860_v9 }
 0x549   : > { %v3988_v30 = vld [vmem:[%s8601_s27 + $0x7e0] sm:$0xff]  ;;  %6864 = vmatpush1.bf16.msra.mxu1 %v7756_v0 }
 0x54a   : > { %v7877_v32 = vcombine.high %v3984_v2, %v3988_v30  ;;  %v3848_v37 = vld [vmem:[%s8601_s27 + $0x380] sm:$0xff]  ;;  %6824 = vmatprep.subr.bf16.mxu0 %v7749_v60  ;;  %v7876_v62 = vcombine.low %v3984_v2, %v3988_v30 }
 0x54b   : > { %v3852_v23 = vld [vmem:[%s8601_s27 + $0x3a0] sm:$0xff]  ;;  %6825 = vmatpush2.bf16.msra.mxu0 %v7748_v52 }
 0x54c   : > { %v3976_v50 = vld [vmem:[%s8601_s27 + $0x780] sm:$0xff]  ;;  %v7741_v43 = vcombine.high %v3848_v37, %v3852_v23  ;;  %6865 = vmatprep.subr.bf16.mxu1 %v7877_v32  ;;  %v7740_v16 = vcombine.low %v3848_v37, %v3852_v23  ;;  %v3720_v32 = vld [vmem:[#allocation4 + $0x30] sm:$0xff]  ;;  %v3722_v23 = vld [vmem:[#allocation4 + $0x18] sm:$0xff] }
 0x54d   : > { %v3980_v20 = vld [vmem:[%s8601_s27 + $0x7a0] sm:$0xff]  ;;  %6866 = vmatpush2.bf16.msra.mxu1 %v7876_v62 }
 0x54e   : > { %v7869_v25 = vcombine.high %v3976_v50, %v3980_v20  ;;  %v3840_v47 = vld [vmem:[%s8601_s27 + $0x340] sm:$0xff]  ;;  %6826 = vmatprep.subr.bf16.mxu0 %v7741_v43  ;;  %v7868_v55 = vcombine.low %v3976_v50, %v3980_v20  ;;  %v10275_v43 = vpack.c.bf16 %v3720_v32, %v3720_v32 }
 0x54f   : > { %v3844_v11 = vld [vmem:[%s8601_s27 + $0x360] sm:$0xff]  ;;  %6827 = vmatpush2.bf16.msra.mxu0 %v7740_v16  ;;  %v3727_v16 = vld [vmem:[#allocation4 + $0x38] sm:$0xff] }
 0x550   : > { %v3968_v61 = vld [vmem:[%s8601_s27 + $0x740] sm:$0xff]  ;;  %v7733_v19 = vcombine.high %v3840_v47, %v3844_v11  ;;  %6867 = vmatprep.subr.bf16.mxu1 %v7869_v25  ;;  %v7732_v54 = vcombine.low %v3840_v47, %v3844_v11 }
 0x551   : > { %v3972_v6 = vld [vmem:[%s8601_s27 + $0x760] sm:$0xff]  ;;  %6868 = vmatpush2.bf16.msra.mxu1 %v7868_v55 }
 0x552   : > { %v7861_v33 = vcombine.high %v3968_v61, %v3972_v6  ;;  %v3832_v10 = vld [vmem:[%s8601_s27 + $0x300] sm:$0xff]  ;;  %6828 = vmatprep.subr.bf16.mxu0 %v7733_v19  ;;  %v7860_v34 = vcombine.low %v3968_v61, %v3972_v6  ;;  %v10279_v61 = vpack.c.bf16 %v3722_v23, %v3722_v23 }
 0x553   : > { %v3836_v49 = vld [vmem:[%s8601_s27 + $0x320] sm:$0xff]  ;;  %6829 = vmatpush2.bf16.msra.mxu0 %v7732_v54 }
 0x554   : > { %v3960_v3 = vld [vmem:[%s8601_s27 + $0x700] sm:$0xff]  ;;  %v7725_v38 = vcombine.high %v3832_v10, %v3836_v49  ;;  %6869 = vmatprep.subr.bf16.mxu1 %v7861_v33  ;;  %v7724_v21 = vcombine.low %v3832_v10, %v3836_v49 }
 0x555   : > { %v3964_v53 = vld [vmem:[%s8601_s27 + $0x720] sm:$0xff]  ;;  %6870 = vmatpush2.bf16.msra.mxu1 %v7860_v34  ;;  %v10288_v34 = vpack.c.bf16 %v3727_v16, %v3727_v16 }
 0x556   : > { %v7853_v15 = vcombine.high %v3960_v3, %v3964_v53  ;;  %v3824_v51 = vld [vmem:[%s8601_s27 + $0x2c0] sm:$0xff]  ;;  %6830 = vmatprep.subr.bf16.mxu0 %v7725_v38  ;;  %v7852_v18 = vcombine.low %v3960_v3, %v3964_v53 }
 0x557   : > { %v3828_v45 = vld [vmem:[%s8601_s27 + $0x2e0] sm:$0xff]  ;;  %6831 = vmatpush2.bf16.msra.mxu0 %v7724_v21 }
 0x558   : > { %v3952_v29 = vld [vmem:[%s8601_s27 + $0x6c0] sm:$0xff]  ;;  %v7717_v27 = vcombine.high %v3824_v51, %v3828_v45  ;;  %6871 = vmatprep.subr.bf16.mxu1 %v7853_v15  ;;  %v7716_v57 = vcombine.low %v3824_v51, %v3828_v45 }
 0x559   : > { %v3956_v63 = vld [vmem:[%s8601_s27 + $0x6e0] sm:$0xff]  ;;  %6872 = vmatpush2.bf16.msra.mxu1 %v7852_v18 }
 0x55a   : > { %v7845_v12 = vcombine.high %v3952_v29, %v3956_v63  ;;  %v3816_v41 = vld [vmem:[%s8601_s27 + $0x280] sm:$0xff]  ;;  %6832 = vmatprep.subr.bf16.mxu0 %v7717_v27  ;;  %v7844_v8 = vcombine.low %v3952_v29, %v3956_v63 }
 0x55b   : > { %v3820_v22 = vld [vmem:[%s8601_s27 + $0x2a0] sm:$0xff]  ;;  %6833 = vmatpush2.bf16.msra.mxu0 %v7716_v57 }
 0x55c   : > { %v3944_v59 = vld [vmem:[%s8601_s27 + $0x680] sm:$0xff]  ;;  %v7709_v44 = vcombine.high %v3816_v41, %v3820_v22  ;;  %6873 = vmatprep.subr.bf16.mxu1 %v7845_v12  ;;  %v7708_v31 = vcombine.low %v3816_v41, %v3820_v22 }
 0x55d   : > { %v3948_v56 = vld [vmem:[%s8601_s27 + $0x6a0] sm:$0xff]  ;;  %6874 = vmatpush2.bf16.msra.mxu1 %v7844_v8 }
 0x55e   : > { %v7837_v7 = vcombine.high %v3944_v59, %v3948_v56  ;;  %v3808_v40 = vld [vmem:[%s8601_s27 + $0x240] sm:$0xff]  ;;  %6834 = vmatprep.subr.bf16.mxu0 %v7709_v44  ;;  %v7836_v5 = vcombine.low %v3944_v59, %v3948_v56 }
 0x55f   : > { %v3812_v39 = vld [vmem:[%s8601_s27 + $0x260] sm:$0xff]  ;;  %6835 = vmatpush2.bf16.msra.mxu0 %v7708_v31 }
 0x560   : > { %v3936_v35 = vld [vmem:[%s8601_s27 + $0x640] sm:$0xff]  ;;  %v7701_v13 = vcombine.high %v3808_v40, %v3812_v39  ;;  %6875 = vmatprep.subr.bf16.mxu1 %v7837_v7  ;;  %v7700_v36 = vcombine.low %v3808_v40, %v3812_v39 }
 0x561   : > { %v3940_v58 = vld [vmem:[%s8601_s27 + $0x660] sm:$0xff]  ;;  %6876 = vmatpush2.bf16.msra.mxu1 %v7836_v5 }
 0x562   : > { %v7829_v48 = vcombine.high %v3936_v35, %v3940_v58  ;;  %v3800_v14 = vld [vmem:[%s8601_s27 + $0x200] sm:$0xff]  ;;  %6836 = vmatprep.subr.bf16.mxu0 %v7701_v13  ;;  %v7828_v4 = vcombine.low %v3936_v35, %v3940_v58 }
 0x563   : > { %v3804_v24 = vld [vmem:[%s8601_s27 + $0x220] sm:$0xff]  ;;  %6837 = vmatpush2.bf16.msra.mxu0 %v7700_v36 }
 0x564   : > { %v3928_v28 = vld [vmem:[%s8601_s27 + $0x600] sm:$0xff]  ;;  %v7693_v46 = vcombine.high %v3800_v14, %v3804_v24  ;;  %6877 = vmatprep.subr.bf16.mxu1 %v7829_v48  ;;  %v7692_v60 = vcombine.low %v3800_v14, %v3804_v24 }
 0x565   : > { %v3932_v17 = vld [vmem:[%s8601_s27 + $0x620] sm:$0xff]  ;;  %6878 = vmatpush2.bf16.msra.mxu1 %v7828_v4 }
 0x566   : > { %v7821_v9 = vcombine.high %v3928_v28, %v3932_v17  ;;  %v4048_v2 = vld [vmem:[%s8601_s27 + $0x9c0] sm:$0xff]  ;;  %6838 = vmatprep.subr.bf16.mxu0 %v7693_v46  ;;  %v7820_v37 = vcombine.low %v3928_v28, %v3932_v17 }
 0x567   : > { %v4052_v30 = vld [vmem:[%s8601_s27 + $0x9e0] sm:$0xff]  ;;  %6839 = vmatpush2.bf16.msra.mxu0 %v7692_v60 }
 0x568   : > { %v4176_v26 = vld [vmem:[%s8601_s27 + $0xdc0] sm:$0xff]  ;;  %v7941_v50 = vcombine.high %v4048_v2, %v4052_v30  ;;  %6879 = vmatprep.subr.bf16.mxu1 %v7821_v9  ;;  %v7940_v6 = vcombine.low %v4048_v2, %v4052_v30 }
 0x569   : > { %v4180_v0 = vld [vmem:[%s8601_s27 + $0xde0] sm:$0xff]  ;;  %6880 = vmatpush2.bf16.msra.mxu1 %v7820_v37 }
 0x56a   : > { %v8069_v20 = vcombine.high %v4176_v26, %v4180_v0  ;;  %v4040_v52 = vld [vmem:[%s8601_s27 + $0x980] sm:$0xff]  ;;  %6890 = vmatprep.subr.bf16.mxu0 %v7941_v50  ;;  %v8068_v55 = vcombine.low %v4176_v26, %v4180_v0  ;;  %6841 = vmatmul.mubr.bf16.vlgmr.msra.gmra.mxu0 %v10275_v43 }
 0x56b   : > { %v4044_v62 = vld [vmem:[%s8601_s27 + $0x9a0] sm:$0xff]  ;;  %6891 = vmatpush1.bf16.msra.mxu0 %v7940_v6 }
 0x56c   : > { %v4168_v25 = vld [vmem:[%s8601_s27 + $0xd80] sm:$0xff]  ;;  %v7933_v19 = vcombine.high %v4040_v52, %v4044_v62  ;;  %6931 = vmatprep.subr.bf16.mxu1 %v8069_v20  ;;  %6882 = vmatmul.mubr.bf16.vlgmr.msra.gmra.mxu1 %v10279_v61  ;;  %v7932_v38 = vcombine.low %v4040_v52, %v4044_v62 }
 0x56d   : > { %v4172_v47 = vld [vmem:[%s8601_s27 + $0xda0] sm:$0xff]  ;;  %6932 = vmatpush1.bf16.msra.mxu1 %v8068_v55  ;;  %6963 = vmatprep.mubr.bf16.mxu1 %v10288_v34 }
 0x56e   : > { %v3725_v11 = vld [vmem:[#allocation4 + $0x20] sm:$0xff]  ;;  %v8061_v33 = vcombine.high %v4168_v25, %v4172_v47  ;;  %6892 = vmatprep.subr.bf16.mxu0 %v7933_v19  ;;  %v8060_v15 = vcombine.low %v4168_v25, %v4172_v47 }
 0x56f   : > { %v4032_v10 = vld [vmem:[%s8601_s27 + $0x940] sm:$0xff]  ;;  %v10283_v3 = vpack.c.bf16 %v3725_v11, %v3725_v11  ;;  %6893 = vmatpush1.bf16.msra.mxu0 %v7932_v38 }
 0x570   : > { %v4036_v49 = vld [vmem:[%s8601_s27 + $0x960] sm:$0xff]  ;;  %6933 = vmatprep.subr.bf16.mxu1 %v8061_v33 }
 0x571   : > { %v4160_v53 = vld [vmem:[%s8601_s27 + $0xd40] sm:$0xff]  ;;  %v7925_v51 = vcombine.high %v4032_v10, %v4036_v49  ;;  %6922 = vmatprep.mubr.bf16.mxu0 %v10283_v3  ;;  %v7924_v27 = vcombine.low %v4032_v10, %v4036_v49  ;;  %6934 = vmatpush1.bf16.msra.mxu1 %v8060_v15 }
 0x572   : > { %v4164_v54 = vld [vmem:[%s8601_s27 + $0xd60] sm:$0xff] }
 0x573   : > { %v8053_v45 = vcombine.high %v4160_v53, %v4164_v54  ;;  %v4024_v29 = vld [vmem:[%s8601_s27 + $0x900] sm:$0xff]  ;;  %6894 = vmatprep.subr.bf16.mxu0 %v7925_v51  ;;  %v8052_v12 = vcombine.low %v4160_v53, %v4164_v54 }
 0x574   : > { %v4028_v63 = vld [vmem:[%s8601_s27 + $0x920] sm:$0xff]  ;;  %6895 = vmatpush1.bf16.msra.mxu0 %v7924_v27 }
 0x575   : > { %v4152_v21 = vld [vmem:[%s8601_s27 + $0xd00] sm:$0xff]  ;;  %v7917_v41 = vcombine.high %v4024_v29, %v4028_v63  ;;  %6935 = vmatprep.subr.bf16.mxu1 %v8053_v45  ;;  %v7916_v44 = vcombine.low %v4024_v29, %v4028_v63 }
 0x576   : > { %v4156_v18 = vld [vmem:[%s8601_s27 + $0xd20] sm:$0xff]  ;;  %6936 = vmatpush1.bf16.msra.mxu1 %v8052_v12 }
 0x577   : > { %v8045_v22 = vcombine.high %v4152_v21, %v4156_v18  ;;  %v4016_v59 = vld [vmem:[%s8601_s27 + $0x8c0] sm:$0xff]  ;;  %6896 = vmatprep.subr.bf16.mxu0 %v7917_v41  ;;  %v8044_v7 = vcombine.low %v4152_v21, %v4156_v18 }
 0x578   : > { %v4020_v56 = vld [vmem:[%s8601_s27 + $0x8e0] sm:$0xff]  ;;  %6897 = vmatpush1.bf16.msra.mxu0 %v7916_v44 }
 0x579   : > { %v4144_v57 = vld [vmem:[%s8601_s27 + $0xcc0] sm:$0xff]  ;;  %v7909_v40 = vcombine.high %v4016_v59, %v4020_v56  ;;  %6937 = vmatprep.subr.bf16.mxu1 %v8045_v22  ;;  %v7908_v13 = vcombine.low %v4016_v59, %v4020_v56 }
 0x57a   : > { %v4148_v8 = vld [vmem:[%s8601_s27 + $0xce0] sm:$0xff]  ;;  %6938 = vmatpush1.bf16.msra.mxu1 %v8044_v7 }
 0x57b   : > { %v8037_v39 = vcombine.high %v4144_v57, %v4148_v8  ;;  %v4008_v35 = vld [vmem:[%s8601_s27 + $0x880] sm:$0xff]  ;;  %6898 = vmatprep.subr.bf16.mxu0 %v7909_v40  ;;  %v8036_v48 = vcombine.low %v4144_v57, %v4148_v8 }
 0x57c   : > { %v4012_v58 = vld [vmem:[%s8601_s27 + $0x8a0] sm:$0xff]  ;;  %6899 = vmatpush1.bf16.msra.mxu0 %v7908_v13 }
 0x57d   : > { %v4136_v31 = vld [vmem:[%s8601_s27 + $0xc80] sm:$0xff]  ;;  %v7901_v14 = vcombine.high %v4008_v35, %v4012_v58  ;;  %6939 = vmatprep.subr.bf16.mxu1 %v8037_v39  ;;  %v7900_v46 = vcombine.low %v4008_v35, %v4012_v58 }
 0x57e   : > { %v4140_v5 = vld [vmem:[%s8601_s27 + $0xca0] sm:$0xff]  ;;  %6940 = vmatpush1.bf16.msra.mxu1 %v8036_v48 }
 0x57f   : > { %v8029_v24 = vcombine.high %v4136_v31, %v4140_v5  ;;  %v4000_v28 = vld [vmem:[%s8601_s27 + $0x840] sm:$0xff]  ;;  %6900 = vmatprep.subr.bf16.mxu0 %v7901_v14  ;;  %v8028_v9 = vcombine.low %v4136_v31, %v4140_v5 }
 0x580   : > { %v4004_v17 = vld [vmem:[%s8601_s27 + $0x860] sm:$0xff]  ;;  %6901 = vmatpush1.bf16.msra.mxu0 %v7900_v46 }
 0x581   : > { %v4128_v36 = vld [vmem:[%s8601_s27 + $0xc40] sm:$0xff]  ;;  %v7893_v2 = vcombine.high %v4000_v28, %v4004_v17  ;;  %6941 = vmatprep.subr.bf16.mxu1 %v8029_v24  ;;  %v7892_v37 = vcombine.low %v4000_v28, %v4004_v17 }
 0x582   : > { %v4132_v4 = vld [vmem:[%s8601_s27 + $0xc60] sm:$0xff]  ;;  %6942 = vmatpush1.bf16.msra.mxu1 %v8028_v9 }
 0x583   : > { %v8021_v30 = vcombine.high %v4128_v36, %v4132_v4  ;;  %v3992_v26 = vld [vmem:[%s8601_s27 + $0x800] sm:$0xff]  ;;  %6902 = vmatprep.subr.bf16.mxu0 %v7893_v2  ;;  %v8020_v23 = vcombine.low %v4128_v36, %v4132_v4 }
 0x584   : > { %v3996_v0 = vld [vmem:[%s8601_s27 + $0x820] sm:$0xff]  ;;  %6903 = vmatpush1.bf16.msra.mxu0 %v7892_v37 }
 0x585   : > { %v4120_v60 = vld [vmem:[%s8601_s27 + $0xc00] sm:$0xff]  ;;  %v7885_v50 = vcombine.high %v3992_v26, %v3996_v0  ;;  %6943 = vmatprep.subr.bf16.mxu1 %v8021_v30  ;;  %v7884_v11 = vcombine.low %v3992_v26, %v3996_v0 }
 0x586   : > { %v4124_v32 = vld [vmem:[%s8601_s27 + $0xc20] sm:$0xff]  ;;  %6944 = vmatpush1.bf16.msra.mxu1 %v8020_v23 }
 0x587   : > { %v8013_v20 = vcombine.high %v4120_v60, %v4124_v32  ;;  %v4112_v52 = vld [vmem:[%s8601_s27 + $0xbc0] sm:$0xff]  ;;  %6904 = vmatprep.subr.bf16.mxu0 %v7885_v50  ;;  %v8012_v6 = vcombine.low %v4120_v60, %v4124_v32 }
 0x588   : > { %v4116_v62 = vld [vmem:[%s8601_s27 + $0xbe0] sm:$0xff]  ;;  %6905 = vmatpush1.bf16.msra.mxu0 %v7884_v11 }
 0x589   : > { %v4240_v25 = vld [vmem:[%s8601_s27 + $0xfc0] sm:$0xff]  ;;  %v8005_v16 = vcombine.high %v4112_v52, %v4116_v62  ;;  %6945 = vmatprep.subr.bf16.mxu1 %v8013_v20  ;;  %v8004_v53 = vcombine.low %v4112_v52, %v4116_v62 }
 0x58a   : > { %v4244_v47 = vld [vmem:[%s8601_s27 + $0xfe0] sm:$0xff]  ;;  %6946 = vmatpush1.bf16.msra.mxu1 %v8012_v6 }
 0x58b   : > { %v8133_v55 = vcombine.high %v4240_v25, %v4244_v47  ;;  %v4104_v19 = vld [vmem:[%s8601_s27 + $0xb80] sm:$0xff]  ;;  %6906 = vmatprep.subr.bf16.mxu0 %v8005_v16  ;;  %v8132_v54 = vcombine.low %v4240_v25, %v4244_v47  ;;  %v3793_v16 = vld [vmem:[%s8601_s27 + $0x1c8] sm:$0xff] }
 0x58c   : > { %v4108_v33 = vld [vmem:[%s8601_s27 + $0xba0] sm:$0xff]  ;;  %6907 = vmatpush2.bf16.msra.mxu0 %v8004_v53 }
 0x58d   : > { %v4232_v10 = vld [vmem:[%s8601_s27 + $0xf80] sm:$0xff]  ;;  %v7997_v38 = vcombine.high %v4104_v19, %v4108_v33  ;;  %6947 = vmatprep.subr.bf16.mxu1 %v8133_v55  ;;  %v7996_v21 = vcombine.low %v4104_v19, %v4108_v33  ;;  %v3797_v55 = vld [vmem:[%s8601_s27 + $0x1e8] sm:$0xff] }
 0x58e   : > { %v4236_v49 = vld [vmem:[%s8601_s27 + $0xfa0] sm:$0xff]  ;;  %6948 = vmatpush2.bf16.msra.mxu1 %v8132_v54  ;;  %v3921_v19 = vld [vmem:[%s8601_s27 + $0x5c8] sm:$0xff] }
 0x58f   : > { %v8125_v15 = vcombine.high %v4232_v10, %v4236_v49  ;;  %v4096_v51 = vld [vmem:[%s8601_s27 + $0xb40] sm:$0xff]  ;;  %6908 = vmatprep.subr.bf16.mxu0 %v7997_v38  ;;  %v8124_v18 = vcombine.low %v4232_v10, %v4236_v49  ;;  %v3925_v33 = vld [vmem:[%s8601_s27 + $0x5e8] sm:$0xff]  ;;  %v7687_v38 = vcombine.high %v3793_v16, %v3797_v55 }
 0x590   : > { %v4100_v45 = vld [vmem:[%s8601_s27 + $0xb60] sm:$0xff]  ;;  %6909 = vmatpush2.bf16.msra.mxu0 %v7996_v21  ;;  %v3724_v49 = vld [vmem:[#allocation4 + $0x8] sm:$0xff] }
 0x591   : > { %v4224_v29 = vld [vmem:[%s8601_s27 + $0xf40] sm:$0xff]  ;;  %v7989_v27 = vcombine.high %v4096_v51, %v4100_v45  ;;  %6949 = vmatprep.subr.bf16.mxu1 %v8125_v15  ;;  %v7988_v57 = vcombine.low %v4096_v51, %v4100_v45  ;;  %v3726_v54 = vld [vmem:[#allocation4 + $0x28] sm:$0xff]  ;;  %v7815_v15 = vcombine.high %v3921_v19, %v3925_v33 }
 0x592   : > { %v4228_v63 = vld [vmem:[%s8601_s27 + $0xf60] sm:$0xff]  ;;  %6950 = vmatpush2.bf16.msra.mxu1 %v8124_v18  ;;  %v3785_v51 = vld [vmem:[%s8601_s27 + $0x188] sm:$0xff]  ;;  %v10355_v18 = vpack.c.bf16 %v3726_v54, %v3726_v54 }
 0x593   : > { %v8117_v12 = vcombine.high %v4224_v29, %v4228_v63  ;;  %v4088_v41 = vld [vmem:[%s8601_s27 + $0xb00] sm:$0xff]  ;;  %6910 = vmatprep.subr.bf16.mxu0 %v7989_v27  ;;  %v8116_v8 = vcombine.low %v4224_v29, %v4228_v63  ;;  %v3789_v45 = vld [vmem:[%s8601_s27 + $0x1a8] sm:$0xff]  ;;  %v10351_v29 = vpack.c.bf16 %v3724_v49, %v3724_v49  ;;  %v7686_v27 = vcombine.low %v3793_v16, %v3797_v55 }
 0x594   : > { %v4092_v22 = vld [vmem:[%s8601_s27 + $0xb20] sm:$0xff]  ;;  %6911 = vmatpush2.bf16.msra.mxu0 %v7988_v57  ;;  %v3913_v63 = vld [vmem:[%s8601_s27 + $0x588] sm:$0xff] }
 0x595   : > { %v4216_v59 = vld [vmem:[%s8601_s27 + $0xf00] sm:$0xff]  ;;  %v7981_v44 = vcombine.high %v4088_v41, %v4092_v22  ;;  %6951 = vmatprep.subr.bf16.mxu1 %v8117_v12  ;;  %v7980_v31 = vcombine.low %v4088_v41, %v4092_v22  ;;  %v3917_v21 = vld [vmem:[%s8601_s27 + $0x5a8] sm:$0xff]  ;;  %v7814_v12 = vcombine.low %v3921_v19, %v3925_v33  ;;  %v7679_v41 = vcombine.high %v3785_v51, %v3789_v45 }
 0x596   : > { %v4220_v56 = vld [vmem:[%s8601_s27 + $0xf20] sm:$0xff]  ;;  %6952 = vmatpush2.bf16.msra.mxu1 %v8116_v8  ;;  %v7807_v22 = vcombine.high %v3913_v63, %v3917_v21  ;;  %v3905_v57 = vld [vmem:[%s8601_s27 + $0x548] sm:$0xff] }
 0x597   : > { %v8109_v7 = vcombine.high %v4216_v59, %v4220_v56  ;;  %v4080_v40 = vld [vmem:[%s8601_s27 + $0xac0] sm:$0xff]  ;;  %6912 = vmatprep.subr.bf16.mxu0 %v7981_v44  ;;  %v8108_v5 = vcombine.low %v4216_v59, %v4220_v56  ;;  %v3777_v59 = vld [vmem:[%s8601_s27 + $0x148] sm:$0xff]  ;;  %v7678_v44 = vcombine.low %v3785_v51, %v3789_v45 }
 0x598   : > { %v4084_v39 = vld [vmem:[%s8601_s27 + $0xae0] sm:$0xff]  ;;  %6913 = vmatpush2.bf16.msra.mxu0 %v7980_v31  ;;  %v3781_v56 = vld [vmem:[%s8601_s27 + $0x168] sm:$0xff] }
 0x599   : > { %v4208_v35 = vld [vmem:[%s8601_s27 + $0xec0] sm:$0xff]  ;;  %v7973_v13 = vcombine.high %v4080_v40, %v4084_v39  ;;  %6953 = vmatprep.subr.bf16.mxu1 %v8109_v7  ;;  %v7972_v36 = vcombine.low %v4080_v40, %v4084_v39  ;;  %v3909_v8 = vld [vmem:[%s8601_s27 + $0x568] sm:$0xff]  ;;  %v7806_v7 = vcombine.low %v3913_v63, %v3917_v21  ;;  %v7671_v40 = vcombine.high %v3777_v59, %v3781_v56 }
 0x59a   : > { %v4212_v58 = vld [vmem:[%s8601_s27 + $0xee0] sm:$0xff]  ;;  %6954 = vmatpush2.bf16.msra.mxu1 %v8108_v5  ;;  %v7799_v39 = vcombine.high %v3905_v57, %v3909_v8  ;;  %v3897_v31 = vld [vmem:[%s8601_s27 + $0x508] sm:$0xff] }
 0x59b   : > { %v8101_v48 = vcombine.high %v4208_v35, %v4212_v58  ;;  %v4072_v14 = vld [vmem:[%s8601_s27 + $0xa80] sm:$0xff]  ;;  %6914 = vmatprep.subr.bf16.mxu0 %v7973_v13  ;;  %v8100_v4 = vcombine.low %v4208_v35, %v4212_v58  ;;  %v3769_v35 = vld [vmem:[%s8601_s27 + $0x108] sm:$0xff]  ;;  %v7670_v13 = vcombine.low %v3777_v59, %v3781_v56 }
 0x59c   : > { %v4076_v24 = vld [vmem:[%s8601_s27 + $0xaa0] sm:$0xff]  ;;  %6915 = vmatpush2.bf16.msra.mxu0 %v7972_v36  ;;  %v3773_v58 = vld [vmem:[%s8601_s27 + $0x128] sm:$0xff] }
 0x59d   : > { %v4200_v28 = vld [vmem:[%s8601_s27 + $0xe80] sm:$0xff]  ;;  %v7965_v46 = vcombine.high %v4072_v14, %v4076_v24  ;;  %6955 = vmatprep.subr.bf16.mxu1 %v8101_v48  ;;  %v7964_v60 = vcombine.low %v4072_v14, %v4076_v24  ;;  %v3901_v5 = vld [vmem:[%s8601_s27 + $0x528] sm:$0xff]  ;;  %v7798_v48 = vcombine.low %v3905_v57, %v3909_v8  ;;  %v7663_v14 = vcombine.high %v3769_v35, %v3773_v58 }
 0x59e   : > { %v4204_v17 = vld [vmem:[%s8601_s27 + $0xea0] sm:$0xff]  ;;  %6956 = vmatpush2.bf16.msra.mxu1 %v8100_v4  ;;  %v7791_v24 = vcombine.high %v3897_v31, %v3901_v5  ;;  %v3889_v36 = vld [vmem:[%s8601_s27 + $0x4c8] sm:$0xff] }
 0x59f   : > { %v8093_v9 = vcombine.high %v4200_v28, %v4204_v17  ;;  %v4064_v2 = vld [vmem:[%s8601_s27 + $0xa40] sm:$0xff]  ;;  %6916 = vmatprep.subr.bf16.mxu0 %v7965_v46  ;;  %v8092_v32 = vcombine.low %v4200_v28, %v4204_v17  ;;  %v3761_v28 = vld [vmem:[%s8601_s27 + $0xc8] sm:$0xff]  ;;  %v7662_v46 = vcombine.low %v3769_v35, %v3773_v58 }
 0x5a0   : > { %v4068_v30 = vld [vmem:[%s8601_s27 + $0xa60] sm:$0xff]  ;;  %6917 = vmatpush2.bf16.msra.mxu0 %v7964_v60  ;;  %v3765_v17 = vld [vmem:[%s8601_s27 + $0xe8] sm:$0xff] }
 0x5a1   : > { %v4192_v26 = vld [vmem:[%s8601_s27 + $0xe40] sm:$0xff]  ;;  %v7957_v37 = vcombine.high %v4064_v2, %v4068_v30  ;;  %6957 = vmatprep.subr.bf16.mxu1 %v8093_v9  ;;  %v7956_v25 = vcombine.low %v4064_v2, %v4068_v30  ;;  %v3893_v4 = vld [vmem:[%s8601_s27 + $0x4e8] sm:$0xff]  ;;  %v7790_v9 = vcombine.low %v3897_v31, %v3901_v5  ;;  %v7655_v2 = vcombine.high %v3761_v28, %v3765_v17 }
 0x5a2   : > { %v4196_v0 = vld [vmem:[%s8601_s27 + $0xe60] sm:$0xff]  ;;  %6958 = vmatpush2.bf16.msra.mxu1 %v8092_v32  ;;  %v7783_v30 = vcombine.high %v3889_v36, %v3893_v4  ;;  %v3881_v60 = vld [vmem:[%s8601_s27 + $0x488] sm:$0xff] }
 0x5a3   : > { %v8085_v23 = vcombine.high %v4192_v26, %v4196_v0  ;;  %v4056_v50 = vld [vmem:[%s8601_s27 + $0xa00] sm:$0xff]  ;;  %6918 = vmatprep.subr.bf16.mxu0 %v7957_v37  ;;  %v8084_v47 = vcombine.low %v4192_v26, %v4196_v0  ;;  %v3753_v26 = vld [vmem:[%s8601_s27 + $0x88] sm:$0xff]  ;;  %v7654_v37 = vcombine.low %v3761_v28, %v3765_v17 }
 0x5a4   : > { %v4060_v20 = vld [vmem:[%s8601_s27 + $0xa20] sm:$0xff]  ;;  %6919 = vmatpush2.bf16.msra.mxu0 %v7956_v25  ;;  %v3757_v0 = vld [vmem:[%s8601_s27 + $0xa8] sm:$0xff] }
 0x5a5   : > { %v4184_v52 = vld [vmem:[%s8601_s27 + $0xe00] sm:$0xff]  ;;  %v7949_v11 = vcombine.high %v4056_v50, %v4060_v20  ;;  %6959 = vmatprep.subr.bf16.mxu1 %v8085_v23  ;;  %v7948_v10 = vcombine.low %v4056_v50, %v4060_v20  ;;  %v3885_v32 = vld [vmem:[%s8601_s27 + $0x4a8] sm:$0xff]  ;;  %v7782_v23 = vcombine.low %v3889_v36, %v3893_v4  ;;  %v7647_v50 = vcombine.high %v3753_v26, %v3757_v0 }
 0x5a6   : > { %v4188_v62 = vld [vmem:[%s8601_s27 + $0xe20] sm:$0xff]  ;;  %6960 = vmatpush2.bf16.msra.mxu1 %v8084_v47  ;;  %v7775_v20 = vcombine.high %v3881_v60, %v3885_v32  ;;  %v3873_v25 = vld [vmem:[%s8601_s27 + $0x448] sm:$0xff] }
 0x5a7   : > { %v8077_v6 = vcombine.high %v4184_v52, %v4188_v62  ;;  %6920 = vmatprep.subr.bf16.mxu0 %v7949_v11  ;;  %v8076_v53 = vcombine.low %v4184_v52, %v4188_v62  ;;  %v3745_v52 = vld [vmem:[%s8601_s27 + $0x48] sm:$0xff]  ;;  %v7646_v11 = vcombine.low %v3753_v26, %v3757_v0 }
 0x5a8   : > { %6921 = vmatpush2.bf16.msra.mxu0 %v7948_v10  ;;  %v3749_v62 = vld [vmem:[%s8601_s27 + $0x68] sm:$0xff] }
 0x5a9   : > { %6961 = vmatprep.subr.bf16.mxu1 %v8077_v6  ;;  %6972 = vmatprep.subr.bf16.mxu0 %v7687_v38  ;;  %v3877_v47 = vld [vmem:[%s8601_s27 + $0x468] sm:$0xff]  ;;  %v7774_v6 = vcombine.low %v3881_v60, %v3885_v32  ;;  %v7639_v16 = vcombine.high %v3745_v52, %v3749_v62 }
 0x5aa   : > { %6962 = vmatpush2.bf16.msra.mxu1 %v8076_v53  ;;  %v7767_v55 = vcombine.high %v3873_v25, %v3877_v47  ;;  %v3737_v19 = vld [vmem:[%s8601_s27 + $0x8] sm:$0xff]  ;;  %v7638_v53 = vcombine.low %v3745_v52, %v3749_v62  ;;  %v7766_v54 = vcombine.low %v3873_v25, %v3877_v47 }
 0x5ab   : > { %7013 = vmatprep.subr.bf16.mxu1 %v7815_v15  ;;  %6923 = vmatmul.mubr.bf16.vlgmr.msra.gmra.mxu0 %v10351_v29  ;;  %v3741_v33 = vld [vmem:[%s8601_s27 + $0x28] sm:$0xff] }
 0x5ac   : > { %6973 = vmatpush1.bf16.msra.mxu0 %v7686_v27  ;;  %7004 = vmatprep.mubr.bf16.mxu0 %v10229_v42  ;;  %v3865_v10 = vld [vmem:[%s8601_s27 + $0x408] sm:$0xff]  ;;  %v7631_v38 = vcombine.high %v3737_v19, %v3741_v33  ;;  %v7630_v27 = vcombine.low %v3737_v19, %v3741_v33 }
 0x5ad   : > { %6964 = vmatmul.mubr.bf16.vlgmr.msra.gmra.mxu1 %v10355_v18  ;;  %6974 = vmatprep.subr.bf16.mxu0 %v7679_v41  ;;  %v3869_v49 = vld [vmem:[%s8601_s27 + $0x428] sm:$0xff] }
 0x5ae   : > { %7014 = vmatpush1.bf16.msra.mxu1 %v7814_v12  ;;  %7045 = vmatprep.mubr.bf16.mxu1 %v10231_v1  ;;  %v7759_v15 = vcombine.high %v3865_v10, %v3869_v49  ;;  %v3857_v51 = vld [vmem:[%s8601_s27 + $0x3c8] sm:$0xff]  ;;  %v7758_v12 = vcombine.low %v3865_v10, %v3869_v49 }
 0x5af   : > { %7015 = vmatprep.subr.bf16.mxu1 %v7807_v22  ;;  %v3861_v45 = vld [vmem:[%s8601_s27 + $0x3e8] sm:$0xff] }
 0x5b0   : > { %6975 = vmatpush1.bf16.msra.mxu0 %v7678_v44  ;;  %v3985_v63 = vld [vmem:[%s8601_s27 + $0x7c8] sm:$0xff]  ;;  %v7751_v41 = vcombine.high %v3857_v51, %v3861_v45  ;;  %v7750_v44 = vcombine.low %v3857_v51, %v3861_v45 }
 0x5b1   : > { %6976 = vmatprep.subr.bf16.mxu0 %v7671_v40  ;;  %v3989_v21 = vld [vmem:[%s8601_s27 + $0x7e8] sm:$0xff] }
 0x5b2   : > { %7016 = vmatpush1.bf16.msra.mxu1 %v7806_v7  ;;  %v7879_v22 = vcombine.high %v3985_v63, %v3989_v21  ;;  %v3849_v59 = vld [vmem:[%s8601_s27 + $0x388] sm:$0xff]  ;;  %v7878_v7 = vcombine.low %v3985_v63, %v3989_v21 }
 0x5b3   : > { %7017 = vmatprep.subr.bf16.mxu1 %v7799_v39  ;;  %v3853_v56 = vld [vmem:[%s8601_s27 + $0x3a8] sm:$0xff] }
 0x5b4   : > { %6977 = vmatpush1.bf16.msra.mxu0 %v7670_v13  ;;  %v3977_v57 = vld [vmem:[%s8601_s27 + $0x788] sm:$0xff]  ;;  %v7743_v40 = vcombine.high %v3849_v59, %v3853_v56  ;;  %v7742_v13 = vcombine.low %v3849_v59, %v3853_v56 }
 0x5b5   : > { %6978 = vmatprep.subr.bf16.mxu0 %v7663_v14  ;;  %v3981_v8 = vld [vmem:[%s8601_s27 + $0x7a8] sm:$0xff] }
 0x5b6   : > { %7018 = vmatpush1.bf16.msra.mxu1 %v7798_v48  ;;  %v7871_v39 = vcombine.high %v3977_v57, %v3981_v8  ;;  %v3841_v35 = vld [vmem:[%s8601_s27 + $0x348] sm:$0xff]  ;;  %v7870_v48 = vcombine.low %v3977_v57, %v3981_v8 }
 0x5b7   : > { %7019 = vmatprep.subr.bf16.mxu1 %v7791_v24  ;;  %v3845_v58 = vld [vmem:[%s8601_s27 + $0x368] sm:$0xff] }
 0x5b8   : > { %6979 = vmatpush1.bf16.msra.mxu0 %v7662_v46  ;;  %v3969_v31 = vld [vmem:[%s8601_s27 + $0x748] sm:$0xff]  ;;  %v7735_v14 = vcombine.high %v3841_v35, %v3845_v58  ;;  %v7734_v46 = vcombine.low %v3841_v35, %v3845_v58 }
 0x5b9   : > { %6980 = vmatprep.subr.bf16.mxu0 %v7655_v2  ;;  %v3973_v5 = vld [vmem:[%s8601_s27 + $0x768] sm:$0xff] }
 0x5ba   : > { %7020 = vmatpush1.bf16.msra.mxu1 %v7790_v9  ;;  %v7863_v24 = vcombine.high %v3969_v31, %v3973_v5  ;;  %v3833_v28 = vld [vmem:[%s8601_s27 + $0x308] sm:$0xff]  ;;  %v7862_v9 = vcombine.low %v3969_v31, %v3973_v5 }
 0x5bb   : > { %7021 = vmatprep.subr.bf16.mxu1 %v7783_v30  ;;  %v3837_v17 = vld [vmem:[%s8601_s27 + $0x328] sm:$0xff] }
 0x5bc   : > { %6981 = vmatpush1.bf16.msra.mxu0 %v7654_v37  ;;  %v3961_v36 = vld [vmem:[%s8601_s27 + $0x708] sm:$0xff]  ;;  %v7727_v2 = vcombine.high %v3833_v28, %v3837_v17  ;;  %v7726_v37 = vcombine.low %v3833_v28, %v3837_v17 }
 0x5bd   : > { %6982 = vmatprep.subr.bf16.mxu0 %v7647_v50  ;;  %v3965_v4 = vld [vmem:[%s8601_s27 + $0x728] sm:$0xff] }
 0x5be   : > { %7022 = vmatpush1.bf16.msra.mxu1 %v7782_v23  ;;  %v7855_v30 = vcombine.high %v3961_v36, %v3965_v4  ;;  %v3825_v26 = vld [vmem:[%s8601_s27 + $0x2c8] sm:$0xff]  ;;  %v7854_v23 = vcombine.low %v3961_v36, %v3965_v4 }
 0x5bf   : > { %7023 = vmatprep.subr.bf16.mxu1 %v7775_v20  ;;  %v3829_v0 = vld [vmem:[%s8601_s27 + $0x2e8] sm:$0xff] }
 0x5c0   : > { %6983 = vmatpush1.bf16.msra.mxu0 %v7646_v11  ;;  %v3953_v60 = vld [vmem:[%s8601_s27 + $0x6c8] sm:$0xff]  ;;  %v7719_v50 = vcombine.high %v3825_v26, %v3829_v0  ;;  %v7718_v11 = vcombine.low %v3825_v26, %v3829_v0 }
 0x5c1   : > { %6984 = vmatprep.subr.bf16.mxu0 %v7639_v16  ;;  %v3957_v32 = vld [vmem:[%s8601_s27 + $0x6e8] sm:$0xff] }
 0x5c2   : > { %7024 = vmatpush1.bf16.msra.mxu1 %v7774_v6  ;;  %v7847_v20 = vcombine.high %v3953_v60, %v3957_v32  ;;  %v3817_v52 = vld [vmem:[%s8601_s27 + $0x288] sm:$0xff]  ;;  %v7846_v6 = vcombine.low %v3953_v60, %v3957_v32 }
 0x5c3   : > { %7025 = vmatprep.subr.bf16.mxu1 %v7767_v55  ;;  %v3821_v62 = vld [vmem:[%s8601_s27 + $0x2a8] sm:$0xff] }
 0x5c4   : > { %6985 = vmatpush1.bf16.msra.mxu0 %v7638_v53  ;;  %v3945_v25 = vld [vmem:[%s8601_s27 + $0x688] sm:$0xff]  ;;  %v7711_v16 = vcombine.high %v3817_v52, %v3821_v62  ;;  %v7710_v53 = vcombine.low %v3817_v52, %v3821_v62 }
 0x5c5   : > { %6986 = vmatprep.subr.bf16.mxu0 %v7631_v38  ;;  %v3949_v47 = vld [vmem:[%s8601_s27 + $0x6a8] sm:$0xff] }
 0x5c6   : > { %7026 = vmatpush1.bf16.msra.mxu1 %v7766_v54  ;;  %v7839_v55 = vcombine.high %v3945_v25, %v3949_v47  ;;  %v3809_v19 = vld [vmem:[%s8601_s27 + $0x248] sm:$0xff]  ;;  %v7838_v54 = vcombine.low %v3945_v25, %v3949_v47 }
 0x5c7   : > { %7027 = vmatprep.subr.bf16.mxu1 %v7759_v15  ;;  %v3813_v33 = vld [vmem:[%s8601_s27 + $0x268] sm:$0xff] }
 0x5c8   : > { %6987 = vmatpush1.bf16.msra.mxu0 %v7630_v27  ;;  %v3937_v10 = vld [vmem:[%s8601_s27 + $0x648] sm:$0xff]  ;;  %v7703_v38 = vcombine.high %v3809_v19, %v3813_v33  ;;  %v7702_v27 = vcombine.low %v3809_v19, %v3813_v33 }
 0x5c9   : > { %6988 = vmatprep.subr.bf16.mxu0 %v7751_v41  ;;  %v3941_v49 = vld [vmem:[%s8601_s27 + $0x668] sm:$0xff] }
 0x5ca   : > { %7028 = vmatpush1.bf16.msra.mxu1 %v7758_v12  ;;  %v7831_v15 = vcombine.high %v3937_v10, %v3941_v49  ;;  %v3801_v51 = vld [vmem:[%s8601_s27 + $0x208] sm:$0xff]  ;;  %v7830_v12 = vcombine.low %v3937_v10, %v3941_v49 }
 0x5cb   : > { %7029 = vmatprep.subr.bf16.mxu1 %v7879_v22  ;;  %v3805_v45 = vld [vmem:[%s8601_s27 + $0x228] sm:$0xff] }
 0x5cc   : > { %6989 = vmatpush2.bf16.msra.mxu0 %v7750_v44  ;;  %v3929_v63 = vld [vmem:[%s8601_s27 + $0x608] sm:$0xff]  ;;  %v7695_v41 = vcombine.high %v3801_v51, %v3805_v45  ;;  %v7694_v44 = vcombine.low %v3801_v51, %v3805_v45 }
 0x5cd   : > { %6990 = vmatprep.subr.bf16.mxu0 %v7743_v40  ;;  %v3933_v21 = vld [vmem:[%s8601_s27 + $0x628] sm:$0xff] }
 0x5ce   : > { %7030 = vmatpush2.bf16.msra.mxu1 %v7878_v7  ;;  %v7823_v22 = vcombine.high %v3929_v63, %v3933_v21  ;;  %v4049_v59 = vld [vmem:[%s8601_s27 + $0x9c8] sm:$0xff]  ;;  %v7822_v7 = vcombine.low %v3929_v63, %v3933_v21 }
 0x5cf   : > { %7031 = vmatprep.subr.bf16.mxu1 %v7871_v39  ;;  %v4053_v56 = vld [vmem:[%s8601_s27 + $0x9e8] sm:$0xff] }
 0x5d0   : > { %6991 = vmatpush2.bf16.msra.mxu0 %v7742_v13  ;;  %v4177_v57 = vld [vmem:[%s8601_s27 + $0xdc8] sm:$0xff]  ;;  %v7943_v40 = vcombine.high %v4049_v59, %v4053_v56  ;;  %v7942_v13 = vcombine.low %v4049_v59, %v4053_v56 }
 0x5d1   : > { %6992 = vmatprep.subr.bf16.mxu0 %v7735_v14  ;;  %v4181_v8 = vld [vmem:[%s8601_s27 + $0xde8] sm:$0xff] }
 0x5d2   : > { %7032 = vmatpush2.bf16.msra.mxu1 %v7870_v48  ;;  %v8071_v39 = vcombine.high %v4177_v57, %v4181_v8  ;;  %v4041_v35 = vld [vmem:[%s8601_s27 + $0x988] sm:$0xff]  ;;  %v8070_v48 = vcombine.low %v4177_v57, %v4181_v8 }
 0x5d3   : > { %7033 = vmatprep.subr.bf16.mxu1 %v7863_v24  ;;  %v4045_v58 = vld [vmem:[%s8601_s27 + $0x9a8] sm:$0xff] }
 0x5d4   : > { %6993 = vmatpush2.bf16.msra.mxu0 %v7734_v46  ;;  %v4169_v31 = vld [vmem:[%s8601_s27 + $0xd88] sm:$0xff]  ;;  %v7935_v14 = vcombine.high %v4041_v35, %v4045_v58  ;;  %v7934_v46 = vcombine.low %v4041_v35, %v4045_v58 }
 0x5d5   : > { %6994 = vmatprep.subr.bf16.mxu0 %v7727_v2  ;;  %v4173_v5 = vld [vmem:[%s8601_s27 + $0xda8] sm:$0xff] }
 0x5d6   : > { %7034 = vmatpush2.bf16.msra.mxu1 %v7862_v9  ;;  %v8063_v24 = vcombine.high %v4169_v31, %v4173_v5  ;;  %v4033_v28 = vld [vmem:[%s8601_s27 + $0x948] sm:$0xff]  ;;  %v8062_v9 = vcombine.low %v4169_v31, %v4173_v5 }
 0x5d7   : > { %7035 = vmatprep.subr.bf16.mxu1 %v7855_v30  ;;  %v4037_v17 = vld [vmem:[%s8601_s27 + $0x968] sm:$0xff] }
 0x5d8   : > { %6995 = vmatpush2.bf16.msra.mxu0 %v7726_v37  ;;  %v4161_v36 = vld [vmem:[%s8601_s27 + $0xd48] sm:$0xff]  ;;  %v7927_v2 = vcombine.high %v4033_v28, %v4037_v17  ;;  %v7926_v37 = vcombine.low %v4033_v28, %v4037_v17 }
 0x5d9   : > { %6996 = vmatprep.subr.bf16.mxu0 %v7719_v50  ;;  %v4165_v4 = vld [vmem:[%s8601_s27 + $0xd68] sm:$0xff] }
 0x5da   : > { %7036 = vmatpush2.bf16.msra.mxu1 %v7854_v23  ;;  %v8055_v30 = vcombine.high %v4161_v36, %v4165_v4  ;;  %v4025_v26 = vld [vmem:[%s8601_s27 + $0x908] sm:$0xff]  ;;  %v8054_v23 = vcombine.low %v4161_v36, %v4165_v4 }
 0x5db   : > { %7037 = vmatprep.subr.bf16.mxu1 %v7847_v20  ;;  %v4029_v0 = vld [vmem:[%s8601_s27 + $0x928] sm:$0xff] }
 0x5dc   : > { %6997 = vmatpush2.bf16.msra.mxu0 %v7718_v11  ;;  %v4153_v60 = vld [vmem:[%s8601_s27 + $0xd08] sm:$0xff]  ;;  %v7919_v50 = vcombine.high %v4025_v26, %v4029_v0  ;;  %v7918_v11 = vcombine.low %v4025_v26, %v4029_v0 }
 0x5dd   : > { %6998 = vmatprep.subr.bf16.mxu0 %v7711_v16  ;;  %v4157_v32 = vld [vmem:[%s8601_s27 + $0xd28] sm:$0xff] }
 0x5de   : > { %7038 = vmatpush2.bf16.msra.mxu1 %v7846_v6  ;;  %v8047_v20 = vcombine.high %v4153_v60, %v4157_v32  ;;  %v4017_v52 = vld [vmem:[%s8601_s27 + $0x8c8] sm:$0xff]  ;;  %v8046_v6 = vcombine.low %v4153_v60, %v4157_v32 }
 0x5df   : > { %7039 = vmatprep.subr.bf16.mxu1 %v7839_v55  ;;  %v4021_v62 = vld [vmem:[%s8601_s27 + $0x8e8] sm:$0xff] }
 0x5e0   : > { %6999 = vmatpush2.bf16.msra.mxu0 %v7710_v53  ;;  %v4145_v25 = vld [vmem:[%s8601_s27 + $0xcc8] sm:$0xff]  ;;  %v7911_v16 = vcombine.high %v4017_v52, %v4021_v62  ;;  %v7910_v53 = vcombine.low %v4017_v52, %v4021_v62 }
 0x5e1   : > { %7000 = vmatprep.subr.bf16.mxu0 %v7703_v38  ;;  %v4149_v47 = vld [vmem:[%s8601_s27 + $0xce8] sm:$0xff] }
 0x5e2   : > { %7040 = vmatpush2.bf16.msra.mxu1 %v7838_v54  ;;  %v8039_v55 = vcombine.high %v4145_v25, %v4149_v47  ;;  %v4009_v19 = vld [vmem:[%s8601_s27 + $0x888] sm:$0xff]  ;;  %v8038_v54 = vcombine.low %v4145_v25, %v4149_v47 }
 0x5e3   : > { %7041 = vmatprep.subr.bf16.mxu1 %v7831_v15  ;;  %v4013_v33 = vld [vmem:[%s8601_s27 + $0x8a8] sm:$0xff] }
 0x5e4   : > { %7001 = vmatpush2.bf16.msra.mxu0 %v7702_v27  ;;  %v4137_v10 = vld [vmem:[%s8601_s27 + $0xc88] sm:$0xff]  ;;  %v7903_v38 = vcombine.high %v4009_v19, %v4013_v33  ;;  %v7902_v27 = vcombine.low %v4009_v19, %v4013_v33 }
 0x5e5   : > { %7002 = vmatprep.subr.bf16.mxu0 %v7695_v41  ;;  %v4141_v49 = vld [vmem:[%s8601_s27 + $0xca8] sm:$0xff] }
 0x5e6   : > { %7042 = vmatpush2.bf16.msra.mxu1 %v7830_v12  ;;  %v8031_v15 = vcombine.high %v4137_v10, %v4141_v49  ;;  %v4001_v51 = vld [vmem:[%s8601_s27 + $0x848] sm:$0xff]  ;;  %v8030_v12 = vcombine.low %v4137_v10, %v4141_v49 }
 0x5e7   : > { %7043 = vmatprep.subr.bf16.mxu1 %v7823_v22  ;;  %v4005_v45 = vld [vmem:[%s8601_s27 + $0x868] sm:$0xff] }
 0x5e8   : > { %7003 = vmatpush2.bf16.msra.mxu0 %v7694_v44  ;;  %v4129_v63 = vld [vmem:[%s8601_s27 + $0xc48] sm:$0xff]  ;;  %v7895_v41 = vcombine.high %v4001_v51, %v4005_v45  ;;  %v7894_v44 = vcombine.low %v4001_v51, %v4005_v45 }
 0x5e9   : > { %7054 = vmatprep.subr.bf16.mxu0 %v7943_v40  ;;  %v4133_v21 = vld [vmem:[%s8601_s27 + $0xc68] sm:$0xff] }
 0x5ea   : > { %7044 = vmatpush2.bf16.msra.mxu1 %v7822_v7  ;;  %v8023_v22 = vcombine.high %v4129_v63, %v4133_v21  ;;  %v3993_v59 = vld [vmem:[%s8601_s27 + $0x808] sm:$0xff]  ;;  %v8022_v7 = vcombine.low %v4129_v63, %v4133_v21 }
 0x5eb   : > { %7095 = vmatprep.subr.bf16.mxu1 %v8071_v39  ;;  %7005 = vmatmul.mubr.bf16.vlgmr.msra.gmra.mxu0 %v10275_v43  ;;  %v3997_v56 = vld [vmem:[%s8601_s27 + $0x828] sm:$0xff] }
 0x5ec   : > { %7055 = vmatpush1.bf16.msra.mxu0 %v7942_v13  ;;  %7086 = vmatprep.mubr.bf16.mxu0 %v10283_v3  ;;  %v4121_v57 = vld [vmem:[%s8601_s27 + $0xc08] sm:$0xff]  ;;  %v7887_v40 = vcombine.high %v3993_v59, %v3997_v56  ;;  %v7886_v13 = vcombine.low %v3993_v59, %v3997_v56 }
 0x5ed   : > { %7046 = vmatmul.mubr.bf16.vlgmr.msra.gmra.mxu1 %v10279_v61  ;;  %7056 = vmatprep.subr.bf16.mxu0 %v7935_v14  ;;  %v4125_v8 = vld [vmem:[%s8601_s27 + $0xc28] sm:$0xff] }
 0x5ee   : > { %7096 = vmatpush1.bf16.msra.mxu1 %v8070_v48  ;;  %7127 = vmatprep.mubr.bf16.mxu1 %v10288_v34  ;;  %v8015_v39 = vcombine.high %v4121_v57, %v4125_v8  ;;  %v4113_v35 = vld [vmem:[%s8601_s27 + $0xbc8] sm:$0xff]  ;;  %v8014_v48 = vcombine.low %v4121_v57, %v4125_v8 }
 0x5ef   : > { %7097 = vmatprep.subr.bf16.mxu1 %v8063_v24  ;;  %v4117_v58 = vld [vmem:[%s8601_s27 + $0xbe8] sm:$0xff] }
 0x5f0   : > { %7057 = vmatpush1.bf16.msra.mxu0 %v7934_v46  ;;  %v4241_v31 = vld [vmem:[%s8601_s27 + $0xfc8] sm:$0xff]  ;;  %v8007_v14 = vcombine.high %v4113_v35, %v4117_v58  ;;  %v8006_v46 = vcombine.low %v4113_v35, %v4117_v58 }
 0x5f1   : > { %7058 = vmatprep.subr.bf16.mxu0 %v7927_v2  ;;  %v4245_v5 = vld [vmem:[%s8601_s27 + $0xfe8] sm:$0xff] }
 0x5f2   : > { %7098 = vmatpush1.bf16.msra.mxu1 %v8062_v9  ;;  %v8135_v24 = vcombine.high %v4241_v31, %v4245_v5  ;;  %v4105_v28 = vld [vmem:[%s8601_s27 + $0xb88] sm:$0xff]  ;;  %v8134_v9 = vcombine.low %v4241_v31, %v4245_v5 }
 0x5f3   : > { %7099 = vmatprep.subr.bf16.mxu1 %v8055_v30  ;;  %v4109_v17 = vld [vmem:[%s8601_s27 + $0xba8] sm:$0xff] }
 0x5f4   : > { %7059 = vmatpush1.bf16.msra.mxu0 %v7926_v37  ;;  %v4233_v36 = vld [vmem:[%s8601_s27 + $0xf88] sm:$0xff]  ;;  %v7999_v2 = vcombine.high %v4105_v28, %v4109_v17  ;;  %v7998_v37 = vcombine.low %v4105_v28, %v4109_v17  ;;  %v3794_v28 = vld [vmem:[%s8601_s27 + $0x1d0] sm:$0xff] }
 0x5f5   : > { %7060 = vmatprep.subr.bf16.mxu0 %v7919_v50  ;;  %v4237_v4 = vld [vmem:[%s8601_s27 + $0xfa8] sm:$0xff]  ;;  %v3798_v17 = vld [vmem:[%s8601_s27 + $0x1f0] sm:$0xff] }
 0x5f6   : > { %7100 = vmatpush1.bf16.msra.mxu1 %v8054_v23  ;;  %v8127_v30 = vcombine.high %v4233_v36, %v4237_v4  ;;  %v4097_v26 = vld [vmem:[%s8601_s27 + $0xb48] sm:$0xff]  ;;  %v8126_v23 = vcombine.low %v4233_v36, %v4237_v4  ;;  %v3922_v36 = vld [vmem:[%s8601_s27 + $0x5d0] sm:$0xff] }
 0x5f7   : > { %7101 = vmatprep.subr.bf16.mxu1 %v8047_v20  ;;  %v4101_v0 = vld [vmem:[%s8601_s27 + $0xb68] sm:$0xff]  ;;  %v3926_v4 = vld [vmem:[%s8601_s27 + $0x5f0] sm:$0xff] }
 0x5f8   : > { %7061 = vmatpush1.bf16.msra.mxu0 %v7918_v11  ;;  %v4225_v60 = vld [vmem:[%s8601_s27 + $0xf48] sm:$0xff]  ;;  %v7991_v50 = vcombine.high %v4097_v26, %v4101_v0  ;;  %v7990_v11 = vcombine.low %v4097_v26, %v4101_v0  ;;  %v3786_v26 = vld [vmem:[%s8601_s27 + $0x190] sm:$0xff] }
 0x5f9   : > { %7062 = vmatprep.subr.bf16.mxu0 %v7911_v16  ;;  %v4229_v32 = vld [vmem:[%s8601_s27 + $0xf68] sm:$0xff]  ;;  %v3790_v0 = vld [vmem:[%s8601_s27 + $0x1b0] sm:$0xff] }
 0x5fa   : > { %7102 = vmatpush1.bf16.msra.mxu1 %v8046_v6  ;;  %v8119_v20 = vcombine.high %v4225_v60, %v4229_v32  ;;  %v4089_v52 = vld [vmem:[%s8601_s27 + $0xb08] sm:$0xff]  ;;  %v8118_v6 = vcombine.low %v4225_v60, %v4229_v32  ;;  %v3914_v60 = vld [vmem:[%s8601_s27 + $0x590] sm:$0xff] }
 0x5fb   : > { %7103 = vmatprep.subr.bf16.mxu1 %v8039_v55  ;;  %v4093_v62 = vld [vmem:[%s8601_s27 + $0xb28] sm:$0xff]  ;;  %v3918_v32 = vld [vmem:[%s8601_s27 + $0x5b0] sm:$0xff] }
 0x5fc   : > { %7063 = vmatpush1.bf16.msra.mxu0 %v7910_v53  ;;  %v4217_v25 = vld [vmem:[%s8601_s27 + $0xf08] sm:$0xff]  ;;  %v7983_v16 = vcombine.high %v4089_v52, %v4093_v62  ;;  %v7982_v53 = vcombine.low %v4089_v52, %v4093_v62  ;;  %v3778_v52 = vld [vmem:[%s8601_s27 + $0x150] sm:$0xff] }
 0x5fd   : > { %7064 = vmatprep.subr.bf16.mxu0 %v7903_v38  ;;  %v4221_v47 = vld [vmem:[%s8601_s27 + $0xf28] sm:$0xff]  ;;  %v3782_v62 = vld [vmem:[%s8601_s27 + $0x170] sm:$0xff] }
 0x5fe   : > { %7104 = vmatpush1.bf16.msra.mxu1 %v8038_v54  ;;  %v8111_v55 = vcombine.high %v4217_v25, %v4221_v47  ;;  %v4081_v19 = vld [vmem:[%s8601_s27 + $0xac8] sm:$0xff]  ;;  %v8110_v54 = vcombine.low %v4217_v25, %v4221_v47  ;;  %v3906_v47 = vld [vmem:[%s8601_s27 + $0x550] sm:$0xff] }
 0x5ff   : > { %7105 = vmatprep.subr.bf16.mxu1 %v8031_v15  ;;  %v4085_v33 = vld [vmem:[%s8601_s27 + $0xae8] sm:$0xff] }
 0x600   : > { %7065 = vmatpush1.bf16.msra.mxu0 %v7902_v27  ;;  %v4209_v10 = vld [vmem:[%s8601_s27 + $0xec8] sm:$0xff]  ;;  %v7975_v38 = vcombine.high %v4081_v19, %v4085_v33  ;;  %v7974_v27 = vcombine.low %v4081_v19, %v4085_v33  ;;  %v7808_v19 = vcombine.low %v3914_v60, %v3918_v32  ;;  %v7673_v33 = vcombine.high %v3778_v52, %v3782_v62 }
 0x601   : > { %7066 = vmatprep.subr.bf16.mxu0 %v7895_v41  ;;  %v4213_v49 = vld [vmem:[%s8601_s27 + $0xee8] sm:$0xff] }
 0x602   : > { %7106 = vmatpush1.bf16.msra.mxu1 %v8030_v12  ;;  %v8103_v15 = vcombine.high %v4209_v10, %v4213_v49  ;;  %v4073_v51 = vld [vmem:[%s8601_s27 + $0xa88] sm:$0xff]  ;;  %v8102_v12 = vcombine.low %v4209_v10, %v4213_v49 }
 0x603   : > { %7107 = vmatprep.subr.bf16.mxu1 %v8023_v22  ;;  %v4077_v45 = vld [vmem:[%s8601_s27 + $0xaa8] sm:$0xff] }
 0x604   : > { %7067 = vmatpush1.bf16.msra.mxu0 %v7894_v44  ;;  %v4201_v63 = vld [vmem:[%s8601_s27 + $0xe88] sm:$0xff]  ;;  %v7967_v41 = vcombine.high %v4073_v51, %v4077_v45  ;;  %v7966_v44 = vcombine.low %v4073_v51, %v4077_v45  ;;  %v3902_v51 = vld [vmem:[%s8601_s27 + $0x530] sm:$0xff] }
 0x605   : > { %7068 = vmatprep.subr.bf16.mxu0 %v7887_v40  ;;  %v4205_v21 = vld [vmem:[%s8601_s27 + $0xea8] sm:$0xff] }
 0x606   : > { %7108 = vmatpush1.bf16.msra.mxu1 %v8022_v7  ;;  %v8095_v22 = vcombine.high %v4201_v63, %v4205_v21  ;;  %v4065_v59 = vld [vmem:[%s8601_s27 + $0xa48] sm:$0xff]  ;;  %v8094_v7 = vcombine.low %v4201_v63, %v4205_v21  ;;  %v7672_v63 = vcombine.low %v3778_v52, %v3782_v62  ;;  %v3858_v52 = vld [vmem:[%s8601_s27 + $0x3d0] sm:$0xff] }
 0x607   : > { %7109 = vmatprep.subr.bf16.mxu1 %v8015_v39  ;;  %v4069_v56 = vld [vmem:[%s8601_s27 + $0xa68] sm:$0xff]  ;;  %v3862_v62 = vld [vmem:[%s8601_s27 + $0x3f0] sm:$0xff] }
 0x608   : > { %7069 = vmatpush1.bf16.msra.mxu0 %v7886_v13  ;;  %v4193_v57 = vld [vmem:[%s8601_s27 + $0xe48] sm:$0xff]  ;;  %v7959_v40 = vcombine.high %v4065_v59, %v4069_v56  ;;  %v7958_v13 = vcombine.low %v4065_v59, %v4069_v56  ;;  %v3762_v59 = vld [vmem:[%s8601_s27 + $0xd0] sm:$0xff] }
 0x609   : > { %7070 = vmatprep.subr.bf16.mxu0 %v8007_v14  ;;  %v4197_v8 = vld [vmem:[%s8601_s27 + $0xe68] sm:$0xff]  ;;  %v3766_v56 = vld [vmem:[%s8601_s27 + $0xf0] sm:$0xff] }
 0x60a   : > { %7110 = vmatpush1.bf16.msra.mxu1 %v8014_v48  ;;  %v8087_v39 = vcombine.high %v4193_v57, %v4197_v8  ;;  %v4057_v35 = vld [vmem:[%s8601_s27 + $0xa08] sm:$0xff]  ;;  %v8086_v48 = vcombine.low %v4193_v57, %v4197_v8  ;;  %v3890_v57 = vld [vmem:[%s8601_s27 + $0x4d0] sm:$0xff] }
 0x60b   : > { %7111 = vmatprep.subr.bf16.mxu1 %v8135_v24  ;;  %v4061_v58 = vld [vmem:[%s8601_s27 + $0xa28] sm:$0xff]  ;;  %v3894_v8 = vld [vmem:[%s8601_s27 + $0x4f0] sm:$0xff] }
 0x60c   : > { %7071 = vmatpush2.bf16.msra.mxu0 %v8006_v46  ;;  %v4185_v31 = vld [vmem:[%s8601_s27 + $0xe08] sm:$0xff]  ;;  %v7951_v14 = vcombine.high %v4057_v35, %v4061_v58  ;;  %v7950_v46 = vcombine.low %v4057_v35, %v4061_v58  ;;  %v3754_v35 = vld [vmem:[%s8601_s27 + $0x90] sm:$0xff] }
 0x60d   : > { %7072 = vmatprep.subr.bf16.mxu0 %v7999_v2  ;;  %v4189_v5 = vld [vmem:[%s8601_s27 + $0xe28] sm:$0xff]  ;;  %v7689_v2 = vcombine.high %v3794_v28, %v3798_v17  ;;  %v3758_v58 = vld [vmem:[%s8601_s27 + $0xb0] sm:$0xff] }
 0x60e   : > { %7112 = vmatpush2.bf16.msra.mxu1 %v8134_v9  ;;  %v8079_v24 = vcombine.high %v4185_v31, %v4189_v5  ;;  %v8078_v9 = vcombine.low %v4185_v31, %v4189_v5  ;;  %v3882_v31 = vld [vmem:[%s8601_s27 + $0x490] sm:$0xff] }
 0x60f   : > { %7113 = vmatprep.subr.bf16.mxu1 %v8127_v30  ;;  %v7817_v30 = vcombine.high %v3922_v36, %v3926_v4  ;;  %v3886_v5 = vld [vmem:[%s8601_s27 + $0x4b0] sm:$0xff] }
 0x610   : > { %7073 = vmatpush2.bf16.msra.mxu0 %v7998_v37  ;;  %v7688_v37 = vcombine.low %v3794_v28, %v3798_v17  ;;  %v3746_v28 = vld [vmem:[%s8601_s27 + $0x50] sm:$0xff] }
 0x611   : > { %7074 = vmatprep.subr.bf16.mxu0 %v7991_v50  ;;  %v7681_v50 = vcombine.high %v3786_v26, %v3790_v0  ;;  %v3750_v17 = vld [vmem:[%s8601_s27 + $0x70] sm:$0xff] }
 0x612   : > { %7114 = vmatpush2.bf16.msra.mxu1 %v8126_v23  ;;  %v7816_v23 = vcombine.low %v3922_v36, %v3926_v4  ;;  %v3874_v36 = vld [vmem:[%s8601_s27 + $0x450] sm:$0xff] }
 0x613   : > { %7115 = vmatprep.subr.bf16.mxu1 %v8119_v20  ;;  %v7809_v20 = vcombine.high %v3914_v60, %v3918_v32  ;;  %v3878_v4 = vld [vmem:[%s8601_s27 + $0x470] sm:$0xff] }
 0x614   : > { %7075 = vmatpush2.bf16.msra.mxu0 %v7990_v11  ;;  %v3910_v11 = vld [vmem:[%s8601_s27 + $0x570] sm:$0xff] }
 0x615   : > { %7076 = vmatprep.subr.bf16.mxu0 %v7983_v16  ;;  %v7680_v16 = vcombine.low %v3786_v26, %v3790_v0  ;;  %v7801_v49 = vcombine.high %v3906_v47, %v3910_v11  ;;  %v3738_v26 = vld [vmem:[%s8601_s27 + $0x10] sm:$0xff] }
 0x616   : > { %7116 = vmatpush2.bf16.msra.mxu1 %v8118_v6  ;;  %v3742_v0 = vld [vmem:[%s8601_s27 + $0x30] sm:$0xff] }
 0x617   : > { %7117 = vmatprep.subr.bf16.mxu1 %v8111_v55  ;;  %v3866_v60 = vld [vmem:[%s8601_s27 + $0x410] sm:$0xff] }
 0x618   : > { %7077 = vmatpush2.bf16.msra.mxu0 %v7982_v53  ;;  %v3770_v53 = vld [vmem:[%s8601_s27 + $0x110] sm:$0xff] }
 0x619   : > { %7078 = vmatprep.subr.bf16.mxu0 %v7975_v38  ;;  %v3870_v32 = vld [vmem:[%s8601_s27 + $0x430] sm:$0xff] }
 0x61a   : > { %7118 = vmatpush2.bf16.msra.mxu1 %v8110_v54  ;;  %v3774_v54 = vld [vmem:[%s8601_s27 + $0x130] sm:$0xff] }
 0x61b   : > { %7119 = vmatprep.subr.bf16.mxu1 %v8103_v15  ;;  %v3898_v15 = vld [vmem:[%s8601_s27 + $0x510] sm:$0xff] }
 0x61c   : > { %7079 = vmatpush2.bf16.msra.mxu0 %v7974_v27  ;;  %v7800_v27 = vcombine.low %v3906_v47, %v3910_v11  ;;  %v3986_v47 = vld [vmem:[%s8601_s27 + $0x7d0] sm:$0xff] }
 0x61d   : > { %7080 = vmatprep.subr.bf16.mxu0 %v7967_v41  ;;  %v3990_v11 = vld [vmem:[%s8601_s27 + $0x7f0] sm:$0xff] }
 0x61e   : > { %7120 = vmatpush2.bf16.msra.mxu1 %v8102_v12  ;;  %v7665_v12 = vcombine.high %v3770_v53, %v3774_v54 }
 0x61f   : > { %7121 = vmatprep.subr.bf16.mxu1 %v8095_v22  ;;  %v7793_v22 = vcombine.high %v3898_v15, %v3902_v51 }
 0x620   : > { %7081 = vmatpush2.bf16.msra.mxu0 %v7966_v44  ;;  %v7664_v44 = vcombine.low %v3770_v53, %v3774_v54  ;;  %v3850_v53 = vld [vmem:[%s8601_s27 + $0x390] sm:$0xff] }
 0x621   : > { %7082 = vmatprep.subr.bf16.mxu0 %v7959_v40  ;;  %v7657_v40 = vcombine.high %v3762_v59, %v3766_v56  ;;  %v3854_v54 = vld [vmem:[%s8601_s27 + $0x3b0] sm:$0xff] }
 0x622   : > { %7122 = vmatpush2.bf16.msra.mxu1 %v8094_v7  ;;  %v7792_v7 = vcombine.low %v3898_v15, %v3902_v51  ;;  %v3982_v15 = vld [vmem:[%s8601_s27 + $0x7b0] sm:$0xff]  ;;  %v7752_v51 = vcombine.low %v3858_v52, %v3862_v62 }
 0x623   : > { %7123 = vmatprep.subr.bf16.mxu1 %v8087_v39  ;;  %v7785_v39 = vcombine.high %v3890_v57, %v3894_v8 }
 0x624   : > { %7083 = vmatpush2.bf16.msra.mxu0 %v7958_v13  ;;  %v7656_v13 = vcombine.low %v3762_v59, %v3766_v56  ;;  %v7744_v59 = vcombine.low %v3850_v53, %v3854_v54 }
 0x625   : > { %7084 = vmatprep.subr.bf16.mxu0 %v7951_v14  ;;  %v7649_v14 = vcombine.high %v3754_v35, %v3758_v58 }
 0x626   : > { %7124 = vmatpush2.bf16.msra.mxu1 %v8086_v48  ;;  %v7784_v48 = vcombine.low %v3890_v57, %v3894_v8 }
 0x627   : > { %7125 = vmatprep.subr.bf16.mxu1 %v8079_v24  ;;  %v7777_v24 = vcombine.high %v3882_v31, %v3886_v5 }
 0x628   : > { %7085 = vmatpush2.bf16.msra.mxu0 %v7950_v46  ;;  %v7648_v46 = vcombine.low %v3754_v35, %v3758_v58 }
 0x629   : > { %7136 = vmatprep.subr.bf16.mxu0 %v7689_v2  ;;  %v7641_v2 = vcombine.high %v3746_v28, %v3750_v17 }
 0x62a   : > { %7126 = vmatpush2.bf16.msra.mxu1 %v8078_v9  ;;  %v10495_v25 = vpop.f32.mrf.mxu0  ;;  %v7776_v9 = vcombine.low %v3882_v31, %v3886_v5 }
 0x62b   : > { %7177 = vmatprep.subr.bf16.mxu1 %v7817_v30  ;;  %7087 = vmatmul.mubr.bf16.vlgmr.msra.gmra.mxu0 %v10351_v29  ;;  %v7769_v30 = vcombine.high %v3874_v36, %v3878_v4 }
 0x62c   : > { %v10500_v6 = vpop.f32.mrf.mxu1  ;;  %7137 = vmatpush1.bf16.msra.mxu0 %v7688_v37  ;;  %v10503_v55 = vpop.f32.mrf.mxu0  ;;  %7168 = vmatprep.mubr.bf16.mxu0 %v10229_v42  ;;  %v7640_v37 = vcombine.low %v3746_v28, %v3750_v17 }
 0x62d   : > { %7128 = vmatmul.mubr.bf16.vlgmr.msra.gmra.mxu1 %v10355_v18  ;;  %7138 = vmatprep.subr.bf16.mxu0 %v7681_v50  ;;  %v7633_v50 = vcombine.high %v3738_v26, %v3742_v0 }
 0x62e   : > { %7178 = vmatpush1.bf16.msra.mxu1 %v7816_v23  ;;  %v10505_v10 = vpop.f32.mrf.mxu1  ;;  %v6846_v38 = vpop.f32.mrf.mxu0  ;;  %7209 = vmatprep.mubr.bf16.mxu1 %v10231_v1  ;;  %v7768_v23 = vcombine.low %v3874_v36, %v3878_v4 }
 0x62f   : > { %7179 = vmatprep.subr.bf16.mxu1 %v7809_v20  ;;  %v7761_v20 = vcombine.high %v3866_v60, %v3870_v32  ;;  %v3978_v38 = vld [vmem:[%s8601_s27 + $0x790] sm:$0xff] }
 0x630   : > { %v6887_v45 = vpop.f32.mrf.mxu1  ;;  %7139 = vmatpush1.bf16.msra.mxu0 %v7680_v16  ;;  %v6847_v21 = vpop.f32.mrf.mxu0  ;;  %v7632_v16 = vcombine.low %v3738_v26, %v3742_v0  ;;  %v7872_v56 = vcombine.low %v3978_v38, %v3982_v15 }
 0x631   : > { %7140 = vmatprep.subr.bf16.mxu0 %v7673_v33  ;;  %v7753_v33 = vcombine.high %v3858_v52, %v3862_v62  ;;  %v7880_v45 = vcombine.low %v3986_v47, %v3990_v11  ;;  %v7873_v21 = vcombine.high %v3978_v38, %v3982_v15 }
 0x632   : > { %7180 = vmatpush1.bf16.msra.mxu1 %v7808_v19  ;;  %v6888_v41 = vpop.f32.mrf.mxu1  ;;  %v7760_v19 = vcombine.low %v3866_v60, %v3870_v32 }
 0x633   : > { %7181 = vmatprep.subr.bf16.mxu1 %v7801_v49  ;;  %v7881_v49 = vcombine.high %v3986_v47, %v3990_v11  ;;  %v3970_v41 = vld [vmem:[%s8601_s27 + $0x750] sm:$0xff] }
 0x634   : > { %7141 = vmatpush1.bf16.msra.mxu0 %v7672_v63  ;;  %v7745_v63 = vcombine.high %v3850_v53, %v3854_v54 }
 0x635   : > { %7142 = vmatprep.subr.bf16.mxu0 %v7665_v12  ;;  %v3846_v12 = vld [vmem:[%s8601_s27 + $0x370] sm:$0xff] }
 0x636   : > { %7182 = vmatpush1.bf16.msra.mxu1 %v7800_v27  ;;  %v3842_v27 = vld [vmem:[%s8601_s27 + $0x350] sm:$0xff] }
 0x637   : > { %7183 = vmatprep.subr.bf16.mxu1 %v7793_v22  ;;  %v3974_v22 = vld [vmem:[%s8601_s27 + $0x770] sm:$0xff]  ;;  %v7737_v57 = vcombine.high %v3842_v27, %v3846_v12  ;;  %v7736_v35 = vcombine.low %v3842_v27, %v3846_v12 }
 0x638   : > { %7143 = vmatpush1.bf16.msra.mxu0 %v7664_v44  ;;  %v7865_v8 = vcombine.high %v3970_v41, %v3974_v22  ;;  %v3834_v44 = vld [vmem:[%s8601_s27 + $0x310] sm:$0xff]  ;;  %v7864_v58 = vcombine.low %v3970_v41, %v3974_v22 }
 0x639   : > { %7144 = vmatprep.subr.bf16.mxu0 %v7657_v40  ;;  %v3962_v40 = vld [vmem:[%s8601_s27 + $0x710] sm:$0xff] }
 0x63a   : > { %7184 = vmatpush1.bf16.msra.mxu1 %v7792_v7  ;;  %v3838_v7 = vld [vmem:[%s8601_s27 + $0x330] sm:$0xff] }
 0x63b   : > { %7185 = vmatprep.subr.bf16.mxu1 %v7785_v39  ;;  %v3966_v39 = vld [vmem:[%s8601_s27 + $0x730] sm:$0xff]  ;;  %v7729_v31 = vcombine.high %v3834_v44, %v3838_v7  ;;  %v7728_v28 = vcombine.low %v3834_v44, %v3838_v7 }
 0x63c   : > { %7145 = vmatpush1.bf16.msra.mxu0 %v7656_v13  ;;  %v7857_v5 = vcombine.high %v3962_v40, %v3966_v39  ;;  %v3826_v13 = vld [vmem:[%s8601_s27 + $0x2d0] sm:$0xff]  ;;  %v7856_v17 = vcombine.low %v3962_v40, %v3966_v39  ;;  %v6884_v39 = vadd.f32 %v10500_v6, %v10495_v25 }
 0x63d   : > { %7146 = vmatprep.subr.bf16.mxu0 %v7649_v14  ;;  %v3954_v14 = vld [vmem:[%s8601_s27 + $0x6d0] sm:$0xff] }
 0x63e   : > { %7186 = vmatpush1.bf16.msra.mxu1 %v7784_v48  ;;  %v3830_v48 = vld [vmem:[%s8601_s27 + $0x2f0] sm:$0xff] }
 0x63f   : > { %7187 = vmatprep.subr.bf16.mxu1 %v7777_v24  ;;  %v3958_v24 = vld [vmem:[%s8601_s27 + $0x6f0] sm:$0xff]  ;;  %v7721_v36 = vcombine.high %v3826_v13, %v3830_v48  ;;  %v7720_v26 = vcombine.low %v3826_v13, %v3830_v48 }
 0x640   : > { %7147 = vmatpush1.bf16.msra.mxu0 %v7648_v46  ;;  %v7849_v4 = vcombine.high %v3954_v14, %v3958_v24  ;;  %v3818_v46 = vld [vmem:[%s8601_s27 + $0x290] sm:$0xff]  ;;  %v7848_v0 = vcombine.low %v3954_v14, %v3958_v24  ;;  %v6886_v14 = vadd.f32 %v10505_v10, %v10503_v55 }
 0x641   : > { %7148 = vmatprep.subr.bf16.mxu0 %v7641_v2  ;;  %v3946_v2 = vld [vmem:[%s8601_s27 + $0x690] sm:$0xff] }
 0x642   : > { %7188 = vmatpush1.bf16.msra.mxu1 %v7776_v9  ;;  %v3822_v9 = vld [vmem:[%s8601_s27 + $0x2b0] sm:$0xff] }
 0x643   : > { %7189 = vmatprep.subr.bf16.mxu1 %v7769_v30  ;;  %v3950_v30 = vld [vmem:[%s8601_s27 + $0x6b0] sm:$0xff]  ;;  %v7713_v60 = vcombine.high %v3818_v46, %v3822_v9  ;;  %v7712_v52 = vcombine.low %v3818_v46, %v3822_v9 }
 0x644   : > { %7149 = vmatpush1.bf16.msra.mxu0 %v7640_v37  ;;  %v7841_v32 = vcombine.high %v3946_v2, %v3950_v30  ;;  %v3810_v37 = vld [vmem:[%s8601_s27 + $0x250] sm:$0xff]  ;;  %v7840_v62 = vcombine.low %v3946_v2, %v3950_v30 }
 0x645   : > { %7150 = vmatprep.subr.bf16.mxu0 %v7633_v50  ;;  %v3938_v50 = vld [vmem:[%s8601_s27 + $0x650] sm:$0xff] }
 0x646   : > { %7190 = vmatpush1.bf16.msra.mxu1 %v7768_v23  ;;  %v3814_v23 = vld [vmem:[%s8601_s27 + $0x270] sm:$0xff] }
 0x647   : > { %7191 = vmatprep.subr.bf16.mxu1 %v7761_v20  ;;  %v3942_v20 = vld [vmem:[%s8601_s27 + $0x670] sm:$0xff]  ;;  %v7705_v47 = vcombine.high %v3810_v37, %v3814_v23  ;;  %v7704_v53 = vcombine.low %v3810_v37, %v3814_v23 }
 0x648   : > { %7151 = vmatpush1.bf16.msra.mxu0 %v7632_v16  ;;  %v7833_v11 = vcombine.high %v3938_v50, %v3942_v20  ;;  %v3802_v16 = vld [vmem:[%s8601_s27 + $0x210] sm:$0xff]  ;;  %v7832_v54 = vcombine.low %v3938_v50, %v3942_v20 }
 0x649   : > { %7152 = vmatprep.subr.bf16.mxu0 %v7753_v33  ;;  %v3930_v33 = vld [vmem:[%s8601_s27 + $0x610] sm:$0xff] }
 0x64a   : > { %7192 = vmatpush1.bf16.msra.mxu1 %v7760_v19  ;;  %v3806_v19 = vld [vmem:[%s8601_s27 + $0x230] sm:$0xff] }
 0x64b   : > { %7193 = vmatprep.subr.bf16.mxu1 %v7881_v49  ;;  %v3934_v49 = vld [vmem:[%s8601_s27 + $0x630] sm:$0xff]  ;;  %v7697_v38 = vcombine.high %v3802_v16, %v3806_v19  ;;  %v7696_v27 = vcombine.low %v3802_v16, %v3806_v19 }
 0x64c   : > { %7153 = vmatpush2.bf16.msra.mxu0 %v7752_v51  ;;  %v7825_v15 = vcombine.high %v3930_v33, %v3934_v49  ;;  %v4050_v51 = vld [vmem:[%s8601_s27 + $0x9d0] sm:$0xff]  ;;  %v7824_v12 = vcombine.low %v3930_v33, %v3934_v49 }
 0x64d   : > { %7154 = vmatprep.subr.bf16.mxu0 %v7745_v63  ;;  %v4178_v63 = vld [vmem:[%s8601_s27 + $0xdd0] sm:$0xff] }
 0x64e   : > { %7194 = vmatpush2.bf16.msra.mxu1 %v7880_v45  ;;  %v4054_v45 = vld [vmem:[%s8601_s27 + $0x9f0] sm:$0xff] }
 0x64f   : > { %7195 = vmatprep.subr.bf16.mxu1 %v7873_v21  ;;  %v4182_v21 = vld [vmem:[%s8601_s27 + $0xdf0] sm:$0xff]  ;;  %v7945_v41 = vcombine.high %v4050_v51, %v4054_v45  ;;  %v7944_v44 = vcombine.low %v4050_v51, %v4054_v45 }
 0x650   : > { %7155 = vmatpush2.bf16.msra.mxu0 %v7744_v59  ;;  %v8073_v22 = vcombine.high %v4178_v63, %v4182_v21  ;;  %v4042_v59 = vld [vmem:[%s8601_s27 + $0x990] sm:$0xff]  ;;  %v8072_v7 = vcombine.low %v4178_v63, %v4182_v21 }
 0x651   : > { %7156 = vmatprep.subr.bf16.mxu0 %v7737_v57  ;;  %v4170_v57 = vld [vmem:[%s8601_s27 + $0xd90] sm:$0xff] }
 0x652   : > { %7196 = vmatpush2.bf16.msra.mxu1 %v7872_v56  ;;  %v4046_v56 = vld [vmem:[%s8601_s27 + $0x9b0] sm:$0xff] }
 0x653   : > { %7197 = vmatprep.subr.bf16.mxu1 %v7865_v8  ;;  %v4174_v8 = vld [vmem:[%s8601_s27 + $0xdb0] sm:$0xff]  ;;  %v7937_v40 = vcombine.high %v4042_v59, %v4046_v56  ;;  %v7936_v25 = vcombine.low %v4042_v59, %v4046_v56 }
 0x654   : > { %7157 = vmatpush2.bf16.msra.mxu0 %v7736_v35  ;;  %v8065_v35 = vcombine.high %v4170_v57, %v4174_v8  ;;  %v4162_v13 = vld [vmem:[%s8601_s27 + $0xd50] sm:$0xff] }
 0x655   : > { %7158 = vmatprep.subr.bf16.mxu0 %v7729_v31  ;;  %v4038_v31 = vld [vmem:[%s8601_s27 + $0x970] sm:$0xff] }
 0x656   : > { %7198 = vmatpush2.bf16.msra.mxu1 %v7864_v58  ;;  %v4034_v58 = vld [vmem:[%s8601_s27 + $0x950] sm:$0xff] }
 0x657   : > { %7199 = vmatprep.subr.bf16.mxu1 %v7857_v5  ;;  %v4166_v48 = vld [vmem:[%s8601_s27 + $0xd70] sm:$0xff]  ;;  %v7928_v37 = vcombine.low %v4034_v58, %v4038_v31 }
 0x658   : > { %7159 = vmatpush2.bf16.msra.mxu0 %v7728_v28  ;;  %v8057_v55 = vcombine.high %v4162_v13, %v4166_v48  ;;  %v4026_v10 = vld [vmem:[%s8601_s27 + $0x910] sm:$0xff]  ;;  %v8056_v50 = vcombine.low %v4162_v13, %v4166_v48 }
 0x659   : > { %7160 = vmatprep.subr.bf16.mxu0 %v7721_v36  ;;  %v7929_v36 = vcombine.high %v4034_v58, %v4038_v31  ;;  %v4030_v2 = vld [vmem:[%s8601_s27 + $0x930] sm:$0xff] }
 0x65a   : > { %7200 = vmatpush2.bf16.msra.mxu1 %v7856_v17  ;;  %v8064_v17 = vcombine.low %v4170_v57, %v4174_v8  ;;  %v7921_v20 = vcombine.high %v4026_v10, %v4030_v2  ;;  %v4146_v16 = vld [vmem:[%s8601_s27 + $0xcd0] sm:$0xff]  ;;  %v7920_v33 = vcombine.low %v4026_v10, %v4030_v2 }
 0x65b   : > { %7201 = vmatprep.subr.bf16.mxu1 %v7849_v4  ;;  %v4150_v19 = vld [vmem:[%s8601_s27 + $0xcf0] sm:$0xff] }
 0x65c   : > { %7161 = vmatpush2.bf16.msra.mxu0 %v7720_v26  ;;  %v4154_v26 = vld [vmem:[%s8601_s27 + $0xd10] sm:$0xff]  ;;  %v8040_v21 = vcombine.low %v4146_v16, %v4150_v19 }
 0x65d   : > { %7162 = vmatprep.subr.bf16.mxu0 %v7713_v60  ;;  %v4138_v51 = vld [vmem:[%s8601_s27 + $0xc90] sm:$0xff] }
 0x65e   : > { %7202 = vmatpush2.bf16.msra.mxu1 %v7848_v0  ;;  %v4158_v0 = vld [vmem:[%s8601_s27 + $0xd30] sm:$0xff] }
 0x65f   : > { %7203 = vmatprep.subr.bf16.mxu1 %v7841_v32  ;;  %v8048_v49 = vcombine.low %v4154_v26, %v4158_v0  ;;  %v4142_v45 = vld [vmem:[%s8601_s27 + $0xcb0] sm:$0xff] }
 0x660   : > { %7163 = vmatpush2.bf16.msra.mxu0 %v7712_v52  ;;  %v4130_v59 = vld [vmem:[%s8601_s27 + $0xc50] sm:$0xff]  ;;  %v8032_v8 = vcombine.low %v4138_v51, %v4142_v45 }
 0x661   : > { %7164 = vmatprep.subr.bf16.mxu0 %v7705_v47  ;;  %v4018_v47 = vld [vmem:[%s8601_s27 + $0x8d0] sm:$0xff] }
 0x662   : > { %7204 = vmatpush2.bf16.msra.mxu1 %v7840_v62  ;;  %v8049_v62 = vcombine.high %v4154_v26, %v4158_v0  ;;  %v4134_v56 = vld [vmem:[%s8601_s27 + $0xc70] sm:$0xff] }
 0x663   : > { %7205 = vmatprep.subr.bf16.mxu1 %v7833_v11  ;;  %v4022_v11 = vld [vmem:[%s8601_s27 + $0x8f0] sm:$0xff] }
 0x664   : > { %7165 = vmatpush2.bf16.msra.mxu0 %v7704_v53  ;;  %v7913_v53 = vcombine.high %v4018_v47, %v4022_v11  ;;  %v7912_v63 = vcombine.low %v4018_v47, %v4022_v11  ;;  %v4126_v58 = vld [vmem:[%s8601_s27 + $0xc30] sm:$0xff] }
 0x665   : > { %7166 = vmatprep.subr.bf16.mxu0 %v7697_v38  ;;  %v4010_v38 = vld [vmem:[%s8601_s27 + $0x890] sm:$0xff] }
 0x666   : > { %7206 = vmatpush2.bf16.msra.mxu1 %v7832_v54  ;;  %v8041_v54 = vcombine.high %v4146_v16, %v4150_v19  ;;  %v4238_v10 = vld [vmem:[%s8601_s27 + $0xfb0] sm:$0xff] }
 0x667   : > { %7207 = vmatprep.subr.bf16.mxu1 %v7825_v15  ;;  %v4014_v15 = vld [vmem:[%s8601_s27 + $0x8b0] sm:$0xff] }
 0x668   : > { %7167 = vmatpush2.bf16.msra.mxu0 %v7696_v27  ;;  %v7905_v27 = vcombine.high %v4010_v38, %v4014_v15  ;;  %v7904_v57 = vcombine.low %v4010_v38, %v4014_v15  ;;  %v4090_v47 = vld [vmem:[%s8601_s27 + $0xb10] sm:$0xff] }
 0x669   : > { %7218 = vmatprep.subr.bf16.mxu0 %v7945_v41  ;;  %v4002_v41 = vld [vmem:[%s8601_s27 + $0x850] sm:$0xff] }
 0x66a   : > { %7208 = vmatpush2.bf16.msra.mxu1 %v7824_v12  ;;  %v8033_v12 = vcombine.high %v4138_v51, %v4142_v45  ;;  %v4094_v11 = vld [vmem:[%s8601_s27 + $0xb30] sm:$0xff] }
 0x66b   : > { %7259 = vmatprep.subr.bf16.mxu1 %v8073_v22  ;;  %v6924_v5 = vpop.f32.mrf.mxu0  ;;  %7169 = vmatmul.mubr.bf16.vlgmr.msra.gmra.mxu0 %v10275_v43  ;;  %v4006_v22 = vld [vmem:[%s8601_s27 + $0x870] sm:$0xff] }
 0x66c   : > { %v6925_v24 = vadd.f32 %v6924_v5, %v6884_v39  ;;  %7219 = vmatpush1.bf16.msra.mxu0 %v7944_v44  ;;  %7250 = vmatprep.mubr.bf16.mxu0 %v10283_v3  ;;  %v7897_v44 = vcombine.high %v4002_v41, %v4006_v22  ;;  %v3998_v39 = vld [vmem:[%s8601_s27 + $0x830] sm:$0xff]  ;;  %v7896_v31 = vcombine.low %v4002_v41, %v4006_v22 }
 0x66d   : > { %v6965_v28 = vpop.f32.mrf.mxu1  ;;  %7210 = vmatmul.mubr.bf16.vlgmr.msra.gmra.mxu1 %v10279_v61  ;;  %v6926_v6 = vpop.f32.mrf.mxu0  ;;  %7220 = vmatprep.subr.bf16.mxu0 %v7937_v40  ;;  %v3994_v40 = vld [vmem:[%s8601_s27 + $0x810] sm:$0xff]  ;;  %v8024_v5 = vcombine.low %v4130_v59, %v4134_v56 }
 0x66e   : > { %7260 = vmatpush1.bf16.msra.mxu1 %v8072_v7  ;;  %v6966_v4 = vadd.f32 %v6965_v28, %v6925_v24  ;;  %v6927_v46 = vadd.f32 %v6926_v6, %v6886_v14  ;;  %7291 = vmatprep.mubr.bf16.mxu1 %v10288_v34  ;;  %v8025_v7 = vcombine.high %v4130_v59, %v4134_v56  ;;  %v4114_v14 = vld [vmem:[%s8601_s27 + $0xbd0] sm:$0xff] }
 0x66f   : > { %v6967_v9 = vpop.f32.mrf.mxu1  ;;  %7261 = vmatprep.subr.bf16.mxu1 %v8065_v35  ;;  %v6928_v30 = vpop.f32.mrf.mxu0  ;;  %v4122_v35 = vld [vmem:[%s8601_s27 + $0xc10] sm:$0xff]  ;;  %v7889_v13 = vcombine.high %v3994_v40, %v3998_v39  ;;  %v7888_v6 = vcombine.low %v3994_v40, %v3998_v39 }
 0x670   : > { %7464 = vst [vmem:[%s8616_s16] sm:$0xff] %v6966_v4  ;;  %v6968_v60 = vadd.f32 %v6967_v9, %v6927_v46  ;;  %7221 = vmatpush1.bf16.msra.mxu0 %v7936_v25  ;;  %v8017_v48 = vcombine.high %v4122_v35, %v4126_v58  ;;  %v4118_v24 = vld [vmem:[%s8601_s27 + $0xbf0] sm:$0xff] }
 0x671   : > { %v6969_v32 = vpop.f32.mrf.mxu1  ;;  %v6929_v23 = vpop.f32.mrf.mxu0  ;;  %7222 = vmatprep.subr.bf16.mxu0 %v7929_v36  ;;  %v4242_v28 = vld [vmem:[%s8601_s27 + $0xfd0] sm:$0xff]  ;;  %v8009_v36 = vcombine.high %v4114_v14, %v4118_v24  ;;  %v8008_v2 = vcombine.low %v4114_v14, %v4118_v24 }
 0x672   : > { %7262 = vmatpush1.bf16.msra.mxu1 %v8064_v17  ;;  %7465 = vst [vmem:[%s8616_s16 + $0x8] sm:$0xff] %v6968_v60  ;;  %v4246_v25 = vld [vmem:[%s8601_s27 + $0xff0] sm:$0xff]  ;;  %v8016_v17 = vcombine.low %v4122_v35, %v4126_v58 }
 0x673   : > { %v6970_v52 = vpop.f32.mrf.mxu1  ;;  %7263 = vmatprep.subr.bf16.mxu1 %v8057_v55  ;;  %v8137_v4 = vcombine.high %v4242_v28, %v4246_v25  ;;  %v4106_v46 = vld [vmem:[%s8601_s27 + $0xb90] sm:$0xff]  ;;  %v8136_v30 = vcombine.low %v4242_v28, %v4246_v25 }
 0x674   : > { %7223 = vmatpush1.bf16.msra.mxu0 %v7928_v37  ;;  %v4110_v9 = vld [vmem:[%s8601_s27 + $0xbb0] sm:$0xff] }
 0x675   : > { %7224 = vmatprep.subr.bf16.mxu0 %v7921_v20  ;;  %v4234_v55 = vld [vmem:[%s8601_s27 + $0xf90] sm:$0xff]  ;;  %v8001_v26 = vcombine.high %v4106_v46, %v4110_v9 }
 0x676   : > { %7264 = vmatpush1.bf16.msra.mxu1 %v8056_v50  ;;  %v8129_v0 = vcombine.high %v4234_v55, %v4238_v10  ;;  %v4098_v60 = vld [vmem:[%s8601_s27 + $0xb50] sm:$0xff]  ;;  %v8000_v50 = vcombine.low %v4106_v46, %v4110_v9  ;;  %v8128_v20 = vcombine.low %v4234_v55, %v4238_v10  ;;  %v3795_v46 = vld [vmem:[%s8601_s27 + $0x1d8] sm:$0xff] }
 0x677   : > { %7265 = vmatprep.subr.bf16.mxu1 %v8049_v62  ;;  %v4102_v32 = vld [vmem:[%s8601_s27 + $0xb70] sm:$0xff]  ;;  %v3799_v9 = vld [vmem:[%s8601_s27 + $0x1f8] sm:$0xff] }
 0x678   : > { %7225 = vmatpush1.bf16.msra.mxu0 %v7920_v33  ;;  %v4226_v37 = vld [vmem:[%s8601_s27 + $0xf50] sm:$0xff]  ;;  %v7993_v52 = vcombine.high %v4098_v60, %v4102_v32  ;;  %v7992_v33 = vcombine.low %v4098_v60, %v4102_v32  ;;  %v3923_v55 = vld [vmem:[%s8601_s27 + $0x5d8] sm:$0xff] }
 0x679   : > { %7226 = vmatprep.subr.bf16.mxu0 %v7913_v53  ;;  %v4230_v23 = vld [vmem:[%s8601_s27 + $0xf70] sm:$0xff]  ;;  %v7985_v53 = vcombine.high %v4090_v47, %v4094_v11  ;;  %v3927_v10 = vld [vmem:[%s8601_s27 + $0x5f8] sm:$0xff] }
 0x67a   : > { %7266 = vmatpush1.bf16.msra.mxu1 %v8048_v49  ;;  %v8121_v62 = vcombine.high %v4226_v37, %v4230_v23  ;;  %v4218_v16 = vld [vmem:[%s8601_s27 + $0xf10] sm:$0xff]  ;;  %v8120_v49 = vcombine.low %v4226_v37, %v4230_v23  ;;  %v3787_v60 = vld [vmem:[%s8601_s27 + $0x198] sm:$0xff] }
 0x67b   : > { %7267 = vmatprep.subr.bf16.mxu1 %v8041_v54  ;;  %v4222_v19 = vld [vmem:[%s8601_s27 + $0xf30] sm:$0xff]  ;;  %v3791_v32 = vld [vmem:[%s8601_s27 + $0x1b8] sm:$0xff] }
 0x67c   : > { %7227 = vmatpush1.bf16.msra.mxu0 %v7912_v63  ;;  %v8113_v54 = vcombine.high %v4218_v16, %v4222_v19  ;;  %v4082_v38 = vld [vmem:[%s8601_s27 + $0xad0] sm:$0xff]  ;;  %v7984_v63 = vcombine.low %v4090_v47, %v4094_v11  ;;  %v3915_v37 = vld [vmem:[%s8601_s27 + $0x598] sm:$0xff] }
 0x67d   : > { %7228 = vmatprep.subr.bf16.mxu0 %v7905_v27  ;;  %v4086_v15 = vld [vmem:[%s8601_s27 + $0xaf0] sm:$0xff]  ;;  %v3919_v23 = vld [vmem:[%s8601_s27 + $0x5b8] sm:$0xff] }
 0x67e   : > { %7268 = vmatpush1.bf16.msra.mxu1 %v8040_v21  ;;  %v4210_v51 = vld [vmem:[%s8601_s27 + $0xed0] sm:$0xff]  ;;  %v8112_v21 = vcombine.low %v4218_v16, %v4222_v19  ;;  %v7977_v27 = vcombine.high %v4082_v38, %v4086_v15  ;;  %v3779_v47 = vld [vmem:[%s8601_s27 + $0x158] sm:$0xff] }
 0x67f   : > { %7269 = vmatprep.subr.bf16.mxu1 %v8033_v12  ;;  %v4214_v45 = vld [vmem:[%s8601_s27 + $0xef0] sm:$0xff]  ;;  %v3783_v11 = vld [vmem:[%s8601_s27 + $0x178] sm:$0xff] }
 0x680   : > { %7229 = vmatpush1.bf16.msra.mxu0 %v7904_v57  ;;  %v8105_v12 = vcombine.high %v4210_v51, %v4214_v45  ;;  %v4074_v41 = vld [vmem:[%s8601_s27 + $0xa90] sm:$0xff]  ;;  %v7976_v57 = vcombine.low %v4082_v38, %v4086_v15  ;;  %v3907_v19 = vld [vmem:[%s8601_s27 + $0x558] sm:$0xff]  ;;  %v7810_v38 = vcombine.low %v3915_v37, %v3919_v23  ;;  %v7675_v15 = vcombine.high %v3779_v47, %v3783_v11 }
 0x681   : > { %7230 = vmatprep.subr.bf16.mxu0 %v7897_v44  ;;  %v4078_v22 = vld [vmem:[%s8601_s27 + $0xab0] sm:$0xff] }
 0x682   : > { %7270 = vmatpush1.bf16.msra.mxu1 %v8032_v8  ;;  %v4202_v59 = vld [vmem:[%s8601_s27 + $0xe90] sm:$0xff]  ;;  %v8104_v8 = vcombine.low %v4210_v51, %v4214_v45  ;;  %v7969_v44 = vcombine.high %v4074_v41, %v4078_v22 }
 0x683   : > { %7271 = vmatprep.subr.bf16.mxu1 %v8025_v7  ;;  %v4206_v56 = vld [vmem:[%s8601_s27 + $0xeb0] sm:$0xff] }
 0x684   : > { %7231 = vmatpush1.bf16.msra.mxu0 %v7896_v31  ;;  %v8097_v7 = vcombine.high %v4202_v59, %v4206_v56  ;;  %v4066_v40 = vld [vmem:[%s8601_s27 + $0xa50] sm:$0xff]  ;;  %v7968_v31 = vcombine.low %v4074_v41, %v4078_v22  ;;  %v3903_v41 = vld [vmem:[%s8601_s27 + $0x538] sm:$0xff] }
 0x685   : > { %7232 = vmatprep.subr.bf16.mxu0 %v7889_v13  ;;  %v4070_v39 = vld [vmem:[%s8601_s27 + $0xa70] sm:$0xff] }
 0x686   : > { %7272 = vmatpush1.bf16.msra.mxu1 %v8024_v5  ;;  %v4194_v35 = vld [vmem:[%s8601_s27 + $0xe50] sm:$0xff]  ;;  %v8096_v5 = vcombine.low %v4202_v59, %v4206_v56  ;;  %v7961_v13 = vcombine.high %v4066_v40, %v4070_v39  ;;  %v7674_v59 = vcombine.low %v3779_v47, %v3783_v11  ;;  %v3987_v47 = vld [vmem:[%s8601_s27 + $0x7d8] sm:$0xff] }
 0x687   : > { %7273 = vmatprep.subr.bf16.mxu1 %v8017_v48  ;;  %v4198_v58 = vld [vmem:[%s8601_s27 + $0xe70] sm:$0xff]  ;;  %v3991_v11 = vld [vmem:[%s8601_s27 + $0x7f8] sm:$0xff] }
 0x688   : > { %7233 = vmatpush1.bf16.msra.mxu0 %v7888_v6  ;;  %v8089_v48 = vcombine.high %v4194_v35, %v4198_v58  ;;  %v4058_v14 = vld [vmem:[%s8601_s27 + $0xa10] sm:$0xff]  ;;  %v7960_v6 = vcombine.low %v4066_v40, %v4070_v39  ;;  %v3767_v40 = vld [vmem:[%s8601_s27 + $0xf8] sm:$0xff] }
 0x689   : > { %7234 = vmatprep.subr.bf16.mxu0 %v8009_v36  ;;  %v4062_v24 = vld [vmem:[%s8601_s27 + $0xa30] sm:$0xff]  ;;  %v3891_v39 = vld [vmem:[%s8601_s27 + $0x4d8] sm:$0xff] }
 0x68a   : > { %7274 = vmatpush1.bf16.msra.mxu1 %v8016_v17  ;;  %v4186_v28 = vld [vmem:[%s8601_s27 + $0xe10] sm:$0xff]  ;;  %v8088_v17 = vcombine.low %v4194_v35, %v4198_v58  ;;  %v7953_v36 = vcombine.high %v4058_v14, %v4062_v24  ;;  %v3895_v35 = vld [vmem:[%s8601_s27 + $0x4f8] sm:$0xff] }
 0x68b   : > { %7275 = vmatprep.subr.bf16.mxu1 %v8137_v4  ;;  %v4190_v25 = vld [vmem:[%s8601_s27 + $0xe30] sm:$0xff] }
 0x68c   : > { %7235 = vmatpush2.bf16.msra.mxu0 %v8008_v2  ;;  %v8081_v4 = vcombine.high %v4186_v28, %v4190_v25  ;;  %v7952_v2 = vcombine.low %v4058_v14, %v4062_v24  ;;  %v3883_v14 = vld [vmem:[%s8601_s27 + $0x498] sm:$0xff] }
 0x68d   : > { %7236 = vmatprep.subr.bf16.mxu0 %v8001_v26  ;;  %v7691_v26 = vcombine.high %v3795_v46, %v3799_v9  ;;  %v3887_v24 = vld [vmem:[%s8601_s27 + $0x4b8] sm:$0xff] }
 0x68e   : > { %7276 = vmatpush2.bf16.msra.mxu1 %v8136_v30  ;;  %v8080_v30 = vcombine.low %v4186_v28, %v4190_v25  ;;  %v7786_v25 = vcombine.low %v3891_v39, %v3895_v35 }
 0x68f   : > { %7277 = vmatprep.subr.bf16.mxu1 %v8129_v0  ;;  %v7819_v0 = vcombine.high %v3923_v55, %v3927_v10 }
 0x690   : > { %7237 = vmatpush2.bf16.msra.mxu0 %v8000_v50  ;;  %v7690_v50 = vcombine.low %v3795_v46, %v3799_v9  ;;  %v3875_v46 = vld [vmem:[%s8601_s27 + $0x458] sm:$0xff] }
 0x691   : > { %7238 = vmatprep.subr.bf16.mxu0 %v7993_v52  ;;  %v7683_v52 = vcombine.high %v3787_v60, %v3791_v32  ;;  %v3879_v9 = vld [vmem:[%s8601_s27 + $0x478] sm:$0xff] }
 0x692   : > { %7278 = vmatpush2.bf16.msra.mxu1 %v8128_v20  ;;  %v7818_v20 = vcombine.low %v3923_v55, %v3927_v10  ;;  %v7778_v10 = vcombine.low %v3883_v14, %v3887_v24 }
 0x693   : > { %7279 = vmatprep.subr.bf16.mxu1 %v8121_v62  ;;  %v7811_v62 = vcombine.high %v3915_v37, %v3919_v23  ;;  %v7770_v23 = vcombine.low %v3875_v46, %v3879_v9 }
 0x694   : > { %7239 = vmatpush2.bf16.msra.mxu0 %v7992_v33  ;;  %v3911_v33 = vld [vmem:[%s8601_s27 + $0x578] sm:$0xff] }
 0x695   : > { %7240 = vmatprep.subr.bf16.mxu0 %v7985_v53  ;;  %v7682_v53 = vcombine.low %v3787_v60, %v3791_v32  ;;  %v7803_v45 = vcombine.high %v3907_v19, %v3911_v33  ;;  %v3867_v60 = vld [vmem:[%s8601_s27 + $0x418] sm:$0xff] }
 0x696   : > { %7280 = vmatpush2.bf16.msra.mxu1 %v8120_v49  ;;  %v3871_v32 = vld [vmem:[%s8601_s27 + $0x438] sm:$0xff] }
 0x697   : > { %7281 = vmatprep.subr.bf16.mxu1 %v8113_v54 }
 0x698   : > { %7241 = vmatpush2.bf16.msra.mxu0 %v7984_v63  ;;  %v3771_v63 = vld [vmem:[%s8601_s27 + $0x118] sm:$0xff] }
 0x699   : > { %7242 = vmatprep.subr.bf16.mxu0 %v7977_v27 }
 0x69a   : > { %7282 = vmatpush2.bf16.msra.mxu1 %v8112_v21  ;;  %v3775_v21 = vld [vmem:[%s8601_s27 + $0x138] sm:$0xff] }
 0x69b   : > { %7283 = vmatprep.subr.bf16.mxu1 %v8105_v12  ;;  %v3899_v12 = vld [vmem:[%s8601_s27 + $0x518] sm:$0xff] }
 0x69c   : > { %7243 = vmatpush2.bf16.msra.mxu0 %v7976_v57  ;;  %v7802_v57 = vcombine.low %v3907_v19, %v3911_v33  ;;  %v7794_v58 = vcombine.low %v3899_v12, %v3903_v41  ;;  %v7762_v33 = vcombine.low %v3867_v60, %v3871_v32 }
 0x69d   : > { %7244 = vmatprep.subr.bf16.mxu0 %v7969_v44 }
 0x69e   : > { %7284 = vmatpush2.bf16.msra.mxu1 %v8104_v8  ;;  %v7667_v8 = vcombine.high %v3771_v63, %v3775_v21 }
 0x69f   : > { %7285 = vmatprep.subr.bf16.mxu1 %v8097_v7  ;;  %v3763_v7 = vld [vmem:[%s8601_s27 + $0xd8] sm:$0xff] }
 0x6a0   : > { %7245 = vmatpush2.bf16.msra.mxu0 %v7968_v31  ;;  %v7659_v31 = vcombine.high %v3763_v7, %v3767_v40  ;;  %v7658_v28 = vcombine.low %v3763_v7, %v3767_v40 }
 0x6a1   : > { %7246 = vmatprep.subr.bf16.mxu0 %v7961_v13  ;;  %v3755_v13 = vld [vmem:[%s8601_s27 + $0x98] sm:$0xff] }
 0x6a2   : > { %7286 = vmatpush2.bf16.msra.mxu1 %v8096_v5  ;;  %v7787_v5 = vcombine.high %v3891_v39, %v3895_v35  ;;  %v3835_v39 = vld [vmem:[%s8601_s27 + $0x318] sm:$0xff] }
 0x6a3   : > { %7287 = vmatprep.subr.bf16.mxu1 %v8089_v48  ;;  %v3759_v48 = vld [vmem:[%s8601_s27 + $0xb8] sm:$0xff] }
 0x6a4   : > { %7247 = vmatpush2.bf16.msra.mxu0 %v7960_v6  ;;  %v7651_v6 = vcombine.high %v3755_v13, %v3759_v48  ;;  %v7650_v55 = vcombine.low %v3755_v13, %v3759_v48  ;;  %v3839_v35 = vld [vmem:[%s8601_s27 + $0x338] sm:$0xff] }
 0x6a5   : > { %7248 = vmatprep.subr.bf16.mxu0 %v7953_v36  ;;  %v3747_v36 = vld [vmem:[%s8601_s27 + $0x58] sm:$0xff]  ;;  %v7731_v13 = vcombine.high %v3835_v39, %v3839_v35 }
 0x6a6   : > { %7288 = vmatpush2.bf16.msra.mxu1 %v8088_v17  ;;  %v7779_v17 = vcombine.high %v3883_v14, %v3887_v24  ;;  %v3827_v14 = vld [vmem:[%s8601_s27 + $0x2d8] sm:$0xff] }
 0x6a7   : > { %7289 = vmatprep.subr.bf16.mxu1 %v8081_v4  ;;  %v3751_v4 = vld [vmem:[%s8601_s27 + $0x78] sm:$0xff] }
 0x6a8   : > { %7249 = vmatpush2.bf16.msra.mxu0 %v7952_v2  ;;  %v7643_v2 = vcombine.high %v3747_v36, %v3751_v4  ;;  %v7642_v37 = vcombine.low %v3747_v36, %v3751_v4  ;;  %v3831_v24 = vld [vmem:[%s8601_s27 + $0x2f8] sm:$0xff] }
 0x6a9   : > { %7300 = vmatprep.subr.bf16.mxu0 %v7691_v26  ;;  %v3739_v26 = vld [vmem:[%s8601_s27 + $0x18] sm:$0xff]  ;;  %v7723_v36 = vcombine.high %v3827_v14, %v3831_v24 }
 0x6aa   : > { %7290 = vmatpush2.bf16.msra.mxu1 %v8080_v30  ;;  %v7771_v30 = vcombine.high %v3875_v46, %v3879_v9  ;;  %v3819_v46 = vld [vmem:[%s8601_s27 + $0x298] sm:$0xff] }
 0x6ab   : > { %7341 = vmatprep.subr.bf16.mxu1 %v7819_v0  ;;  %v10645_v16 = vpop.f32.mrf.mxu0  ;;  %7251 = vmatmul.mubr.bf16.vlgmr.msra.gmra.mxu0 %v10351_v29  ;;  %v3743_v0 = vld [vmem:[%s8601_s27 + $0x38] sm:$0xff] }
 0x6ac   : > { %7301 = vmatpush1.bf16.msra.mxu0 %v7690_v50  ;;  %7332 = vmatprep.mubr.bf16.mxu0 %v10229_v42  ;;  %v7795_v42 = vcombine.high %v3899_v12, %v3903_v41  ;;  %v7635_v50 = vcombine.high %v3739_v26, %v3743_v0  ;;  %v7634_v19 = vcombine.low %v3739_v26, %v3743_v0  ;;  %v3823_v9 = vld [vmem:[%s8601_s27 + $0x2b8] sm:$0xff] }
 0x6ad   : > { %v10650_v49 = vpop.f32.mrf.mxu1  ;;  %7292 = vmatmul.mubr.bf16.vlgmr.msra.gmra.mxu1 %v10355_v18  ;;  %v10653_v54 = vpop.f32.mrf.mxu0  ;;  %7302 = vmatprep.subr.bf16.mxu0 %v7683_v52  ;;  %v3859_v52 = vld [vmem:[%s8601_s27 + $0x3d8] sm:$0xff]  ;;  %v7882_v12 = vcombine.low %v3987_v47, %v3991_v11  ;;  %v7715_v26 = vcombine.high %v3819_v46, %v3823_v9 }
 0x6ae   : > { %7342 = vmatpush1.bf16.msra.mxu1 %v7818_v20  ;;  %7373 = vmatprep.mubr.bf16.mxu1 %v10231_v1  ;;  %v7666_v1 = vcombine.low %v3771_v63, %v3775_v21  ;;  %v7763_v20 = vcombine.high %v3867_v60, %v3871_v32  ;;  %v3979_v63 = vld [vmem:[%s8601_s27 + $0x798] sm:$0xff] }
 0x6af   : > { %v10655_v51 = vpop.f32.mrf.mxu1  ;;  %7343 = vmatprep.subr.bf16.mxu1 %v7811_v62  ;;  %v7010_v27 = vpop.f32.mrf.mxu0  ;;  %v3863_v62 = vld [vmem:[%s8601_s27 + $0x3f8] sm:$0xff] }
 0x6b0   : > { %7303 = vmatpush1.bf16.msra.mxu0 %v7682_v53  ;;  %v7755_v53 = vcombine.high %v3859_v52, %v3863_v62  ;;  %v3983_v21 = vld [vmem:[%s8601_s27 + $0x7b8] sm:$0xff]  ;;  %v7754_v27 = vcombine.low %v3859_v52, %v3863_v62 }
 0x6b1   : > { %v7051_v22 = vpop.f32.mrf.mxu1  ;;  %v7011_v56 = vpop.f32.mrf.mxu0  ;;  %7304 = vmatprep.subr.bf16.mxu0 %v7675_v15  ;;  %v3851_v15 = vld [vmem:[%s8601_s27 + $0x398] sm:$0xff] }
 0x6b2   : > { %7344 = vmatpush1.bf16.msra.mxu1 %v7810_v38  ;;  %v7883_v38 = vcombine.high %v3987_v47, %v3991_v11  ;;  %v7875_v22 = vcombine.high %v3979_v63, %v3983_v21  ;;  %v3847_v56 = vld [vmem:[%s8601_s27 + $0x378] sm:$0xff] }
 0x6b3   : > { %v7052_v44 = vpop.f32.mrf.mxu1  ;;  %7345 = vmatprep.subr.bf16.mxu1 %v7803_v45  ;;  %v3855_v45 = vld [vmem:[%s8601_s27 + $0x3b8] sm:$0xff] }
 0x6b4   : > { %7305 = vmatpush1.bf16.msra.mxu0 %v7674_v59  ;;  %v7747_v41 = vcombine.high %v3851_v15, %v3855_v45  ;;  %v3843_v59 = vld [vmem:[%s8601_s27 + $0x358] sm:$0xff]  ;;  %v7746_v44 = vcombine.low %v3851_v15, %v3855_v45 }
 0x6b5   : > { %7306 = vmatprep.subr.bf16.mxu0 %v7667_v8  ;;  %v3975_v8 = vld [vmem:[%s8601_s27 + $0x778] sm:$0xff]  ;;  %v7739_v7 = vcombine.high %v3843_v59, %v3847_v56 }
 0x6b6   : > { %7346 = vmatpush1.bf16.msra.mxu1 %v7802_v57  ;;  %v3971_v57 = vld [vmem:[%s8601_s27 + $0x758] sm:$0xff] }
 0x6b7   : > { %7347 = vmatprep.subr.bf16.mxu1 %v7795_v42  ;;  %v7874_v42 = vcombine.low %v3979_v63, %v3983_v21  ;;  %v7867_v40 = vcombine.high %v3971_v57, %v3975_v8  ;;  %v3811_v60 = vld [vmem:[%s8601_s27 + $0x258] sm:$0xff] }
 0x6b8   : > { %7307 = vmatpush1.bf16.msra.mxu0 %v7666_v1  ;;  %v3963_v1 = vld [vmem:[%s8601_s27 + $0x718] sm:$0xff] }
 0x6b9   : > { %7308 = vmatprep.subr.bf16.mxu0 %v7659_v31  ;;  %v7738_v31 = vcombine.low %v3843_v59, %v3847_v56  ;;  %v3815_v32 = vld [vmem:[%s8601_s27 + $0x278] sm:$0xff] }
 0x6ba   : > { %7348 = vmatpush1.bf16.msra.mxu1 %v7794_v58  ;;  %v3967_v58 = vld [vmem:[%s8601_s27 + $0x738] sm:$0xff]  ;;  %v7707_v52 = vcombine.high %v3811_v60, %v3815_v32 }
 0x6bb   : > { %7349 = vmatprep.subr.bf16.mxu1 %v7787_v5  ;;  %v7866_v5 = vcombine.low %v3971_v57, %v3975_v8  ;;  %v7859_v48 = vcombine.high %v3963_v1, %v3967_v58  ;;  %v3803_v47 = vld [vmem:[%s8601_s27 + $0x218] sm:$0xff] }
 0x6bc   : > { %7309 = vmatpush1.bf16.msra.mxu0 %v7658_v28  ;;  %v3955_v28 = vld [vmem:[%s8601_s27 + $0x6d8] sm:$0xff] }
 0x6bd   : > { %7310 = vmatprep.subr.bf16.mxu0 %v7651_v6  ;;  %v7730_v6 = vcombine.low %v3835_v39, %v3839_v35  ;;  %v3807_v11 = vld [vmem:[%s8601_s27 + $0x238] sm:$0xff]  ;;  %v7048_v35 = vadd.f32 %v10650_v49, %v10645_v16 }
 0x6be   : > { %7350 = vmatpush1.bf16.msra.mxu1 %v7786_v25  ;;  %v3959_v25 = vld [vmem:[%s8601_s27 + $0x6f8] sm:$0xff]  ;;  %v7699_v15 = vcombine.high %v3803_v47, %v3807_v11 }
 0x6bf   : > { %7351 = vmatprep.subr.bf16.mxu1 %v7779_v17  ;;  %v7858_v17 = vcombine.low %v3963_v1, %v3967_v58  ;;  %v7851_v4 = vcombine.high %v3955_v28, %v3959_v25  ;;  %v4051_v63 = vld [vmem:[%s8601_s27 + $0x9d8] sm:$0xff] }
 0x6c0   : > { %7311 = vmatpush1.bf16.msra.mxu0 %v7650_v55  ;;  %v3947_v55 = vld [vmem:[%s8601_s27 + $0x698] sm:$0xff] }
 0x6c1   : > { %7312 = vmatprep.subr.bf16.mxu0 %v7643_v2  ;;  %v7722_v2 = vcombine.low %v3827_v14, %v3831_v24  ;;  %v4055_v21 = vld [vmem:[%s8601_s27 + $0x9f8] sm:$0xff]  ;;  %v7050_v14 = vadd.f32 %v10655_v51, %v10653_v54 }
 0x6c2   : > { %7352 = vmatpush1.bf16.msra.mxu1 %v7778_v10  ;;  %v3951_v10 = vld [vmem:[%s8601_s27 + $0x6b8] sm:$0xff]  ;;  %v7947_v59 = vcombine.high %v4051_v63, %v4055_v21 }
 0x6c3   : > { %7353 = vmatprep.subr.bf16.mxu1 %v7771_v30  ;;  %v7850_v30 = vcombine.low %v3955_v28, %v3959_v25  ;;  %v7843_v0 = vcombine.high %v3947_v55, %v3951_v10  ;;  %v4043_v57 = vld [vmem:[%s8601_s27 + $0x998] sm:$0xff] }
 0x6c4   : > { %7313 = vmatpush1.bf16.msra.mxu0 %v7642_v37  ;;  %v3939_v37 = vld [vmem:[%s8601_s27 + $0x658] sm:$0xff] }
 0x6c5   : > { %7314 = vmatprep.subr.bf16.mxu0 %v7635_v50  ;;  %v7714_v50 = vcombine.low %v3819_v46, %v3823_v9  ;;  %v4047_v8 = vld [vmem:[%s8601_s27 + $0x9b8] sm:$0xff] }
 0x6c6   : > { %7354 = vmatpush1.bf16.msra.mxu1 %v7770_v23  ;;  %v3943_v23 = vld [vmem:[%s8601_s27 + $0x678] sm:$0xff]  ;;  %v7939_v39 = vcombine.high %v4043_v57, %v4047_v8  ;;  %v7938_v16 = vcombine.low %v4043_v57, %v4047_v8 }
 0x6c7   : > { %7355 = vmatprep.subr.bf16.mxu1 %v7763_v20  ;;  %v7842_v20 = vcombine.low %v3947_v55, %v3951_v10  ;;  %v7835_v62 = vcombine.high %v3939_v37, %v3943_v23  ;;  %v4035_v58 = vld [vmem:[%s8601_s27 + $0x958] sm:$0xff] }
 0x6c8   : > { %7315 = vmatpush1.bf16.msra.mxu0 %v7634_v19  ;;  %v3931_v19 = vld [vmem:[%s8601_s27 + $0x618] sm:$0xff] }
 0x6c9   : > { %7316 = vmatprep.subr.bf16.mxu0 %v7755_v53  ;;  %v7706_v53 = vcombine.low %v3811_v60, %v3815_v32  ;;  %v4027_v51 = vld [vmem:[%s8601_s27 + $0x918] sm:$0xff] }
 0x6ca   : > { %7356 = vmatpush1.bf16.msra.mxu1 %v7762_v33  ;;  %v3935_v33 = vld [vmem:[%s8601_s27 + $0x638] sm:$0xff] }
 0x6cb   : > { %7357 = vmatprep.subr.bf16.mxu1 %v7883_v38  ;;  %v7834_v38 = vcombine.low %v3939_v37, %v3943_v23  ;;  %v7827_v45 = vcombine.high %v3931_v19, %v3935_v33  ;;  %v4155_v46 = vld [vmem:[%s8601_s27 + $0xd18] sm:$0xff] }
 0x6cc   : > { %7317 = vmatpush2.bf16.msra.mxu0 %v7754_v27  ;;  %v4179_v27 = vld [vmem:[%s8601_s27 + $0xdd8] sm:$0xff] }
 0x6cd   : > { %7318 = vmatprep.subr.bf16.mxu0 %v7747_v41  ;;  %v7698_v41 = vcombine.low %v3803_v47, %v3807_v11  ;;  %v4159_v9 = vld [vmem:[%s8601_s27 + $0xd38] sm:$0xff] }
 0x6ce   : > { %7358 = vmatpush2.bf16.msra.mxu1 %v7882_v12  ;;  %v4183_v12 = vld [vmem:[%s8601_s27 + $0xdf8] sm:$0xff] }
 0x6cf   : > { %7359 = vmatprep.subr.bf16.mxu1 %v7875_v22  ;;  %v7826_v22 = vcombine.low %v3931_v19, %v3935_v33  ;;  %v8075_v56 = vcombine.high %v4179_v27, %v4183_v12  ;;  %v4019_v60 = vld [vmem:[%s8601_s27 + $0x8d8] sm:$0xff] }
 0x6d0   : > { %7319 = vmatpush2.bf16.msra.mxu0 %v7746_v44  ;;  %v4171_v44 = vld [vmem:[%s8601_s27 + $0xd98] sm:$0xff] }
 0x6d1   : > { %7320 = vmatprep.subr.bf16.mxu0 %v7739_v7  ;;  %v7946_v7 = vcombine.low %v4051_v63, %v4055_v21  ;;  %v4023_v32 = vld [vmem:[%s8601_s27 + $0x8f8] sm:$0xff] }
 0x6d2   : > { %7360 = vmatpush2.bf16.msra.mxu1 %v7874_v42  ;;  %v4175_v42 = vld [vmem:[%s8601_s27 + $0xdb8] sm:$0xff] }
 0x6d3   : > { %7361 = vmatprep.subr.bf16.mxu1 %v7867_v40  ;;  %v8074_v40 = vcombine.low %v4179_v27, %v4183_v12  ;;  %v8067_v1 = vcombine.high %v4171_v44, %v4175_v42  ;;  %v4147_v37 = vld [vmem:[%s8601_s27 + $0xcd8] sm:$0xff] }
 0x6d4   : > { %7321 = vmatpush2.bf16.msra.mxu0 %v7738_v31  ;;  %v4039_v31 = vld [vmem:[%s8601_s27 + $0x978] sm:$0xff] }
 0x6d5   : > { %7322 = vmatprep.subr.bf16.mxu0 %v7731_v13  ;;  %v4163_v13 = vld [vmem:[%s8601_s27 + $0xd58] sm:$0xff]  ;;  %v7931_v25 = vcombine.high %v4035_v58, %v4039_v31 }
 0x6d6   : > { %7362 = vmatpush2.bf16.msra.mxu1 %v7866_v5  ;;  %v4151_v23 = vld [vmem:[%s8601_s27 + $0xcf8] sm:$0xff] }
 0x6d7   : > { %7363 = vmatprep.subr.bf16.mxu1 %v7859_v48  ;;  %v4167_v48 = vld [vmem:[%s8601_s27 + $0xd78] sm:$0xff] }
 0x6d8   : > { %7323 = vmatpush2.bf16.msra.mxu0 %v7730_v6  ;;  %v8059_v54 = vcombine.high %v4163_v13, %v4167_v48  ;;  %v4011_v47 = vld [vmem:[%s8601_s27 + $0x898] sm:$0xff] }
 0x6d9   : > { %7324 = vmatprep.subr.bf16.mxu0 %v7723_v36  ;;  %v4015_v11 = vld [vmem:[%s8601_s27 + $0x8b8] sm:$0xff] }
 0x6da   : > { %7364 = vmatpush2.bf16.msra.mxu1 %v7858_v17  ;;  %v4139_v19 = vld [vmem:[%s8601_s27 + $0xc98] sm:$0xff] }
 0x6db   : > { %7365 = vmatprep.subr.bf16.mxu1 %v7851_v4  ;;  %v4031_v4 = vld [vmem:[%s8601_s27 + $0x938] sm:$0xff] }
 0x6dc   : > { %7325 = vmatpush2.bf16.msra.mxu0 %v7722_v2  ;;  %v7930_v2 = vcombine.low %v4035_v58, %v4039_v31  ;;  %v4143_v33 = vld [vmem:[%s8601_s27 + $0xcb8] sm:$0xff] }
 0x6dd   : > { %7326 = vmatprep.subr.bf16.mxu0 %v7715_v26  ;;  %v8058_v26 = vcombine.low %v4163_v13, %v4167_v48  ;;  %v4003_v63 = vld [vmem:[%s8601_s27 + $0x858] sm:$0xff] }
 0x6de   : > { %7366 = vmatpush2.bf16.msra.mxu1 %v7850_v30  ;;  %v4007_v21 = vld [vmem:[%s8601_s27 + $0x878] sm:$0xff] }
 0x6df   : > { %7367 = vmatprep.subr.bf16.mxu1 %v7843_v0  ;;  %v7923_v0 = vcombine.high %v4027_v51, %v4031_v4  ;;  %v4131_v27 = vld [vmem:[%s8601_s27 + $0xc58] sm:$0xff] }
 0x6e0   : > { %7327 = vmatpush2.bf16.msra.mxu0 %v7714_v50  ;;  %v7922_v50 = vcombine.low %v4027_v51, %v4031_v4  ;;  %v4135_v12 = vld [vmem:[%s8601_s27 + $0xc78] sm:$0xff] }
 0x6e1   : > { %7328 = vmatprep.subr.bf16.mxu0 %v7707_v52  ;;  %v7915_v52 = vcombine.high %v4019_v60, %v4023_v32  ;;  %v3995_v57 = vld [vmem:[%s8601_s27 + $0x818] sm:$0xff] }
 0x6e2   : > { %7368 = vmatpush2.bf16.msra.mxu1 %v7842_v20  ;;  %v8050_v20 = vcombine.low %v4155_v46, %v4159_v9  ;;  %v3999_v8 = vld [vmem:[%s8601_s27 + $0x838] sm:$0xff] }
 0x6e3   : > { %7369 = vmatprep.subr.bf16.mxu1 %v7835_v62  ;;  %v8043_v62 = vcombine.high %v4147_v37, %v4151_v23  ;;  %v4119_v58 = vld [vmem:[%s8601_s27 + $0xbf8] sm:$0xff]  ;;  %v7890_v13 = vcombine.low %v3995_v57, %v3999_v8 }
 0x6e4   : > { %7329 = vmatpush2.bf16.msra.mxu0 %v7706_v53  ;;  %v7914_v53 = vcombine.low %v4019_v60, %v4023_v32  ;;  %v4243_v31 = vld [vmem:[%s8601_s27 + $0xfd8] sm:$0xff] }
 0x6e5   : > { %7330 = vmatprep.subr.bf16.mxu0 %v7699_v15  ;;  %v7907_v15 = vcombine.high %v4011_v47, %v4015_v11  ;;  %v4103_v51 = vld [vmem:[%s8601_s27 + $0xb78] sm:$0xff] }
 0x6e6   : > { %7370 = vmatpush2.bf16.msra.mxu1 %v7834_v38  ;;  %v8042_v38 = vcombine.low %v4147_v37, %v4151_v23  ;;  %v4227_v4 = vld [vmem:[%s8601_s27 + $0xf58] sm:$0xff] }
 0x6e7   : > { %7371 = vmatprep.subr.bf16.mxu1 %v7827_v45  ;;  %v8035_v45 = vcombine.high %v4139_v19, %v4143_v33  ;;  %v4083_v37 = vld [vmem:[%s8601_s27 + $0xad8] sm:$0xff] }
 0x6e8   : > { %7331 = vmatpush2.bf16.msra.mxu0 %v7698_v41  ;;  %v7906_v41 = vcombine.low %v4011_v47, %v4015_v11  ;;  %v4087_v23 = vld [vmem:[%s8601_s27 + $0xaf8] sm:$0xff] }
 0x6e9   : > { %7382 = vmatprep.subr.bf16.mxu0 %v7947_v59  ;;  %v7899_v59 = vcombine.high %v4003_v63, %v4007_v21  ;;  %v7979_v47 = vcombine.high %v4083_v37, %v4087_v23 }
 0x6ea   : > { %7372 = vmatpush2.bf16.msra.mxu1 %v7826_v22  ;;  %v8034_v22 = vcombine.low %v4139_v19, %v4143_v33  ;;  %v4075_v19 = vld [vmem:[%s8601_s27 + $0xa98] sm:$0xff] }
 0x6eb   : > { %7423 = vmatprep.subr.bf16.mxu1 %v8075_v56  ;;  %v7088_v5 = vpop.f32.mrf.mxu0  ;;  %7333 = vmatmul.mubr.bf16.vlgmr.msra.gmra.mxu0 %v10275_v43  ;;  %v8066_v43 = vcombine.low %v4171_v44, %v4175_v42  ;;  %v8027_v56 = vcombine.high %v4131_v27, %v4135_v12  ;;  %v4123_v44 = vld [vmem:[%s8601_s27 + $0xc18] sm:$0xff] }
 0x6ec   : > { %v7089_v24 = vadd.f32 %v7088_v5, %v7048_v35  ;;  %7383 = vmatpush1.bf16.msra.mxu0 %v7946_v7  ;;  %7414 = vmatprep.mubr.bf16.mxu0 %v10283_v3  ;;  %v4127_v42 = vld [vmem:[%s8601_s27 + $0xc38] sm:$0xff]  ;;  %v7898_v7 = vcombine.low %v4003_v63, %v4007_v21 }
 0x6ed   : > { %v7129_v28 = vpop.f32.mrf.mxu1  ;;  %7374 = vmatmul.mubr.bf16.vlgmr.msra.gmra.mxu1 %v10279_v61  ;;  %v7090_v49 = vpop.f32.mrf.mxu0  ;;  %7384 = vmatprep.subr.bf16.mxu0 %v7939_v39  ;;  %v7891_v39 = vcombine.high %v3995_v57, %v3999_v8  ;;  %v8019_v35 = vcombine.high %v4123_v44, %v4127_v42  ;;  %v4247_v5 = vld [vmem:[%s8601_s27 + $0xff8] sm:$0xff]  ;;  %v8018_v48 = vcombine.low %v4123_v44, %v4127_v42 }
 0x6ee   : > { %7424 = vmatpush1.bf16.msra.mxu1 %v8074_v40  ;;  %v7130_v6 = vadd.f32 %v7129_v28, %v7089_v24  ;;  %v7091_v17 = vadd.f32 %v7090_v49, %v7050_v14  ;;  %7455 = vmatprep.mubr.bf16.mxu1 %v10288_v34  ;;  %v8051_v34 = vcombine.high %v4155_v46, %v4159_v9  ;;  %v4107_v28 = vld [vmem:[%s8601_s27 + $0xb98] sm:$0xff] }
 0x6ef   : > { %v7131_v36 = vpop.f32.mrf.mxu1  ;;  %7425 = vmatprep.subr.bf16.mxu1 %v8067_v1  ;;  %v7092_v61 = vpop.f32.mrf.mxu0  ;;  %v8026_v40 = vcombine.low %v4131_v27, %v4135_v12  ;;  %v4115_v1 = vld [vmem:[%s8601_s27 + $0xbd8] sm:$0xff]  ;;  %v8139_v24 = vcombine.high %v4243_v31, %v4247_v5 }
 0x6f0   : > { %7466 = vst [vmem:[%s8616_s16 + $0x10] sm:$0xff] %v7130_v6  ;;  %v7132_v55 = vadd.f32 %v7131_v36, %v7091_v17  ;;  %7385 = vmatpush1.bf16.msra.mxu0 %v7938_v16  ;;  %v8011_v14 = vcombine.high %v4115_v1, %v4119_v58  ;;  %v4111_v16 = vld [vmem:[%s8601_s27 + $0xbb8] sm:$0xff]  ;;  %v8138_v6 = vcombine.low %v4243_v31, %v4247_v5 }
 0x6f1   : > { %v7133_v10 = vpop.f32.mrf.mxu1  ;;  %v7093_v30 = vpop.f32.mrf.mxu0  ;;  %7386 = vmatprep.subr.bf16.mxu0 %v7931_v25  ;;  %v4235_v49 = vld [vmem:[%s8601_s27 + $0xf98] sm:$0xff]  ;;  %v8010_v25 = vcombine.low %v4115_v1, %v4119_v58  ;;  %v8003_v17 = vcombine.high %v4107_v28, %v4111_v16  ;;  %v8002_v46 = vcombine.low %v4107_v28, %v4111_v16 }
 0x6f2   : > { %7426 = vmatpush1.bf16.msra.mxu1 %v8066_v43  ;;  %7467 = vst [vmem:[%s8616_s16 + $0x18] sm:$0xff] %v7132_v55  ;;  %v4239_v43 = vld [vmem:[%s8601_s27 + $0xfb8] sm:$0xff] }
 0x6f3   : > { %v7134_v3 = vpop.f32.mrf.mxu1  ;;  %7427 = vmatprep.subr.bf16.mxu1 %v8059_v54  ;;  %v8131_v36 = vcombine.high %v4235_v49, %v4239_v43  ;;  %v4099_v54 = vld [vmem:[%s8601_s27 + $0xb58] sm:$0xff]  ;;  %v8130_v9 = vcombine.low %v4235_v49, %v4239_v43 }
 0x6f4   : > { %7387 = vmatpush1.bf16.msra.mxu0 %v7930_v2  ;;  %v4231_v61 = vld [vmem:[%s8601_s27 + $0xf78] sm:$0xff]  ;;  %v7995_v55 = vcombine.high %v4099_v54, %v4103_v51  ;;  %v7994_v3 = vcombine.low %v4099_v54, %v4103_v51 }
 0x6f5   : > { %7388 = vmatprep.subr.bf16.mxu0 %v7923_v0  ;;  %v8123_v10 = vcombine.high %v4227_v4, %v4231_v61  ;;  %v4091_v2 = vld [vmem:[%s8601_s27 + $0xb18] sm:$0xff] }
 0x6f6   : > { %7428 = vmatpush1.bf16.msra.mxu1 %v8058_v26  ;;  %v4095_v30 = vld [vmem:[%s8601_s27 + $0xb38] sm:$0xff] }
 0x6f7   : > { %7429 = vmatprep.subr.bf16.mxu1 %v8051_v34  ;;  %v4219_v26 = vld [vmem:[%s8601_s27 + $0xf18] sm:$0xff]  ;;  %v8122_v34 = vcombine.low %v4227_v4, %v4231_v61  ;;  %v7987_v60 = vcombine.high %v4091_v2, %v4095_v30 }
 0x6f8   : > { %7389 = vmatpush1.bf16.msra.mxu0 %v7922_v50  ;;  %v4223_v0 = vld [vmem:[%s8601_s27 + $0xf38] sm:$0xff] }
 0x6f9   : > { %7390 = vmatprep.subr.bf16.mxu0 %v7915_v52  ;;  %v8115_v32 = vcombine.high %v4219_v26, %v4223_v0  ;;  %v4211_v50 = vld [vmem:[%s8601_s27 + $0xed8] sm:$0xff]  ;;  %v7986_v52 = vcombine.low %v4091_v2, %v4095_v30 }
 0x6fa   : > { %7430 = vmatpush1.bf16.msra.mxu1 %v8050_v20  ;;  %v4215_v20 = vld [vmem:[%s8601_s27 + $0xef8] sm:$0xff] }
 0x6fb   : > { %7431 = vmatprep.subr.bf16.mxu1 %v8043_v62  ;;  %v8114_v62 = vcombine.low %v4219_v26, %v4223_v0  ;;  %v8107_v11 = vcombine.high %v4211_v50, %v4215_v20  ;;  %v4079_v33 = vld [vmem:[%s8601_s27 + $0xab8] sm:$0xff] }
 0x6fc   : > { %7391 = vmatpush1.bf16.msra.mxu0 %v7914_v53  ;;  %v4203_v53 = vld [vmem:[%s8601_s27 + $0xe98] sm:$0xff]  ;;  %v7971_v63 = vcombine.high %v4075_v19, %v4079_v33 }
 0x6fd   : > { %7392 = vmatprep.subr.bf16.mxu0 %v7907_v15  ;;  %v7978_v15 = vcombine.low %v4083_v37, %v4087_v23  ;;  %v4067_v27 = vld [vmem:[%s8601_s27 + $0xa58] sm:$0xff] }
 0x6fe   : > { %7432 = vmatpush1.bf16.msra.mxu1 %v8042_v38  ;;  %v4207_v38 = vld [vmem:[%s8601_s27 + $0xeb8] sm:$0xff] }
 0x6ff   : > { %7433 = vmatprep.subr.bf16.mxu1 %v8035_v45  ;;  %v8106_v45 = vcombine.low %v4211_v50, %v4215_v20  ;;  %v8099_v21 = vcombine.high %v4203_v53, %v4207_v38  ;;  %v4071_v12 = vld [vmem:[%s8601_s27 + $0xa78] sm:$0xff] }
 0x700   : > { %7393 = vmatpush1.bf16.msra.mxu0 %v7906_v41  ;;  %v4195_v41 = vld [vmem:[%s8601_s27 + $0xe58] sm:$0xff]  ;;  %v7963_v57 = vcombine.high %v4067_v27, %v4071_v12 }
 0x701   : > { %7394 = vmatprep.subr.bf16.mxu0 %v7899_v59  ;;  %v7970_v59 = vcombine.low %v4075_v19, %v4079_v33  ;;  %v4059_v44 = vld [vmem:[%s8601_s27 + $0xa18] sm:$0xff] }
 0x702   : > { %7434 = vmatpush1.bf16.msra.mxu1 %v8034_v22  ;;  %v4199_v22 = vld [vmem:[%s8601_s27 + $0xe78] sm:$0xff] }
 0x703   : > { %7435 = vmatprep.subr.bf16.mxu1 %v8027_v56  ;;  %v8098_v56 = vcombine.low %v4203_v53, %v4207_v38  ;;  %v8091_v8 = vcombine.high %v4195_v41, %v4199_v22  ;;  %v4063_v42 = vld [vmem:[%s8601_s27 + $0xa38] sm:$0xff] }
 0x704   : > { %7395 = vmatpush1.bf16.msra.mxu0 %v7898_v7  ;;  %v4187_v7 = vld [vmem:[%s8601_s27 + $0xe18] sm:$0xff]  ;;  %v7955_v1 = vcombine.high %v4059_v44, %v4063_v42  ;;  %v7954_v31 = vcombine.low %v4059_v44, %v4063_v42 }
 0x705   : > { %7396 = vmatprep.subr.bf16.mxu0 %v7891_v39  ;;  %v7962_v39 = vcombine.low %v4067_v27, %v4071_v12 }
 0x706   : > { %7436 = vmatpush1.bf16.msra.mxu1 %v8026_v40  ;;  %v4191_v40 = vld [vmem:[%s8601_s27 + $0xe38] sm:$0xff] }
 0x707   : > { %7437 = vmatprep.subr.bf16.mxu1 %v8019_v35  ;;  %v8090_v35 = vcombine.low %v4195_v41, %v4199_v22  ;;  %v8083_v58 = vcombine.high %v4187_v7, %v4191_v40  ;;  %v8082_v5 = vcombine.low %v4187_v7, %v4191_v40 }
 0x708   : > { %7397 = vmatpush1.bf16.msra.mxu0 %v7890_v13 }
 0x709   : > { %7398 = vmatprep.subr.bf16.mxu0 %v8011_v14 }
 0x70a   : > { %7438 = vmatpush1.bf16.msra.mxu1 %v8018_v48 }
 0x70b   : > { %7439 = vmatprep.subr.bf16.mxu1 %v8139_v24 }
 0x70c   : > { %7399 = vmatpush2.bf16.msra.mxu0 %v8010_v25 }
 0x70d   : > { %7400 = vmatprep.subr.bf16.mxu0 %v8003_v17 }
 0x70e   : > { %7440 = vmatpush2.bf16.msra.mxu1 %v8138_v6 }
 0x70f   : > { %7441 = vmatprep.subr.bf16.mxu1 %v8131_v36 }
 0x710   : > { %7401 = vmatpush2.bf16.msra.mxu0 %v8002_v46 }
 0x711   : > { %7402 = vmatprep.subr.bf16.mxu0 %v7995_v55 }
 0x712   : > { %7442 = vmatpush2.bf16.msra.mxu1 %v8130_v9 }
 0x713   : > { %7443 = vmatprep.subr.bf16.mxu1 %v8123_v10 }
 0x714   : > { %7403 = vmatpush2.bf16.msra.mxu0 %v7994_v3 }
 0x715   : > { %7404 = vmatprep.subr.bf16.mxu0 %v7987_v60 }
 0x716   : > { %7444 = vmatpush2.bf16.msra.mxu1 %v8122_v34 }
 0x717   : > { %7445 = vmatprep.subr.bf16.mxu1 %v8115_v32 }
 0x718   : > { %7405 = vmatpush2.bf16.msra.mxu0 %v7986_v52 }
 0x719   : > { %7406 = vmatprep.subr.bf16.mxu0 %v7979_v47 }
 0x71a   : > { %7446 = vmatpush2.bf16.msra.mxu1 %v8114_v62 }
 0x71b   : > { %7447 = vmatprep.subr.bf16.mxu1 %v8107_v11 }
 0x71c   : > { %7407 = vmatpush2.bf16.msra.mxu0 %v7978_v15 }
 0x71d   : > { %7408 = vmatprep.subr.bf16.mxu0 %v7971_v63 }
 0x71e   : > { %7448 = vmatpush2.bf16.msra.mxu1 %v8106_v45 }
 0x71f   : > { %7449 = vmatprep.subr.bf16.mxu1 %v8099_v21 }
 0x720   : > { %7409 = vmatpush2.bf16.msra.mxu0 %v7970_v59 }
 0x721   : > { %7410 = vmatprep.subr.bf16.mxu0 %v7963_v57 }
 0x722   : > { %7450 = vmatpush2.bf16.msra.mxu1 %v8098_v56 }
 0x723   : > { %7451 = vmatprep.subr.bf16.mxu1 %v8091_v8 }
 0x724   : > { %7411 = vmatpush2.bf16.msra.mxu0 %v7962_v39 }
 0x725   : > { %7412 = vmatprep.subr.bf16.mxu0 %v7955_v1 }
 0x726   : > { %7452 = vmatpush2.bf16.msra.mxu1 %v8090_v35 }
 0x727   : > { %7453 = vmatprep.subr.bf16.mxu1 %v8083_v58 }
 0x728   : > { %7413 = vmatpush2.bf16.msra.mxu0 %v7954_v31 }
 0x72a   : > { %7454 = vmatpush2.bf16.msra.mxu1 %v8082_v5 }
 0x72b   : > { %v7170_v13 = vpop.f32.mrf.mxu0  ;;  %7415 = vmatmul.mubr.bf16.vlgmr.msra.gmra.mxu0 %v10351_v29 }
 0x72d   : > { %v7211_v48 = vpop.f32.mrf.mxu1  ;;  %7456 = vmatmul.mubr.bf16.vlgmr.msra.gmra.mxu1 %v10355_v18  ;;  %v7172_v14 = vpop.f32.mrf.mxu0 }
 0x72e   : > { %v7212_v25 = vadd.f32 %v7211_v48, %v7170_v13 }
 0x72f   : > { %v7213_v24 = vpop.f32.mrf.mxu1  ;;  %v7174_v28 = vpop.f32.mrf.mxu0 }
 0x730   : > { %v7214_v17 = vadd.f32 %v7213_v24, %v7172_v14 }
 0x731   : > { %v7215_v16 = vpop.f32.mrf.mxu1  ;;  %v7175_v49 = vpop.f32.mrf.mxu0 }
 0x733   : > { %v7216_v43 = vpop.f32.mrf.mxu1 }
 0x76b   : > { %v7252_v6 = vpop.f32.mrf.mxu0 }
 0x76c   : > { %v7253_v36 = vadd.f32 %v7252_v6, %v7212_v25 }
 0x76d   : > { %v7293_v54 = vpop.f32.mrf.mxu1  ;;  %v7254_v51 = vpop.f32.mrf.mxu0 }
 0x76e   : > { %v7294_v4 = vadd.f32 %v7293_v54, %v7253_v36  ;;  %v7255_v61 = vadd.f32 %v7254_v51, %v7214_v17 }
 0x76f   : > { %v7295_v29 = vpop.f32.mrf.mxu1  ;;  %v7256_v46 = vpop.f32.mrf.mxu0 }
 0x770   : > { %7468 = vst [vmem:[%s8616_s16 + $0x20] sm:$0xff] %v7294_v4  ;;  %v7296_v18 = vadd.f32 %v7295_v29, %v7255_v61 }
 0x771   : > { %v7297_v9 = vpop.f32.mrf.mxu1  ;;  %v7257_v55 = vpop.f32.mrf.mxu0 }
 0x772   : > { %7469 = vst [vmem:[%s8616_s16 + $0x28] sm:$0xff] %v7296_v18 }
 0x773   : > { %v7298_v10 = vpop.f32.mrf.mxu1 }
 0x7ab   : > { %v7334_v2 = vpop.f32.mrf.mxu0 }
 0x7ad   : > { %v7375_v30 = vpop.f32.mrf.mxu1  ;;  %v7336_v26 = vpop.f32.mrf.mxu0 }
 0x7ae   : > { %v7376_v37 = vadd.f32 %v7375_v30, %v7334_v2 }
 0x7af   : > { %v7377_v0 = vpop.f32.mrf.mxu1  ;;  %v7338_v3 = vpop.f32.mrf.mxu0 }
 0x7b0   : > { %v7378_v50 = vadd.f32 %v7377_v0, %v7336_v26 }
 0x7b1   : > { %v7379_v34 = vpop.f32.mrf.mxu1  ;;  %v7339_v60 = vpop.f32.mrf.mxu0 }
 0x7b3   : > { %v7380_v32 = vpop.f32.mrf.mxu1 }
 0x7eb   : > { %v7416_v23 = vpop.f32.mrf.mxu0 }
 0x7ec   : > { %v7417_v20 = vadd.f32 %v7416_v23, %v7376_v37 }
 0x7ed   : > { %v7457_v52 = vpop.f32.mrf.mxu1  ;;  %v7418_v62 = vpop.f32.mrf.mxu0 }
 0x7ee   : > { %v7458_v47 = vadd.f32 %v7457_v52, %v7417_v20  ;;  %v7419_v11 = vadd.f32 %v7418_v62, %v7378_v50 }
 0x7ef   : > { %v7459_v19 = vpop.f32.mrf.mxu1  ;;  %v7420_v33 = vpop.f32.mrf.mxu0 }
 0x7f0   : > { %7470 = vst [vmem:[%s8616_s16 + $0x30] sm:$0xff] %v7458_v47  ;;  %v7460_v53 = vadd.f32 %v7459_v19, %v7419_v11 }
 0x7f1   : > { %v7461_v38 = vpop.f32.mrf.mxu1  ;;  %v7421_v15 = vpop.f32.mrf.mxu0 }
 0x7f2   : > { %7471 = vst [vmem:[%s8616_s16 + $0x38] sm:$0xff] %v7460_v53 }
 0x7f3   : > { %v7462_v45 = vpop.f32.mrf.mxu1 }
 0x7f4 PF: > { %s20_s12 = sadd.s32 1, %s8409_s12   ;;  %s10858_s13 = sld [smem:[#allocation13_spill]] }
 0x7f5   : > { %p17_p13 = scmp.ge.s32.totalorder %s20_s12, 10   ;;  %s10859_s14 = sld [smem:[#allocation14_spill]] }
 0x7f6   : > { %s10860_s27 = smov %s8385_s28  ;;  %s10861_s28 = smov %s8389_s29 }
 0x7f7   : > { %s10862_s29 = smov %s8579_s2  ;;  %s10863_s30 = smov %s8401_s10 }
 0x7f8   : > { %s10864_s9 = smov %s8405_s11  ;;  %19 = sbr.rel (!%p17_p13) target bundleno = 10 (0xa), region = 111 }
 0x7fa   : > { %s10865_s10 = smov %s10858_s13 }
 0x7fb   : > { %s10866_s11 = smov %s10859_s14 }
 0x7fd   :  { %7502 = vsyncpa [#allocation6], 1 }
 0x7fe   :  { %7504 = vsyncpa [#allocation6 + $0x1], 1 }
 0x7ff   :  { %7505 = vsyncpa [#allocation8], 1 }

</bundles_post_ra>
